<compile_context>
chip_gen: v6e
topology: v6e:2x2x1
jax: 0.10.0
libtpu: 0.0.40
codegen_flags: <defaults>
</compile_context>

<pallas_src>
import functools
import math

import numpy as np

import jax
import jax.numpy as jnp
from jax.experimental import pallas as pl
from jax.experimental.pallas import tpu as pltpu

LANE = 128
BATCH_TILE_MAX = 128     # raise to 256 on v6e/v7x if the VMEM budget allows
HEAD_PAD = 128           # fused (event|reg) head output padded to lane-dense width


def _round_up(v, m):
    return ((v + m - 1) // m) * m


# ----------------------------------------------------------------------------
# Fused kernel: LSTM stack -> last-query multi-head attention -> fused heads.
# ----------------------------------------------------------------------------
def _fused_kernel(x_ref, *refs, num_layers, num_heads, hidden_orig):
    n_w = 3 * num_layers + 11
    w_refs = refs[:n_w]
    out_ref = refs[n_w]
    gates_sc = refs[n_w + 1]             # (T, BT, 4*Hp) f32 staging for x @ W_ih

    (wq_ref, bq_ref, wk_ref, bk_ref, wv_ref, bv_ref,
     wo_ref, bo_ref, hsum_ref, whd_ref, bhd_ref) = w_refs[3 * num_layers:]

    f32, bf16 = jnp.float32, jnp.bfloat16
    T, BT, _ = x_ref.shape
    Hp = wo_ref.shape[0]
    dh = hidden_orig // num_heads        # PyTorch scales by 1/sqrt(head_dim) (unpadded)

    # ------------------------------ LSTM stack ------------------------------
    cur = x_ref[...]                     # (T, BT, Din), time-major
    h = None
    for layer in range(num_layers):
        wih = w_refs[3 * layer][...]       # (Din, 4*Hp) bf16, gate-fused
        whh = w_refs[3 * layer + 1][...]   # (Hp, 4*Hp)  bf16, gate-fused
        bias = w_refs[3 * layer + 2][...]  # (1, 4*Hp)   f32  (b_ih + b_hh)
        din = cur.shape[-1]

        # Hoisted input projection: ONE big lane/sublane-dense matmul per layer,
        # bias folded in, result staged in VMEM scratch (dense (T,BT,4Hp) store).
        x2d = cur.reshape(T * BT, din).astype(bf16)
        gates_sc[...] = (jnp.dot(x2d, wih, preferred_element_type=f32)
                         + bias).reshape(T, BT, 4 * Hp)

        h = jnp.zeros((BT, Hp), f32)
        c = jnp.zeros((BT, Hp), f32)
        hs = []
        # Fully unrolled recurrence (small static T): a single fused h @ W_hh
        # per step; gate slices land at multiples of 128 lanes -> free.
        # TODO(synk): for production T >~ 16 switch to lax.fori_loop(unroll=4-8)
        # over timestep chunks to bound live ranges / compile time.
        for t in range(T):
            pre = gates_sc[t] + jnp.dot(h.astype(bf16), whh,
                                        preferred_element_type=f32)  # (BT, 4*Hp)
            gi = jax.nn.sigmoid(pre[:, 0 * Hp:1 * Hp])    # gate order: i, f, g, o
            gf = jax.nn.sigmoid(pre[:, 1 * Hp:2 * Hp])
            gg = jnp.tanh(pre[:, 2 * Hp:3 * Hp])
            go = jax.nn.sigmoid(pre[:, 3 * Hp:4 * Hp])
            c = gf * c + gi * gg
            h = go * jnp.tanh(c)
            hs.append(h)
        # Small static T: keep the layer output live and stacked (dense, no
        # masked per-step scratch stores, no full re-read).
        cur = jnp.stack(hs, axis=0)       # (T, BT, Hp) f32
        # Inter-layer LSTM dropout is identity (eval mode).

    seq = cur                             # (T, BT, Hp)
    h_last = h                            # == seq[-1]

    # -------- multi-head self-attention (only the last query is needed) -----
    seq_bf = seq.reshape(T * BT, Hp).astype(bf16)
    k3 = (jnp.dot(seq_bf, wk_ref[...], preferred_element_type=f32)
          + bk_ref[...]).reshape(T, BT, Hp)
    v3 = (jnp.dot(seq_bf, wv_ref[...], preferred_element_type=f32)
          + bv_ref[...]).reshape(T, BT, Hp)
    q = jnp.dot(h_last.astype(bf16), wq_ref[...],
                preferred_element_type=f32) + bq_ref[...]             # (BT, Hp)

    # Lane-dense softmax: hsum[i,j] = 1 iff lanes i,j belong to the same head
    # block, so one full (.,Hp)x(Hp,Hp) matmul broadcasts each head's score to
    # all of that head's lanes. All softmax reductions run over the time axis
    # on fully dense vregs and the context needs no head re-expansion.
    prod = k3 * q[None, :, :]                                         # (T, BT, Hp)
    scores = jnp.dot(prod.reshape(T * BT, Hp), hsum_ref[...],
                     preferred_element_type=f32).reshape(T, BT, Hp)
    scores = scores * (1.0 / math.sqrt(dh))
    m = jnp.max(scores, axis=0, keepdims=True)
    e = jnp.exp(scores - m)
    denom = jnp.sum(e, axis=0, keepdims=True)
    # approx reciprocal uses the otherwise-idle EUP slot; ~1e-3-class rel error
    # (well inside the checked tolerance). Set approx=False for exact parity.
    p = e * pl.reciprocal(denom, approx=True)                         # (T, BT, Hp)
    ctx = jnp.sum(p * v3, axis=0)                                     # (BT, Hp)

    attn_out = jnp.dot(ctx.astype(bf16), wo_ref[...],
                       preferred_element_type=f32) + bo_ref[...]      # (BT, Hp)
    # dropout(h) is identity in eval mode.

    # --------------------- fused, lane-dense output heads -------------------
    out = jnp.dot(attn_out.astype(bf16), whd_ref[...],
                  preferred_element_type=f32) + bhd_ref[...]          # (BT, HEAD_PAD)
    out_ref[...] = out.astype(out_ref.dtype)                          # unmasked store


# ----------------------------------------------------------------------------
# Public forward pass (matches MultiTaskAttentionLSTM.forward in eval mode).
# ----------------------------------------------------------------------------
def multi_task_attention_lstm(x, params, *, batch_tile_max=BATCH_TILE_MAX,
                              vmem_limit_bytes=None):
    x = x.astype(jnp.float32)
    B, T, D = x.shape
    H = params['hidden_dim']
    Hp = params['hidden_pad']
    nH = params['num_heads']
    C = params['num_event_classes']
    R = params['num_reg_targets']
    P = params['b_heads'].shape[1]
    num_layers = len(params['lstm'])

    # Batch tile: as large as VMEM allows (fills MXU rows, amortizes per-step
    # overhead); auto-shrinks for small batches. On v7x keep B_pad // bt >= 2
    # when possible so the "parallel" grid axis shards across both TensorCores.
    bt = min(batch_tile_max, _round_up(B, 8))
    B_pad = _round_up(B, bt)
    if B_pad != B:
        x = jnp.pad(x, ((0, B_pad - B), (0, 0), (0, 0)))
    x_tm = jnp.transpose(x, (1, 0, 2))          # time-major (T, B_pad, D)
    grid = (B_pad // bt,)

    # Replicated weights: whole-array VMEM operands -> a single VMEM copy that
    # is not re-DMA'd / double-buffered per grid step (v7x 64 MiB friendly).
    wspec = pl.BlockSpec(memory_space=pltpu.MemorySpace.VMEM)

    flat_w = []
    for (wih, whh, bias) in params['lstm']:
        flat_w += [wih, whh, bias]
    flat_w += list(params['attn'])
    flat_w += [params['head_sum'], params['w_heads'], params['b_heads']]

    in_specs = [pl.BlockSpec((T, bt, D), lambda i: (0, i, 0))]
    in_specs += [wspec] * len(flat_w)

    kernel = functools.partial(_fused_kernel, num_layers=num_layers,
                               num_heads=nH, hidden_orig=H)

    # NOTE(v7x): 64 MiB VMEM -- at production T/H re-derive the budget
    # (x block + gate scratch T*bt*4*Hp*4B + attention intermediates + single
    # weight copies), pass vmem_limit_bytes explicitly, and tile the time axis
    # for the projection/attention phases if the whole sequence does not fit.
    out = pl.pallas_call(
        kernel,
        out_shape=jax.ShapeDtypeStruct((B_pad, P), jnp.float32),
        grid_spec=pltpu.PrefetchScalarGridSpec(
            num_scalar_prefetch=0,
            grid=grid,
            in_specs=in_specs,
            out_specs=pl.BlockSpec((bt, P), lambda i: (i, 0)),
            scratch_shapes=[pltpu.VMEM((T, bt, 4 * Hp), jnp.float32)],
        ),
        compiler_params=pltpu.CompilerParams(
            dimension_semantics=("parallel",),
            vmem_limit_bytes=vmem_limit_bytes),
    )(x_tm, *flat_w)

    event_logits = out[:B, :C]
    reg_out = out[:B, C:C + R]
    return event_logits, reg_out


# ----------------------------------------------------------------------------
# Deterministic parameter init in native PyTorch layouts (for the reference),
# plus repacking into the fused / padded layouts consumed by the kernel.
# ----------------------------------------------------------------------------
def init_raw_params(key, input_dim, hidden_dim, num_layers, num_event_classes,
                    num_reg_targets=3):
    H = hidden_dim
    bound = 1.0 / math.sqrt(H)

    def u(k, shape):
        return jax.random.uniform(k, shape, jnp.float32, -bound, bound)

    keys = iter(jax.random.split(key, 4 * num_layers + 8))
    lstm = []
    for layer in range(num_layers):
        din = input_dim if layer == 0 else H
        lstm.append((u(next(keys), (4 * H, din)),      # w_ih
                     u(next(keys), (4 * H, H)),        # w_hh
                     u(next(keys), (4 * H,)),          # b_ih
                     u(next(keys), (4 * H,))))         # b_hh
    return dict(
        lstm=lstm,
        in_proj_w=u(next(keys), (3 * H, H)),           # rows: [W_q; W_k; W_v]
        in_proj_b=u(next(keys), (3 * H,)),
        out_w=u(next(keys), (H, H)),
        out_b=u(next(keys), (H,)),
        w_event=u(next(keys), (num_event_classes, H)),
        b_event=u(next(keys), (num_event_classes,)),
        w_reg=u(next(keys), (num_reg_targets, H)),
        b_reg=u(next(keys), (num_reg_targets,)),
        hidden_dim=H, input_dim=input_dim,
        num_event_classes=num_event_classes, num_reg_targets=num_reg_targets,
    )


def pack_params(raw, *, num_heads=4, head_pad=HEAD_PAD):
    """Repack PyTorch-layout params into fused / lane-padded kernel layouts."""
    f32, bf16 = jnp.float32, jnp.bfloat16
    H = raw['hidden_dim']
    C = raw['num_event_classes']
    R = raw['num_reg_targets']
    assert H % num_heads == 0, "hidden_dim must be divisible by num_heads"
    Hp = _round_up(H, LANE)
    assert Hp % num_heads == 0
    dh, dh_p = H // num_heads, Hp // num_heads
    # Head-blocked lane permutation: feature j of head n lands at lane
    # n*dh_p + (j % dh); padded lanes stay exactly zero through the kernel.
    perm = (np.arange(H) // dh) * dh_p + (np.arange(H) % dh)

    lstm_p = []
    for li, (w_ih, w_hh, b_ih, b_hh) in enumerate(raw['lstm']):
        din = w_ih.shape[1]
        din_p = din if li == 0 else Hp
        wih_p = jnp.zeros((din_p, 4 * Hp), f32)
        whh_p = jnp.zeros((Hp, 4 * Hp), f32)
        b_p = jnp.zeros((1, 4 * Hp), f32)
        for g in range(4):                              # gate order: i, f, g, o
            wih_p = wih_p.at[:din, g * Hp:g * Hp + H].set(w_ih[g * H:(g + 1) * H, :].T)
            whh_p = whh_p.at[:H, g * Hp:g * Hp + H].set(w_hh[g * H:(g + 1) * H, :].T)
            b_p = b_p.at[0, g * Hp:g * Hp + H].set(
                b_ih[g * H:(g + 1) * H] + b_hh[g * H:(g + 1) * H])
        lstm_p.append((wih_p.astype(bf16), whh_p.astype(bf16), b_p))

    def in_proj(w, b):      # y = x @ w.T + b, output columns head-block permuted
        w_p = jnp.zeros((Hp, Hp), f32).at[:H, perm].set(w.T)
        b_p = jnp.zeros((1, Hp), f32).at[0, perm].set(b)
        return w_p.astype(bf16), b_p

    wq_p, bq_p = in_proj(raw['in_proj_w'][0:H], raw['in_proj_b'][0:H])
    wk_p, bk_p = in_proj(raw['in_proj_w'][H:2 * H], raw['in_proj_b'][H:2 * H])
    wv_p, bv_p = in_proj(raw['in_proj_w'][2 * H:3 * H], raw['in_proj_b'][2 * H:3 * H])
    wo_p = jnp.zeros((Hp, Hp), f32).at[perm, :H].set(raw['out_w'].T).astype(bf16)
    bo_p = jnp.zeros((1, Hp), f32).at[0, :H].set(raw['out_b'])

    # Head-broadcast segment-sum matrix (constant; hoisted out of the kernel).
    blk = np.arange(Hp) // dh_p
    head_sum = jnp.asarray((blk[:, None] == blk[None, :]).astype(np.float32))

    P = max(head_pad, _round_up(C + R, LANE))
    assert C + R <= P
    w_hd = (jnp.zeros((Hp, P), f32)
            .at[:H, :C].set(raw['w_event'].T)
            .at[:H, C:C + R].set(raw['w_reg'].T)).astype(bf16)
    b_hd = (jnp.zeros((1, P), f32)
            .at[0, :C].set(raw['b_event'])
            .at[0, C:C + R].set(raw['b_reg']))

    return dict(
        lstm=lstm_p,
        attn=(wq_p, bq_p, wk_p, bk_p, wv_p, bv_p, wo_p, bo_p),
        head_sum=head_sum, w_heads=w_hd, b_heads=b_hd,
        hidden_dim=H, hidden_pad=Hp, num_heads=num_heads,
        num_event_classes=C, num_reg_targets=R,
    )


# ----------------------------------------------------------------------------
# Pure-JAX reference (eval mode, f32 HIGHEST) for a numerical sanity check.
# ----------------------------------------------------------------------------
def reference_forward(x, raw, *, num_heads=4):
    hi = jax.lax.Precision.HIGHEST
    x = x.astype(jnp.float32)
    B, T, _ = x.shape
    H = raw['hidden_dim']
    seq = x
    for (w_ih, w_hh, b_ih, b_hh) in raw['lstm']:
        h = jnp.zeros((B, H), jnp.float32)
        c = jnp.zeros((B, H), jnp.float32)
        outs = []
        for t in range(T):
            g = (jnp.dot(seq[:, t, :], w_ih.T, precision=hi)
                 + jnp.dot(h, w_hh.T, precision=hi) + b_ih + b_hh)
            i = jax.nn.sigmoid(g[:, 0:H])
            f = jax.nn.sigmoid(g[:, H:2 * H])
            gg = jnp.tanh(g[:, 2 * H:3 * H])
            o = jax.nn.sigmoid(g[:, 3 * H:4 * H])
            c = f * c + i * gg
            h = o * jnp.tanh(c)
            outs.append(h)
        seq = jnp.stack(outs, axis=1)
    dh = H // num_heads
    Wq, Wk, Wv = (raw['in_proj_w'][0:H], raw['in_proj_w'][H:2 * H],
                  raw['in_proj_w'][2 * H:3 * H])
    bq, bk, bv = (raw['in_proj_b'][0:H], raw['in_proj_b'][H:2 * H],
                  raw['in_proj_b'][2 * H:3 * H])
    q = (jnp.dot(seq[:, -1, :], Wq.T, precision=hi) + bq).reshape(B, num_heads, dh)
    k = (jnp.dot(seq, Wk.T, precision=hi) + bk).reshape(B, T, num_heads, dh)
    v = (jnp.dot(seq, Wv.T, precision=hi) + bv).reshape(B, T, num_heads, dh)
    scores = jnp.einsum('bnd,btnd->bnt', q, k, precision=hi) / math.sqrt(dh)
    p = jax.nn.softmax(scores, axis=-1)
    ctx = jnp.einsum('bnt,btnd->bnd', p, v, precision=hi).reshape(B, H)
    attn_out = jnp.dot(ctx, raw['out_w'].T, precision=hi) + raw['out_b']
    ev = jnp.dot(attn_out, raw['w_event'].T, precision=hi) + raw['b_event']
    rg = jnp.dot(attn_out, raw['w_reg'].T, precision=hi) + raw['b_reg']
    return ev, rg


if __name__ == "__main__":
    B, T, D = 2, 8, 16          # batch, seq, input_dim
    H = 32                      # hidden_dim
    NUM_LAYERS = 2
    NUM_EVENT_CLASSES = 5

    key = jax.random.PRNGKey(0)
    kx, kp = jax.random.split(key)
    x = jax.random.normal(kx, (B, T, D), jnp.float32)
    raw = init_raw_params(kp, D, H, NUM_LAYERS, NUM_EVENT_CLASSES)
    params = pack_params(raw, num_heads=4)

    fwd = jax.jit(lambda xx: multi_task_attention_lstm(xx, params))
    event_logits, reg_out = fwd(x)
    jax.block_until_ready((event_logits, reg_out))

    assert event_logits.shape == (B, NUM_EVENT_CLASSES)
    assert reg_out.shape == (B, 3)

    ref_event, ref_reg = reference_forward(x, raw, num_heads=4)
    err_e = float(jnp.max(jnp.abs(event_logits - ref_event)))
    err_r = float(jnp.max(jnp.abs(reg_out - ref_reg)))
    # bf16 MXU operands (f32 accumulate) vs the f32-HIGHEST reference.
    assert jnp.allclose(event_logits, ref_event, atol=1e-2, rtol=1e-2), err_e
    assert jnp.allclose(reg_out, ref_reg, atol=1e-2, rtol=1e-2), err_r

    print("KERNEL_OK")
</pallas_src>

<mosaic_0001>
module attributes {stable_mosaic.version = 11 : i64} {
  func.func @_fused_kernel(%arg0: i32, %arg1: memref<8x8x16xf32, #tpu.memory_space<vmem>>, %arg2: memref<16x512xbf16, #tpu.memory_space<vmem>>, %arg3: memref<128x512xbf16, #tpu.memory_space<vmem>>, %arg4: memref<1x512xf32, #tpu.memory_space<vmem>>, %arg5: memref<128x512xbf16, #tpu.memory_space<vmem>>, %arg6: memref<128x512xbf16, #tpu.memory_space<vmem>>, %arg7: memref<1x512xf32, #tpu.memory_space<vmem>>, %arg8: memref<128x128xbf16, #tpu.memory_space<vmem>>, %arg9: memref<1x128xf32, #tpu.memory_space<vmem>>, %arg10: memref<128x128xbf16, #tpu.memory_space<vmem>>, %arg11: memref<1x128xf32, #tpu.memory_space<vmem>>, %arg12: memref<128x128xbf16, #tpu.memory_space<vmem>>, %arg13: memref<1x128xf32, #tpu.memory_space<vmem>>, %arg14: memref<128x128xbf16, #tpu.memory_space<vmem>>, %arg15: memref<1x128xf32, #tpu.memory_space<vmem>>, %arg16: memref<128x128xf32, #tpu.memory_space<vmem>>, %arg17: memref<128x128xbf16, #tpu.memory_space<vmem>>, %arg18: memref<1x128xf32, #tpu.memory_space<vmem>>, %arg19: memref<8x128xf32, #tpu.memory_space<vmem>>, %arg20: memref<8x8x512xf32, #tpu.memory_space<vmem>>) attributes {dimension_semantics = [#tpu.dimension_semantics<parallel>], iteration_bounds = array<i64: 1>, scalar_prefetch = 0 : i64, scratch_operands = 1 : i64, tpu.core_type = #tpu.core_type<tc>, window_params = [{transform_indices = @transform_0, window_bounds = array<i64: 8, 8, 16>}, {pipeline_mode = #tpu.pipeline_mode<synchronous>, transform_indices = @transform_1, window_bounds = array<i64: 16, 512>}, {pipeline_mode = #tpu.pipeline_mode<synchronous>, transform_indices = @transform_2, window_bounds = array<i64: 128, 512>}, {pipeline_mode = #tpu.pipeline_mode<synchronous>, transform_indices = @transform_3, window_bounds = array<i64: 1, 512>}, {pipeline_mode = #tpu.pipeline_mode<synchronous>, transform_indices = @transform_4, window_bounds = array<i64: 128, 512>}, {pipeline_mode = #tpu.pipeline_mode<synchronous>, transform_indices = @transform_5, window_bounds = array<i64: 128, 512>}, {pipeline_mode = #tpu.pipeline_mode<synchronous>, transform_indices = @transform_6, window_bounds = array<i64: 1, 512>}, {pipeline_mode = #tpu.pipeline_mode<synchronous>, transform_indices = @transform_7, window_bounds = array<i64: 128, 128>}, {pipeline_mode = #tpu.pipeline_mode<synchronous>, transform_indices = @transform_8, window_bounds = array<i64: 1, 128>}, {pipeline_mode = #tpu.pipeline_mode<synchronous>, transform_indices = @transform_9, window_bounds = array<i64: 128, 128>}, {pipeline_mode = #tpu.pipeline_mode<synchronous>, transform_indices = @transform_10, window_bounds = array<i64: 1, 128>}, {pipeline_mode = #tpu.pipeline_mode<synchronous>, transform_indices = @transform_11, window_bounds = array<i64: 128, 128>}, {pipeline_mode = #tpu.pipeline_mode<synchronous>, transform_indices = @transform_12, window_bounds = array<i64: 1, 128>}, {pipeline_mode = #tpu.pipeline_mode<synchronous>, transform_indices = @transform_13, window_bounds = array<i64: 128, 128>}, {pipeline_mode = #tpu.pipeline_mode<synchronous>, transform_indices = @transform_14, window_bounds = array<i64: 1, 128>}, {pipeline_mode = #tpu.pipeline_mode<synchronous>, transform_indices = @transform_15, window_bounds = array<i64: 128, 128>}, {pipeline_mode = #tpu.pipeline_mode<synchronous>, transform_indices = @transform_16, window_bounds = array<i64: 128, 128>}, {pipeline_mode = #tpu.pipeline_mode<synchronous>, transform_indices = @transform_17, window_bounds = array<i64: 1, 128>}, {transform_indices = @transform_18, window_bounds = array<i64: 8, 128>}]} {
    %c0 = arith.constant 0 : index
    %c0_0 = arith.constant 0 : index
    %c0_1 = arith.constant 0 : index
    %0 = vector.load %arg1[%c0, %c0_0, %c0_1] : memref<8x8x16xf32, #tpu.memory_space<vmem>>, vector<8x8x16xf32>
    %c0_2 = arith.constant 0 : index
    %c0_3 = arith.constant 0 : index
    %1 = vector.load %arg2[%c0_2, %c0_3] : memref<16x512xbf16, #tpu.memory_space<vmem>>, vector<16x512xbf16>
    %c0_4 = arith.constant 0 : index
    %c0_5 = arith.constant 0 : index
    %2 = vector.load %arg3[%c0_4, %c0_5] : memref<128x512xbf16, #tpu.memory_space<vmem>>, vector<128x512xbf16>
    %c0_6 = arith.constant 0 : index
    %c0_7 = arith.constant 0 : index
    %3 = vector.load %arg4[%c0_6, %c0_7] : memref<1x512xf32, #tpu.memory_space<vmem>>, vector<1x512xf32>
    %4 = vector.shape_cast %0 : vector<8x8x16xf32> to vector<64x16xf32>
    %5 = arith.truncf %4 : vector<64x16xf32> to vector<64x16xbf16>
    %cst = arith.constant dense<0.000000e+00> : vector<64x512xf32>
    %6 = tpu.matmul %5, %1, %cst {dimension_numbers = #tpu.dot_dimension_numbers<[1], [0], [0], [1], [0, 0, 1, 1], [], []>} : vector<64x16xbf16>, vector<16x512xbf16>, vector<64x512xf32> -> vector<64x512xf32>
    %7 = vector.broadcast %3 : vector<1x512xf32> to vector<64x512xf32>
    %8 = arith.addf %6, %7 : vector<64x512xf32>
    %9 = vector.shape_cast %8 : vector<64x512xf32> to vector<8x8x512xf32>
    %c0_8 = arith.constant 0 : index
    %c0_9 = arith.constant 0 : index
    %c0_10 = arith.constant 0 : index
    %10 = vector.load %arg20[%c0_8, %c0_9, %c0_10] : memref<8x8x512xf32, #tpu.memory_space<vmem>>, vector<8x8x512xf32>
    tpu.vector_store %arg20[%c0_8, %c0_9, %c0_10], %9 {strides = array<i32>} : memref<8x8x512xf32, #tpu.memory_space<vmem>>, vector<8x8x512xf32>,
    %cst_11 = arith.constant 0.000000e+00 : f32
    %11 = vector.broadcast %cst_11 : f32 to vector<8x128xf32>
    %cst_12 = arith.constant 0.000000e+00 : f32
    %12 = vector.broadcast %cst_12 : f32 to vector<8x128xf32>
    %c0_13 = arith.constant 0 : index
    %c0_14 = arith.constant 0 : index
    %c0_15 = arith.constant 0 : index
    %13 = vector.load %arg20[%c0_13, %c0_14, %c0_15] : memref<8x8x512xf32, #tpu.memory_space<vmem>>, vector<1x8x512xf32>
    %14 = vector.shape_cast %13 : vector<1x8x512xf32> to vector<8x512xf32>
    %15 = arith.truncf %11 : vector<8x128xf32> to vector<8x128xbf16>
    %cst_16 = arith.constant dense<0.000000e+00> : vector<8x512xf32>
    %16 = tpu.matmul %15, %2, %cst_16 {dimension_numbers = #tpu.dot_dimension_numbers<[1], [0], [0], [1], [0, 0, 1, 1], [], []>} : vector<8x128xbf16>, vector<128x512xbf16>, vector<8x512xf32> -> vector<8x512xf32>
    %17 = arith.addf %14, %16 : vector<8x512xf32>
    %18 = vector.extract_strided_slice %17 {offsets = [0, 0], sizes = [8, 128], strides = [1, 1]} : vector<8x512xf32> to vector<8x128xf32>
    %19 = arith.negf %18 : vector<8x128xf32>
    %20 = math.exp %19 : vector<8x128xf32>
    %cst_17 = arith.constant 1.000000e+00 : f32
    %21 = vector.broadcast %cst_17 : f32 to vector<8x128xf32>
    %22 = arith.addf %21, %20 : vector<8x128xf32>
    %23 = arith.divf %21, %22 : vector<8x128xf32>
    %24 = vector.extract_strided_slice %17 {offsets = [0, 128], sizes = [8, 128], strides = [1, 1]} : vector<8x512xf32> to vector<8x128xf32>
    %25 = arith.negf %24 : vector<8x128xf32>
    %26 = math.exp %25 : vector<8x128xf32>
    %cst_18 = arith.constant 1.000000e+00 : f32
    %27 = vector.broadcast %cst_18 : f32 to vector<8x128xf32>
    %28 = arith.addf %27, %26 : vector<8x128xf32>
    %29 = arith.divf %27, %28 : vector<8x128xf32>
    %30 = vector.extract_strided_slice %17 {offsets = [0, 256], sizes = [8, 128], strides = [1, 1]} : vector<8x512xf32> to vector<8x128xf32>
    %31 = math.tanh %30 : vector<8x128xf32>
    %32 = vector.extract_strided_slice %17 {offsets = [0, 384], sizes = [8, 128], strides = [1, 1]} : vector<8x512xf32> to vector<8x128xf32>
    %33 = arith.negf %32 : vector<8x128xf32>
    %34 = math.exp %33 : vector<8x128xf32>
    %cst_19 = arith.constant 1.000000e+00 : f32
    %35 = vector.broadcast %cst_19 : f32 to vector<8x128xf32>
    %36 = arith.addf %35, %34 : vector<8x128xf32>
    %37 = arith.divf %35, %36 : vector<8x128xf32>
    %38 = arith.mulf %29, %12 : vector<8x128xf32>
    %39 = arith.mulf %23, %31 : vector<8x128xf32>
    %40 = arith.addf %38, %39 : vector<8x128xf32>
    %41 = math.tanh %40 : vector<8x128xf32>
    %42 = arith.mulf %37, %41 : vector<8x128xf32>
    %c1 = arith.constant 1 : index
    %c0_20 = arith.constant 0 : index
    %c0_21 = arith.constant 0 : index
    %43 = vector.load %arg20[%c1, %c0_20, %c0_21] : memref<8x8x512xf32, #tpu.memory_space<vmem>>, vector<1x8x512xf32>
    %44 = vector.shape_cast %43 : vector<1x8x512xf32> to vector<8x512xf32>
    %45 = arith.truncf %42 : vector<8x128xf32> to vector<8x128xbf16>
    %cst_22 = arith.constant dense<0.000000e+00> : vector<8x512xf32>
    %46 = tpu.matmul %45, %2, %cst_22 {dimension_numbers = #tpu.dot_dimension_numbers<[1], [0], [0], [1], [0, 0, 1, 1], [], []>} : vector<8x128xbf16>, vector<128x512xbf16>, vector<8x512xf32> -> vector<8x512xf32>
    %47 = arith.addf %44, %46 : vector<8x512xf32>
    %48 = vector.extract_strided_slice %47 {offsets = [0, 0], sizes = [8, 128], strides = [1, 1]} : vector<8x512xf32> to vector<8x128xf32>
    %49 = arith.negf %48 : vector<8x128xf32>
    %50 = math.exp %49 : vector<8x128xf32>
    %cst_23 = arith.constant 1.000000e+00 : f32
    %51 = vector.broadcast %cst_23 : f32 to vector<8x128xf32>
    %52 = arith.addf %51, %50 : vector<8x128xf32>
    %53 = arith.divf %51, %52 : vector<8x128xf32>
    %54 = vector.extract_strided_slice %47 {offsets = [0, 128], sizes = [8, 128], strides = [1, 1]} : vector<8x512xf32> to vector<8x128xf32>
    %55 = arith.negf %54 : vector<8x128xf32>
    %56 = math.exp %55 : vector<8x128xf32>
    %cst_24 = arith.constant 1.000000e+00 : f32
    %57 = vector.broadcast %cst_24 : f32 to vector<8x128xf32>
    %58 = arith.addf %57, %56 : vector<8x128xf32>
    %59 = arith.divf %57, %58 : vector<8x128xf32>
    %60 = vector.extract_strided_slice %47 {offsets = [0, 256], sizes = [8, 128], strides = [1, 1]} : vector<8x512xf32> to vector<8x128xf32>
    %61 = math.tanh %60 : vector<8x128xf32>
    %62 = vector.extract_strided_slice %47 {offsets = [0, 384], sizes = [8, 128], strides = [1, 1]} : vector<8x512xf32> to vector<8x128xf32>
    %63 = arith.negf %62 : vector<8x128xf32>
    %64 = math.exp %63 : vector<8x128xf32>
    %cst_25 = arith.constant 1.000000e+00 : f32
    %65 = vector.broadcast %cst_25 : f32 to vector<8x128xf32>
    %66 = arith.addf %65, %64 : vector<8x128xf32>
    %67 = arith.divf %65, %66 : vector<8x128xf32>
    %68 = arith.mulf %59, %40 : vector<8x128xf32>
    %69 = arith.mulf %53, %61 : vector<8x128xf32>
    %70 = arith.addf %68, %69 : vector<8x128xf32>
    %71 = math.tanh %70 : vector<8x128xf32>
    %72 = arith.mulf %67, %71 : vector<8x128xf32>
    %c2 = arith.constant 2 : index
    %c0_26 = arith.constant 0 : index
    %c0_27 = arith.constant 0 : index
    %73 = vector.load %arg20[%c2, %c0_26, %c0_27] : memref<8x8x512xf32, #tpu.memory_space<vmem>>, vector<1x8x512xf32>
    %74 = vector.shape_cast %73 : vector<1x8x512xf32> to vector<8x512xf32>
    %75 = arith.truncf %72 : vector<8x128xf32> to vector<8x128xbf16>
    %cst_28 = arith.constant dense<0.000000e+00> : vector<8x512xf32>
    %76 = tpu.matmul %75, %2, %cst_28 {dimension_numbers = #tpu.dot_dimension_numbers<[1], [0], [0], [1], [0, 0, 1, 1], [], []>} : vector<8x128xbf16>, vector<128x512xbf16>, vector<8x512xf32> -> vector<8x512xf32>
    %77 = arith.addf %74, %76 : vector<8x512xf32>
    %78 = vector.extract_strided_slice %77 {offsets = [0, 0], sizes = [8, 128], strides = [1, 1]} : vector<8x512xf32> to vector<8x128xf32>
    %79 = arith.negf %78 : vector<8x128xf32>
    %80 = math.exp %79 : vector<8x128xf32>
    %cst_29 = arith.constant 1.000000e+00 : f32
    %81 = vector.broadcast %cst_29 : f32 to vector<8x128xf32>
    %82 = arith.addf %81, %80 : vector<8x128xf32>
    %83 = arith.divf %81, %82 : vector<8x128xf32>
    %84 = vector.extract_strided_slice %77 {offsets = [0, 128], sizes = [8, 128], strides = [1, 1]} : vector<8x512xf32> to vector<8x128xf32>
    %85 = arith.negf %84 : vector<8x128xf32>
    %86 = math.exp %85 : vector<8x128xf32>
    %cst_30 = arith.constant 1.000000e+00 : f32
    %87 = vector.broadcast %cst_30 : f32 to vector<8x128xf32>
    %88 = arith.addf %87, %86 : vector<8x128xf32>
    %89 = arith.divf %87, %88 : vector<8x128xf32>
    %90 = vector.extract_strided_slice %77 {offsets = [0, 256], sizes = [8, 128], strides = [1, 1]} : vector<8x512xf32> to vector<8x128xf32>
    %91 = math.tanh %90 : vector<8x128xf32>
    %92 = vector.extract_strided_slice %77 {offsets = [0, 384], sizes = [8, 128], strides = [1, 1]} : vector<8x512xf32> to vector<8x128xf32>
    %93 = arith.negf %92 : vector<8x128xf32>
    %94 = math.exp %93 : vector<8x128xf32>
    %cst_31 = arith.constant 1.000000e+00 : f32
    %95 = vector.broadcast %cst_31 : f32 to vector<8x128xf32>
    %96 = arith.addf %95, %94 : vector<8x128xf32>
    %97 = arith.divf %95, %96 : vector<8x128xf32>
    %98 = arith.mulf %89, %70 : vector<8x128xf32>
    %99 = arith.mulf %83, %91 : vector<8x128xf32>
    %100 = arith.addf %98, %99 : vector<8x128xf32>
    %101 = math.tanh %100 : vector<8x128xf32>
    %102 = arith.mulf %97, %101 : vector<8x128xf32>
    %c3 = arith.constant 3 : index
    %c0_32 = arith.constant 0 : index
    %c0_33 = arith.constant 0 : index
    %103 = vector.load %arg20[%c3, %c0_32, %c0_33] : memref<8x8x512xf32, #tpu.memory_space<vmem>>, vector<1x8x512xf32>
    %104 = vector.shape_cast %103 : vector<1x8x512xf32> to vector<8x512xf32>
    %105 = arith.truncf %102 : vector<8x128xf32> to vector<8x128xbf16>
    %cst_34 = arith.constant dense<0.000000e+00> : vector<8x512xf32>
    %106 = tpu.matmul %105, %2, %cst_34 {dimension_numbers = #tpu.dot_dimension_numbers<[1], [0], [0], [1], [0, 0, 1, 1], [], []>} : vector<8x128xbf16>, vector<128x512xbf16>, vector<8x512xf32> -> vector<8x512xf32>
    %107 = arith.addf %104, %106 : vector<8x512xf32>
    %108 = vector.extract_strided_slice %107 {offsets = [0, 0], sizes = [8, 128], strides = [1, 1]} : vector<8x512xf32> to vector<8x128xf32>
    %109 = arith.negf %108 : vector<8x128xf32>
    %110 = math.exp %109 : vector<8x128xf32>
    %cst_35 = arith.constant 1.000000e+00 : f32
    %111 = vector.broadcast %cst_35 : f32 to vector<8x128xf32>
    %112 = arith.addf %111, %110 : vector<8x128xf32>
    %113 = arith.divf %111, %112 : vector<8x128xf32>
    %114 = vector.extract_strided_slice %107 {offsets = [0, 128], sizes = [8, 128], strides = [1, 1]} : vector<8x512xf32> to vector<8x128xf32>
    %115 = arith.negf %114 : vector<8x128xf32>
    %116 = math.exp %115 : vector<8x128xf32>
    %cst_36 = arith.constant 1.000000e+00 : f32
    %117 = vector.broadcast %cst_36 : f32 to vector<8x128xf32>
    %118 = arith.addf %117, %116 : vector<8x128xf32>
    %119 = arith.divf %117, %118 : vector<8x128xf32>
    %120 = vector.extract_strided_slice %107 {offsets = [0, 256], sizes = [8, 128], strides = [1, 1]} : vector<8x512xf32> to vector<8x128xf32>
    %121 = math.tanh %120 : vector<8x128xf32>
    %122 = vector.extract_strided_slice %107 {offsets = [0, 384], sizes = [8, 128], strides = [1, 1]} : vector<8x512xf32> to vector<8x128xf32>
    %123 = arith.negf %122 : vector<8x128xf32>
    %124 = math.exp %123 : vector<8x128xf32>
    %cst_37 = arith.constant 1.000000e+00 : f32
    %125 = vector.broadcast %cst_37 : f32 to vector<8x128xf32>
    %126 = arith.addf %125, %124 : vector<8x128xf32>
    %127 = arith.divf %125, %126 : vector<8x128xf32>
    %128 = arith.mulf %119, %100 : vector<8x128xf32>
    %129 = arith.mulf %113, %121 : vector<8x128xf32>
    %130 = arith.addf %128, %129 : vector<8x128xf32>
    %131 = math.tanh %130 : vector<8x128xf32>
    %132 = arith.mulf %127, %131 : vector<8x128xf32>
    %c4 = arith.constant 4 : index
    %c0_38 = arith.constant 0 : index
    %c0_39 = arith.constant 0 : index
    %133 = vector.load %arg20[%c4, %c0_38, %c0_39] : memref<8x8x512xf32, #tpu.memory_space<vmem>>, vector<1x8x512xf32>
    %134 = vector.shape_cast %133 : vector<1x8x512xf32> to vector<8x512xf32>
    %135 = arith.truncf %132 : vector<8x128xf32> to vector<8x128xbf16>
    %cst_40 = arith.constant dense<0.000000e+00> : vector<8x512xf32>
    %136 = tpu.matmul %135, %2, %cst_40 {dimension_numbers = #tpu.dot_dimension_numbers<[1], [0], [0], [1], [0, 0, 1, 1], [], []>} : vector<8x128xbf16>, vector<128x512xbf16>, vector<8x512xf32> -> vector<8x512xf32>
    %137 = arith.addf %134, %136 : vector<8x512xf32>
    %138 = vector.extract_strided_slice %137 {offsets = [0, 0], sizes = [8, 128], strides = [1, 1]} : vector<8x512xf32> to vector<8x128xf32>
    %139 = arith.negf %138 : vector<8x128xf32>
    %140 = math.exp %139 : vector<8x128xf32>
    %cst_41 = arith.constant 1.000000e+00 : f32
    %141 = vector.broadcast %cst_41 : f32 to vector<8x128xf32>
    %142 = arith.addf %141, %140 : vector<8x128xf32>
    %143 = arith.divf %141, %142 : vector<8x128xf32>
    %144 = vector.extract_strided_slice %137 {offsets = [0, 128], sizes = [8, 128], strides = [1, 1]} : vector<8x512xf32> to vector<8x128xf32>
    %145 = arith.negf %144 : vector<8x128xf32>
    %146 = math.exp %145 : vector<8x128xf32>
    %cst_42 = arith.constant 1.000000e+00 : f32
    %147 = vector.broadcast %cst_42 : f32 to vector<8x128xf32>
    %148 = arith.addf %147, %146 : vector<8x128xf32>
    %149 = arith.divf %147, %148 : vector<8x128xf32>
    %150 = vector.extract_strided_slice %137 {offsets = [0, 256], sizes = [8, 128], strides = [1, 1]} : vector<8x512xf32> to vector<8x128xf32>
    %151 = math.tanh %150 : vector<8x128xf32>
    %152 = vector.extract_strided_slice %137 {offsets = [0, 384], sizes = [8, 128], strides = [1, 1]} : vector<8x512xf32> to vector<8x128xf32>
    %153 = arith.negf %152 : vector<8x128xf32>
    %154 = math.exp %153 : vector<8x128xf32>
    %cst_43 = arith.constant 1.000000e+00 : f32
    %155 = vector.broadcast %cst_43 : f32 to vector<8x128xf32>
    %156 = arith.addf %155, %154 : vector<8x128xf32>
    %157 = arith.divf %155, %156 : vector<8x128xf32>
    %158 = arith.mulf %149, %130 : vector<8x128xf32>
    %159 = arith.mulf %143, %151 : vector<8x128xf32>
    %160 = arith.addf %158, %159 : vector<8x128xf32>
    %161 = math.tanh %160 : vector<8x128xf32>
    %162 = arith.mulf %157, %161 : vector<8x128xf32>
    %c5 = arith.constant 5 : index
    %c0_44 = arith.constant 0 : index
    %c0_45 = arith.constant 0 : index
    %163 = vector.load %arg20[%c5, %c0_44, %c0_45] : memref<8x8x512xf32, #tpu.memory_space<vmem>>, vector<1x8x512xf32>
    %164 = vector.shape_cast %163 : vector<1x8x512xf32> to vector<8x512xf32>
    %165 = arith.truncf %162 : vector<8x128xf32> to vector<8x128xbf16>
    %cst_46 = arith.constant dense<0.000000e+00> : vector<8x512xf32>
    %166 = tpu.matmul %165, %2, %cst_46 {dimension_numbers = #tpu.dot_dimension_numbers<[1], [0], [0], [1], [0, 0, 1, 1], [], []>} : vector<8x128xbf16>, vector<128x512xbf16>, vector<8x512xf32> -> vector<8x512xf32>
    %167 = arith.addf %164, %166 : vector<8x512xf32>
    %168 = vector.extract_strided_slice %167 {offsets = [0, 0], sizes = [8, 128], strides = [1, 1]} : vector<8x512xf32> to vector<8x128xf32>
    %169 = arith.negf %168 : vector<8x128xf32>
    %170 = math.exp %169 : vector<8x128xf32>
    %cst_47 = arith.constant 1.000000e+00 : f32
    %171 = vector.broadcast %cst_47 : f32 to vector<8x128xf32>
    %172 = arith.addf %171, %170 : vector<8x128xf32>
    %173 = arith.divf %171, %172 : vector<8x128xf32>
    %174 = vector.extract_strided_slice %167 {offsets = [0, 128], sizes = [8, 128], strides = [1, 1]} : vector<8x512xf32> to vector<8x128xf32>
    %175 = arith.negf %174 : vector<8x128xf32>
    %176 = math.exp %175 : vector<8x128xf32>
    %cst_48 = arith.constant 1.000000e+00 : f32
    %177 = vector.broadcast %cst_48 : f32 to vector<8x128xf32>
    %178 = arith.addf %177, %176 : vector<8x128xf32>
    %179 = arith.divf %177, %178 : vector<8x128xf32>
    %180 = vector.extract_strided_slice %167 {offsets = [0, 256], sizes = [8, 128], strides = [1, 1]} : vector<8x512xf32> to vector<8x128xf32>
    %181 = math.tanh %180 : vector<8x128xf32>
    %182 = vector.extract_strided_slice %167 {offsets = [0, 384], sizes = [8, 128], strides = [1, 1]} : vector<8x512xf32> to vector<8x128xf32>
    %183 = arith.negf %182 : vector<8x128xf32>
    %184 = math.exp %183 : vector<8x128xf32>
    %cst_49 = arith.constant 1.000000e+00 : f32
    %185 = vector.broadcast %cst_49 : f32 to vector<8x128xf32>
    %186 = arith.addf %185, %184 : vector<8x128xf32>
    %187 = arith.divf %185, %186 : vector<8x128xf32>
    %188 = arith.mulf %179, %160 : vector<8x128xf32>
    %189 = arith.mulf %173, %181 : vector<8x128xf32>
    %190 = arith.addf %188, %189 : vector<8x128xf32>
    %191 = math.tanh %190 : vector<8x128xf32>
    %192 = arith.mulf %187, %191 : vector<8x128xf32>
    %c6 = arith.constant 6 : index
    %c0_50 = arith.constant 0 : index
    %c0_51 = arith.constant 0 : index
    %193 = vector.load %arg20[%c6, %c0_50, %c0_51] : memref<8x8x512xf32, #tpu.memory_space<vmem>>, vector<1x8x512xf32>
    %194 = vector.shape_cast %193 : vector<1x8x512xf32> to vector<8x512xf32>
    %195 = arith.truncf %192 : vector<8x128xf32> to vector<8x128xbf16>
    %cst_52 = arith.constant dense<0.000000e+00> : vector<8x512xf32>
    %196 = tpu.matmul %195, %2, %cst_52 {dimension_numbers = #tpu.dot_dimension_numbers<[1], [0], [0], [1], [0, 0, 1, 1], [], []>} : vector<8x128xbf16>, vector<128x512xbf16>, vector<8x512xf32> -> vector<8x512xf32>
    %197 = arith.addf %194, %196 : vector<8x512xf32>
    %198 = vector.extract_strided_slice %197 {offsets = [0, 0], sizes = [8, 128], strides = [1, 1]} : vector<8x512xf32> to vector<8x128xf32>
    %199 = arith.negf %198 : vector<8x128xf32>
    %200 = math.exp %199 : vector<8x128xf32>
    %cst_53 = arith.constant 1.000000e+00 : f32
    %201 = vector.broadcast %cst_53 : f32 to vector<8x128xf32>
    %202 = arith.addf %201, %200 : vector<8x128xf32>
    %203 = arith.divf %201, %202 : vector<8x128xf32>
    %204 = vector.extract_strided_slice %197 {offsets = [0, 128], sizes = [8, 128], strides = [1, 1]} : vector<8x512xf32> to vector<8x128xf32>
    %205 = arith.negf %204 : vector<8x128xf32>
    %206 = math.exp %205 : vector<8x128xf32>
    %cst_54 = arith.constant 1.000000e+00 : f32
    %207 = vector.broadcast %cst_54 : f32 to vector<8x128xf32>
    %208 = arith.addf %207, %206 : vector<8x128xf32>
    %209 = arith.divf %207, %208 : vector<8x128xf32>
    %210 = vector.extract_strided_slice %197 {offsets = [0, 256], sizes = [8, 128], strides = [1, 1]} : vector<8x512xf32> to vector<8x128xf32>
    %211 = math.tanh %210 : vector<8x128xf32>
    %212 = vector.extract_strided_slice %197 {offsets = [0, 384], sizes = [8, 128], strides = [1, 1]} : vector<8x512xf32> to vector<8x128xf32>
    %213 = arith.negf %212 : vector<8x128xf32>
    %214 = math.exp %213 : vector<8x128xf32>
    %cst_55 = arith.constant 1.000000e+00 : f32
    %215 = vector.broadcast %cst_55 : f32 to vector<8x128xf32>
    %216 = arith.addf %215, %214 : vector<8x128xf32>
    %217 = arith.divf %215, %216 : vector<8x128xf32>
    %218 = arith.mulf %209, %190 : vector<8x128xf32>
    %219 = arith.mulf %203, %211 : vector<8x128xf32>
    %220 = arith.addf %218, %219 : vector<8x128xf32>
    %221 = math.tanh %220 : vector<8x128xf32>
    %222 = arith.mulf %217, %221 : vector<8x128xf32>
    %c7 = arith.constant 7 : index
    %c0_56 = arith.constant 0 : index
    %c0_57 = arith.constant 0 : index
    %223 = vector.load %arg20[%c7, %c0_56, %c0_57] : memref<8x8x512xf32, #tpu.memory_space<vmem>>, vector<1x8x512xf32>
    %224 = vector.shape_cast %223 : vector<1x8x512xf32> to vector<8x512xf32>
    %225 = arith.truncf %222 : vector<8x128xf32> to vector<8x128xbf16>
    %cst_58 = arith.constant dense<0.000000e+00> : vector<8x512xf32>
    %226 = tpu.matmul %225, %2, %cst_58 {dimension_numbers = #tpu.dot_dimension_numbers<[1], [0], [0], [1], [0, 0, 1, 1], [], []>} : vector<8x128xbf16>, vector<128x512xbf16>, vector<8x512xf32> -> vector<8x512xf32>
    %227 = arith.addf %224, %226 : vector<8x512xf32>
    %228 = vector.extract_strided_slice %227 {offsets = [0, 0], sizes = [8, 128], strides = [1, 1]} : vector<8x512xf32> to vector<8x128xf32>
    %229 = arith.negf %228 : vector<8x128xf32>
    %230 = math.exp %229 : vector<8x128xf32>
    %cst_59 = arith.constant 1.000000e+00 : f32
    %231 = vector.broadcast %cst_59 : f32 to vector<8x128xf32>
    %232 = arith.addf %231, %230 : vector<8x128xf32>
    %233 = arith.divf %231, %232 : vector<8x128xf32>
    %234 = vector.extract_strided_slice %227 {offsets = [0, 128], sizes = [8, 128], strides = [1, 1]} : vector<8x512xf32> to vector<8x128xf32>
    %235 = arith.negf %234 : vector<8x128xf32>
    %236 = math.exp %235 : vector<8x128xf32>
    %cst_60 = arith.constant 1.000000e+00 : f32
    %237 = vector.broadcast %cst_60 : f32 to vector<8x128xf32>
    %238 = arith.addf %237, %236 : vector<8x128xf32>
    %239 = arith.divf %237, %238 : vector<8x128xf32>
    %240 = vector.extract_strided_slice %227 {offsets = [0, 256], sizes = [8, 128], strides = [1, 1]} : vector<8x512xf32> to vector<8x128xf32>
    %241 = math.tanh %240 : vector<8x128xf32>
    %242 = vector.extract_strided_slice %227 {offsets = [0, 384], sizes = [8, 128], strides = [1, 1]} : vector<8x512xf32> to vector<8x128xf32>
    %243 = arith.negf %242 : vector<8x128xf32>
    %244 = math.exp %243 : vector<8x128xf32>
    %cst_61 = arith.constant 1.000000e+00 : f32
    %245 = vector.broadcast %cst_61 : f32 to vector<8x128xf32>
    %246 = arith.addf %245, %244 : vector<8x128xf32>
    %247 = arith.divf %245, %246 : vector<8x128xf32>
    %248 = arith.mulf %239, %220 : vector<8x128xf32>
    %249 = arith.mulf %233, %241 : vector<8x128xf32>
    %250 = arith.addf %248, %249 : vector<8x128xf32>
    %251 = math.tanh %250 : vector<8x128xf32>
    %252 = arith.mulf %247, %251 : vector<8x128xf32>
    %253 = vector.shape_cast %42 : vector<8x128xf32> to vector<1x8x128xf32>
    %254 = vector.shape_cast %72 : vector<8x128xf32> to vector<1x8x128xf32>
    %255 = vector.shape_cast %102 : vector<8x128xf32> to vector<1x8x128xf32>
    %256 = vector.shape_cast %132 : vector<8x128xf32> to vector<1x8x128xf32>
    %257 = vector.shape_cast %162 : vector<8x128xf32> to vector<1x8x128xf32>
    %258 = vector.shape_cast %192 : vector<8x128xf32> to vector<1x8x128xf32>
    %259 = vector.shape_cast %222 : vector<8x128xf32> to vector<1x8x128xf32>
    %260 = vector.shape_cast %252 : vector<8x128xf32> to vector<1x8x128xf32>
    %261 = tpu.concatenate %253, %254, %255, %256, %257, %258, %259, %260 in 0 : vector<1x8x128xf32>, vector<1x8x128xf32>, vector<1x8x128xf32>, vector<1x8x128xf32>, vector<1x8x128xf32>, vector<1x8x128xf32>, vector<1x8x128xf32>, vector<1x8x128xf32> -> vector<8x8x128xf32>
    %c0_62 = arith.constant 0 : index
    %c0_63 = arith.constant 0 : index
    %262 = vector.load %arg5[%c0_62, %c0_63] : memref<128x512xbf16, #tpu.memory_space<vmem>>, vector<128x512xbf16>
    %c0_64 = arith.constant 0 : index
    %c0_65 = arith.constant 0 : index
    %263 = vector.load %arg6[%c0_64, %c0_65] : memref<128x512xbf16, #tpu.memory_space<vmem>>, vector<128x512xbf16>
    %c0_66 = arith.constant 0 : index
    %c0_67 = arith.constant 0 : index
    %264 = vector.load %arg7[%c0_66, %c0_67] : memref<1x512xf32, #tpu.memory_space<vmem>>, vector<1x512xf32>
    %265 = vector.shape_cast %261 : vector<8x8x128xf32> to vector<64x128xf32>
    %266 = arith.truncf %265 : vector<64x128xf32> to vector<64x128xbf16>
    %cst_68 = arith.constant dense<0.000000e+00> : vector<64x512xf32>
    %267 = tpu.matmul %266, %262, %cst_68 {dimension_numbers = #tpu.dot_dimension_numbers<[1], [0], [0], [1], [0, 0, 1, 1], [], []>} : vector<64x128xbf16>, vector<128x512xbf16>, vector<64x512xf32> -> vector<64x512xf32>
    %268 = vector.broadcast %264 : vector<1x512xf32> to vector<64x512xf32>
    %269 = arith.addf %267, %268 : vector<64x512xf32>
    %270 = vector.shape_cast %269 : vector<64x512xf32> to vector<8x8x512xf32>
    %c0_69 = arith.constant 0 : index
    %c0_70 = arith.constant 0 : index
    %c0_71 = arith.constant 0 : index
    %271 = vector.load %arg20[%c0_69, %c0_70, %c0_71] : memref<8x8x512xf32, #tpu.memory_space<vmem>>, vector<8x8x512xf32>
    tpu.vector_store %arg20[%c0_69, %c0_70, %c0_71], %270 {strides = array<i32>} : memref<8x8x512xf32, #tpu.memory_space<vmem>>, vector<8x8x512xf32>,
    %cst_72 = arith.constant 0.000000e+00 : f32
    %272 = vector.broadcast %cst_72 : f32 to vector<8x128xf32>
    %cst_73 = arith.constant 0.000000e+00 : f32
    %273 = vector.broadcast %cst_73 : f32 to vector<8x128xf32>
    %c0_74 = arith.constant 0 : index
    %c0_75 = arith.constant 0 : index
    %c0_76 = arith.constant 0 : index
    %274 = vector.load %arg20[%c0_74, %c0_75, %c0_76] : memref<8x8x512xf32, #tpu.memory_space<vmem>>, vector<1x8x512xf32>
    %275 = vector.shape_cast %274 : vector<1x8x512xf32> to vector<8x512xf32>
    %276 = arith.truncf %272 : vector<8x128xf32> to vector<8x128xbf16>
    %cst_77 = arith.constant dense<0.000000e+00> : vector<8x512xf32>
    %277 = tpu.matmul %276, %263, %cst_77 {dimension_numbers = #tpu.dot_dimension_numbers<[1], [0], [0], [1], [0, 0, 1, 1], [], []>} : vector<8x128xbf16>, vector<128x512xbf16>, vector<8x512xf32> -> vector<8x512xf32>
    %278 = arith.addf %275, %277 : vector<8x512xf32>
    %279 = vector.extract_strided_slice %278 {offsets = [0, 0], sizes = [8, 128], strides = [1, 1]} : vector<8x512xf32> to vector<8x128xf32>
    %280 = arith.negf %279 : vector<8x128xf32>
    %281 = math.exp %280 : vector<8x128xf32>
    %cst_78 = arith.constant 1.000000e+00 : f32
    %282 = vector.broadcast %cst_78 : f32 to vector<8x128xf32>
    %283 = arith.addf %282, %281 : vector<8x128xf32>
    %284 = arith.divf %282, %283 : vector<8x128xf32>
    %285 = vector.extract_strided_slice %278 {offsets = [0, 128], sizes = [8, 128], strides = [1, 1]} : vector<8x512xf32> to vector<8x128xf32>
    %286 = arith.negf %285 : vector<8x128xf32>
    %287 = math.exp %286 : vector<8x128xf32>
    %cst_79 = arith.constant 1.000000e+00 : f32
    %288 = vector.broadcast %cst_79 : f32 to vector<8x128xf32>
    %289 = arith.addf %288, %287 : vector<8x128xf32>
    %290 = arith.divf %288, %289 : vector<8x128xf32>
    %291 = vector.extract_strided_slice %278 {offsets = [0, 256], sizes = [8, 128], strides = [1, 1]} : vector<8x512xf32> to vector<8x128xf32>
    %292 = math.tanh %291 : vector<8x128xf32>
    %293 = vector.extract_strided_slice %278 {offsets = [0, 384], sizes = [8, 128], strides = [1, 1]} : vector<8x512xf32> to vector<8x128xf32>
    %294 = arith.negf %293 : vector<8x128xf32>
    %295 = math.exp %294 : vector<8x128xf32>
    %cst_80 = arith.constant 1.000000e+00 : f32
    %296 = vector.broadcast %cst_80 : f32 to vector<8x128xf32>
    %297 = arith.addf %296, %295 : vector<8x128xf32>
    %298 = arith.divf %296, %297 : vector<8x128xf32>
    %299 = arith.mulf %290, %273 : vector<8x128xf32>
    %300 = arith.mulf %284, %292 : vector<8x128xf32>
    %301 = arith.addf %299, %300 : vector<8x128xf32>
    %302 = math.tanh %301 : vector<8x128xf32>
    %303 = arith.mulf %298, %302 : vector<8x128xf32>
    %c1_81 = arith.constant 1 : index
    %c0_82 = arith.constant 0 : index
    %c0_83 = arith.constant 0 : index
    %304 = vector.load %arg20[%c1_81, %c0_82, %c0_83] : memref<8x8x512xf32, #tpu.memory_space<vmem>>, vector<1x8x512xf32>
    %305 = vector.shape_cast %304 : vector<1x8x512xf32> to vector<8x512xf32>
    %306 = arith.truncf %303 : vector<8x128xf32> to vector<8x128xbf16>
    %cst_84 = arith.constant dense<0.000000e+00> : vector<8x512xf32>
    %307 = tpu.matmul %306, %263, %cst_84 {dimension_numbers = #tpu.dot_dimension_numbers<[1], [0], [0], [1], [0, 0, 1, 1], [], []>} : vector<8x128xbf16>, vector<128x512xbf16>, vector<8x512xf32> -> vector<8x512xf32>
    %308 = arith.addf %305, %307 : vector<8x512xf32>
    %309 = vector.extract_strided_slice %308 {offsets = [0, 0], sizes = [8, 128], strides = [1, 1]} : vector<8x512xf32> to vector<8x128xf32>
    %310 = arith.negf %309 : vector<8x128xf32>
    %311 = math.exp %310 : vector<8x128xf32>
    %cst_85 = arith.constant 1.000000e+00 : f32
    %312 = vector.broadcast %cst_85 : f32 to vector<8x128xf32>
    %313 = arith.addf %312, %311 : vector<8x128xf32>
    %314 = arith.divf %312, %313 : vector<8x128xf32>
    %315 = vector.extract_strided_slice %308 {offsets = [0, 128], sizes = [8, 128], strides = [1, 1]} : vector<8x512xf32> to vector<8x128xf32>
    %316 = arith.negf %315 : vector<8x128xf32>
    %317 = math.exp %316 : vector<8x128xf32>
    %cst_86 = arith.constant 1.000000e+00 : f32
    %318 = vector.broadcast %cst_86 : f32 to vector<8x128xf32>
    %319 = arith.addf %318, %317 : vector<8x128xf32>
    %320 = arith.divf %318, %319 : vector<8x128xf32>
    %321 = vector.extract_strided_slice %308 {offsets = [0, 256], sizes = [8, 128], strides = [1, 1]} : vector<8x512xf32> to vector<8x128xf32>
    %322 = math.tanh %321 : vector<8x128xf32>
    %323 = vector.extract_strided_slice %308 {offsets = [0, 384], sizes = [8, 128], strides = [1, 1]} : vector<8x512xf32> to vector<8x128xf32>
    %324 = arith.negf %323 : vector<8x128xf32>
    %325 = math.exp %324 : vector<8x128xf32>
    %cst_87 = arith.constant 1.000000e+00 : f32
    %326 = vector.broadcast %cst_87 : f32 to vector<8x128xf32>
    %327 = arith.addf %326, %325 : vector<8x128xf32>
    %328 = arith.divf %326, %327 : vector<8x128xf32>
    %329 = arith.mulf %320, %301 : vector<8x128xf32>
    %330 = arith.mulf %314, %322 : vector<8x128xf32>
    %331 = arith.addf %329, %330 : vector<8x128xf32>
    %332 = math.tanh %331 : vector<8x128xf32>
    %333 = arith.mulf %328, %332 : vector<8x128xf32>
    %c2_88 = arith.constant 2 : index
    %c0_89 = arith.constant 0 : index
    %c0_90 = arith.constant 0 : index
    %334 = vector.load %arg20[%c2_88, %c0_89, %c0_90] : memref<8x8x512xf32, #tpu.memory_space<vmem>>, vector<1x8x512xf32>
    %335 = vector.shape_cast %334 : vector<1x8x512xf32> to vector<8x512xf32>
    %336 = arith.truncf %333 : vector<8x128xf32> to vector<8x128xbf16>
    %cst_91 = arith.constant dense<0.000000e+00> : vector<8x512xf32>
    %337 = tpu.matmul %336, %263, %cst_91 {dimension_numbers = #tpu.dot_dimension_numbers<[1], [0], [0], [1], [0, 0, 1, 1], [], []>} : vector<8x128xbf16>, vector<128x512xbf16>, vector<8x512xf32> -> vector<8x512xf32>
    %338 = arith.addf %335, %337 : vector<8x512xf32>
    %339 = vector.extract_strided_slice %338 {offsets = [0, 0], sizes = [8, 128], strides = [1, 1]} : vector<8x512xf32> to vector<8x128xf32>
    %340 = arith.negf %339 : vector<8x128xf32>
    %341 = math.exp %340 : vector<8x128xf32>
    %cst_92 = arith.constant 1.000000e+00 : f32
    %342 = vector.broadcast %cst_92 : f32 to vector<8x128xf32>
    %343 = arith.addf %342, %341 : vector<8x128xf32>
    %344 = arith.divf %342, %343 : vector<8x128xf32>
    %345 = vector.extract_strided_slice %338 {offsets = [0, 128], sizes = [8, 128], strides = [1, 1]} : vector<8x512xf32> to vector<8x128xf32>
    %346 = arith.negf %345 : vector<8x128xf32>
    %347 = math.exp %346 : vector<8x128xf32>
    %cst_93 = arith.constant 1.000000e+00 : f32
    %348 = vector.broadcast %cst_93 : f32 to vector<8x128xf32>
    %349 = arith.addf %348, %347 : vector<8x128xf32>
    %350 = arith.divf %348, %349 : vector<8x128xf32>
    %351 = vector.extract_strided_slice %338 {offsets = [0, 256], sizes = [8, 128], strides = [1, 1]} : vector<8x512xf32> to vector<8x128xf32>
    %352 = math.tanh %351 : vector<8x128xf32>
    %353 = vector.extract_strided_slice %338 {offsets = [0, 384], sizes = [8, 128], strides = [1, 1]} : vector<8x512xf32> to vector<8x128xf32>
    %354 = arith.negf %353 : vector<8x128xf32>
    %355 = math.exp %354 : vector<8x128xf32>
    %cst_94 = arith.constant 1.000000e+00 : f32
    %356 = vector.broadcast %cst_94 : f32 to vector<8x128xf32>
    %357 = arith.addf %356, %355 : vector<8x128xf32>
    %358 = arith.divf %356, %357 : vector<8x128xf32>
    %359 = arith.mulf %350, %331 : vector<8x128xf32>
    %360 = arith.mulf %344, %352 : vector<8x128xf32>
    %361 = arith.addf %359, %360 : vector<8x128xf32>
    %362 = math.tanh %361 : vector<8x128xf32>
    %363 = arith.mulf %358, %362 : vector<8x128xf32>
    %c3_95 = arith.constant 3 : index
    %c0_96 = arith.constant 0 : index
    %c0_97 = arith.constant 0 : index
    %364 = vector.load %arg20[%c3_95, %c0_96, %c0_97] : memref<8x8x512xf32, #tpu.memory_space<vmem>>, vector<1x8x512xf32>
    %365 = vector.shape_cast %364 : vector<1x8x512xf32> to vector<8x512xf32>
    %366 = arith.truncf %363 : vector<8x128xf32> to vector<8x128xbf16>
    %cst_98 = arith.constant dense<0.000000e+00> : vector<8x512xf32>
    %367 = tpu.matmul %366, %263, %cst_98 {dimension_numbers = #tpu.dot_dimension_numbers<[1], [0], [0], [1], [0, 0, 1, 1], [], []>} : vector<8x128xbf16>, vector<128x512xbf16>, vector<8x512xf32> -> vector<8x512xf32>
    %368 = arith.addf %365, %367 : vector<8x512xf32>
    %369 = vector.extract_strided_slice %368 {offsets = [0, 0], sizes = [8, 128], strides = [1, 1]} : vector<8x512xf32> to vector<8x128xf32>
    %370 = arith.negf %369 : vector<8x128xf32>
    %371 = math.exp %370 : vector<8x128xf32>
    %cst_99 = arith.constant 1.000000e+00 : f32
    %372 = vector.broadcast %cst_99 : f32 to vector<8x128xf32>
    %373 = arith.addf %372, %371 : vector<8x128xf32>
    %374 = arith.divf %372, %373 : vector<8x128xf32>
    %375 = vector.extract_strided_slice %368 {offsets = [0, 128], sizes = [8, 128], strides = [1, 1]} : vector<8x512xf32> to vector<8x128xf32>
    %376 = arith.negf %375 : vector<8x128xf32>
    %377 = math.exp %376 : vector<8x128xf32>
    %cst_100 = arith.constant 1.000000e+00 : f32
    %378 = vector.broadcast %cst_100 : f32 to vector<8x128xf32>
    %379 = arith.addf %378, %377 : vector<8x128xf32>
    %380 = arith.divf %378, %379 : vector<8x128xf32>
    %381 = vector.extract_strided_slice %368 {offsets = [0, 256], sizes = [8, 128], strides = [1, 1]} : vector<8x512xf32> to vector<8x128xf32>
    %382 = math.tanh %381 : vector<8x128xf32>
    %383 = vector.extract_strided_slice %368 {offsets = [0, 384], sizes = [8, 128], strides = [1, 1]} : vector<8x512xf32> to vector<8x128xf32>
    %384 = arith.negf %383 : vector<8x128xf32>
    %385 = math.exp %384 : vector<8x128xf32>
    %cst_101 = arith.constant 1.000000e+00 : f32
    %386 = vector.broadcast %cst_101 : f32 to vector<8x128xf32>
    %387 = arith.addf %386, %385 : vector<8x128xf32>
    %388 = arith.divf %386, %387 : vector<8x128xf32>
    %389 = arith.mulf %380, %361 : vector<8x128xf32>
    %390 = arith.mulf %374, %382 : vector<8x128xf32>
    %391 = arith.addf %389, %390 : vector<8x128xf32>
    %392 = math.tanh %391 : vector<8x128xf32>
    %393 = arith.mulf %388, %392 : vector<8x128xf32>
    %c4_102 = arith.constant 4 : index
    %c0_103 = arith.constant 0 : index
    %c0_104 = arith.constant 0 : index
    %394 = vector.load %arg20[%c4_102, %c0_103, %c0_104] : memref<8x8x512xf32, #tpu.memory_space<vmem>>, vector<1x8x512xf32>
    %395 = vector.shape_cast %394 : vector<1x8x512xf32> to vector<8x512xf32>
    %396 = arith.truncf %393 : vector<8x128xf32> to vector<8x128xbf16>
    %cst_105 = arith.constant dense<0.000000e+00> : vector<8x512xf32>
    %397 = tpu.matmul %396, %263, %cst_105 {dimension_numbers = #tpu.dot_dimension_numbers<[1], [0], [0], [1], [0, 0, 1, 1], [], []>} : vector<8x128xbf16>, vector<128x512xbf16>, vector<8x512xf32> -> vector<8x512xf32>
    %398 = arith.addf %395, %397 : vector<8x512xf32>
    %399 = vector.extract_strided_slice %398 {offsets = [0, 0], sizes = [8, 128], strides = [1, 1]} : vector<8x512xf32> to vector<8x128xf32>
    %400 = arith.negf %399 : vector<8x128xf32>
    %401 = math.exp %400 : vector<8x128xf32>
    %cst_106 = arith.constant 1.000000e+00 : f32
    %402 = vector.broadcast %cst_106 : f32 to vector<8x128xf32>
    %403 = arith.addf %402, %401 : vector<8x128xf32>
    %404 = arith.divf %402, %403 : vector<8x128xf32>
    %405 = vector.extract_strided_slice %398 {offsets = [0, 128], sizes = [8, 128], strides = [1, 1]} : vector<8x512xf32> to vector<8x128xf32>
    %406 = arith.negf %405 : vector<8x128xf32>
    %407 = math.exp %406 : vector<8x128xf32>
    %cst_107 = arith.constant 1.000000e+00 : f32
    %408 = vector.broadcast %cst_107 : f32 to vector<8x128xf32>
    %409 = arith.addf %408, %407 : vector<8x128xf32>
    %410 = arith.divf %408, %409 : vector<8x128xf32>
    %411 = vector.extract_strided_slice %398 {offsets = [0, 256], sizes = [8, 128], strides = [1, 1]} : vector<8x512xf32> to vector<8x128xf32>
    %412 = math.tanh %411 : vector<8x128xf32>
    %413 = vector.extract_strided_slice %398 {offsets = [0, 384], sizes = [8, 128], strides = [1, 1]} : vector<8x512xf32> to vector<8x128xf32>
    %414 = arith.negf %413 : vector<8x128xf32>
    %415 = math.exp %414 : vector<8x128xf32>
    %cst_108 = arith.constant 1.000000e+00 : f32
    %416 = vector.broadcast %cst_108 : f32 to vector<8x128xf32>
    %417 = arith.addf %416, %415 : vector<8x128xf32>
    %418 = arith.divf %416, %417 : vector<8x128xf32>
    %419 = arith.mulf %410, %391 : vector<8x128xf32>
    %420 = arith.mulf %404, %412 : vector<8x128xf32>
    %421 = arith.addf %419, %420 : vector<8x128xf32>
    %422 = math.tanh %421 : vector<8x128xf32>
    %423 = arith.mulf %418, %422 : vector<8x128xf32>
    %c5_109 = arith.constant 5 : index
    %c0_110 = arith.constant 0 : index
    %c0_111 = arith.constant 0 : index
    %424 = vector.load %arg20[%c5_109, %c0_110, %c0_111] : memref<8x8x512xf32, #tpu.memory_space<vmem>>, vector<1x8x512xf32>
    %425 = vector.shape_cast %424 : vector<1x8x512xf32> to vector<8x512xf32>
    %426 = arith.truncf %423 : vector<8x128xf32> to vector<8x128xbf16>
    %cst_112 = arith.constant dense<0.000000e+00> : vector<8x512xf32>
    %427 = tpu.matmul %426, %263, %cst_112 {dimension_numbers = #tpu.dot_dimension_numbers<[1], [0], [0], [1], [0, 0, 1, 1], [], []>} : vector<8x128xbf16>, vector<128x512xbf16>, vector<8x512xf32> -> vector<8x512xf32>
    %428 = arith.addf %425, %427 : vector<8x512xf32>
    %429 = vector.extract_strided_slice %428 {offsets = [0, 0], sizes = [8, 128], strides = [1, 1]} : vector<8x512xf32> to vector<8x128xf32>
    %430 = arith.negf %429 : vector<8x128xf32>
    %431 = math.exp %430 : vector<8x128xf32>
    %cst_113 = arith.constant 1.000000e+00 : f32
    %432 = vector.broadcast %cst_113 : f32 to vector<8x128xf32>
    %433 = arith.addf %432, %431 : vector<8x128xf32>
    %434 = arith.divf %432, %433 : vector<8x128xf32>
    %435 = vector.extract_strided_slice %428 {offsets = [0, 128], sizes = [8, 128], strides = [1, 1]} : vector<8x512xf32> to vector<8x128xf32>
    %436 = arith.negf %435 : vector<8x128xf32>
    %437 = math.exp %436 : vector<8x128xf32>
    %cst_114 = arith.constant 1.000000e+00 : f32
    %438 = vector.broadcast %cst_114 : f32 to vector<8x128xf32>
    %439 = arith.addf %438, %437 : vector<8x128xf32>
    %440 = arith.divf %438, %439 : vector<8x128xf32>
    %441 = vector.extract_strided_slice %428 {offsets = [0, 256], sizes = [8, 128], strides = [1, 1]} : vector<8x512xf32> to vector<8x128xf32>
    %442 = math.tanh %441 : vector<8x128xf32>
    %443 = vector.extract_strided_slice %428 {offsets = [0, 384], sizes = [8, 128], strides = [1, 1]} : vector<8x512xf32> to vector<8x128xf32>
    %444 = arith.negf %443 : vector<8x128xf32>
    %445 = math.exp %444 : vector<8x128xf32>
    %cst_115 = arith.constant 1.000000e+00 : f32
    %446 = vector.broadcast %cst_115 : f32 to vector<8x128xf32>
    %447 = arith.addf %446, %445 : vector<8x128xf32>
    %448 = arith.divf %446, %447 : vector<8x128xf32>
    %449 = arith.mulf %440, %421 : vector<8x128xf32>
    %450 = arith.mulf %434, %442 : vector<8x128xf32>
    %451 = arith.addf %449, %450 : vector<8x128xf32>
    %452 = math.tanh %451 : vector<8x128xf32>
    %453 = arith.mulf %448, %452 : vector<8x128xf32>
    %c6_116 = arith.constant 6 : index
    %c0_117 = arith.constant 0 : index
    %c0_118 = arith.constant 0 : index
    %454 = vector.load %arg20[%c6_116, %c0_117, %c0_118] : memref<8x8x512xf32, #tpu.memory_space<vmem>>, vector<1x8x512xf32>
    %455 = vector.shape_cast %454 : vector<1x8x512xf32> to vector<8x512xf32>
    %456 = arith.truncf %453 : vector<8x128xf32> to vector<8x128xbf16>
    %cst_119 = arith.constant dense<0.000000e+00> : vector<8x512xf32>
    %457 = tpu.matmul %456, %263, %cst_119 {dimension_numbers = #tpu.dot_dimension_numbers<[1], [0], [0], [1], [0, 0, 1, 1], [], []>} : vector<8x128xbf16>, vector<128x512xbf16>, vector<8x512xf32> -> vector<8x512xf32>
    %458 = arith.addf %455, %457 : vector<8x512xf32>
    %459 = vector.extract_strided_slice %458 {offsets = [0, 0], sizes = [8, 128], strides = [1, 1]} : vector<8x512xf32> to vector<8x128xf32>
    %460 = arith.negf %459 : vector<8x128xf32>
    %461 = math.exp %460 : vector<8x128xf32>
    %cst_120 = arith.constant 1.000000e+00 : f32
    %462 = vector.broadcast %cst_120 : f32 to vector<8x128xf32>
    %463 = arith.addf %462, %461 : vector<8x128xf32>
    %464 = arith.divf %462, %463 : vector<8x128xf32>
    %465 = vector.extract_strided_slice %458 {offsets = [0, 128], sizes = [8, 128], strides = [1, 1]} : vector<8x512xf32> to vector<8x128xf32>
    %466 = arith.negf %465 : vector<8x128xf32>
    %467 = math.exp %466 : vector<8x128xf32>
    %cst_121 = arith.constant 1.000000e+00 : f32
    %468 = vector.broadcast %cst_121 : f32 to vector<8x128xf32>
    %469 = arith.addf %468, %467 : vector<8x128xf32>
    %470 = arith.divf %468, %469 : vector<8x128xf32>
    %471 = vector.extract_strided_slice %458 {offsets = [0, 256], sizes = [8, 128], strides = [1, 1]} : vector<8x512xf32> to vector<8x128xf32>
    %472 = math.tanh %471 : vector<8x128xf32>
    %473 = vector.extract_strided_slice %458 {offsets = [0, 384], sizes = [8, 128], strides = [1, 1]} : vector<8x512xf32> to vector<8x128xf32>
    %474 = arith.negf %473 : vector<8x128xf32>
    %475 = math.exp %474 : vector<8x128xf32>
    %cst_122 = arith.constant 1.000000e+00 : f32
    %476 = vector.broadcast %cst_122 : f32 to vector<8x128xf32>
    %477 = arith.addf %476, %475 : vector<8x128xf32>
    %478 = arith.divf %476, %477 : vector<8x128xf32>
    %479 = arith.mulf %470, %451 : vector<8x128xf32>
    %480 = arith.mulf %464, %472 : vector<8x128xf32>
    %481 = arith.addf %479, %480 : vector<8x128xf32>
    %482 = math.tanh %481 : vector<8x128xf32>
    %483 = arith.mulf %478, %482 : vector<8x128xf32>
    %c7_123 = arith.constant 7 : index
    %c0_124 = arith.constant 0 : index
    %c0_125 = arith.constant 0 : index
    %484 = vector.load %arg20[%c7_123, %c0_124, %c0_125] : memref<8x8x512xf32, #tpu.memory_space<vmem>>, vector<1x8x512xf32>
    %485 = vector.shape_cast %484 : vector<1x8x512xf32> to vector<8x512xf32>
    %486 = arith.truncf %483 : vector<8x128xf32> to vector<8x128xbf16>
    %cst_126 = arith.constant dense<0.000000e+00> : vector<8x512xf32>
    %487 = tpu.matmul %486, %263, %cst_126 {dimension_numbers = #tpu.dot_dimension_numbers<[1], [0], [0], [1], [0, 0, 1, 1], [], []>} : vector<8x128xbf16>, vector<128x512xbf16>, vector<8x512xf32> -> vector<8x512xf32>
    %488 = arith.addf %485, %487 : vector<8x512xf32>
    %489 = vector.extract_strided_slice %488 {offsets = [0, 0], sizes = [8, 128], strides = [1, 1]} : vector<8x512xf32> to vector<8x128xf32>
    %490 = arith.negf %489 : vector<8x128xf32>
    %491 = math.exp %490 : vector<8x128xf32>
    %cst_127 = arith.constant 1.000000e+00 : f32
    %492 = vector.broadcast %cst_127 : f32 to vector<8x128xf32>
    %493 = arith.addf %492, %491 : vector<8x128xf32>
    %494 = arith.divf %492, %493 : vector<8x128xf32>
    %495 = vector.extract_strided_slice %488 {offsets = [0, 128], sizes = [8, 128], strides = [1, 1]} : vector<8x512xf32> to vector<8x128xf32>
    %496 = arith.negf %495 : vector<8x128xf32>
    %497 = math.exp %496 : vector<8x128xf32>
    %cst_128 = arith.constant 1.000000e+00 : f32
    %498 = vector.broadcast %cst_128 : f32 to vector<8x128xf32>
    %499 = arith.addf %498, %497 : vector<8x128xf32>
    %500 = arith.divf %498, %499 : vector<8x128xf32>
    %501 = vector.extract_strided_slice %488 {offsets = [0, 256], sizes = [8, 128], strides = [1, 1]} : vector<8x512xf32> to vector<8x128xf32>
    %502 = math.tanh %501 : vector<8x128xf32>
    %503 = vector.extract_strided_slice %488 {offsets = [0, 384], sizes = [8, 128], strides = [1, 1]} : vector<8x512xf32> to vector<8x128xf32>
    %504 = arith.negf %503 : vector<8x128xf32>
    %505 = math.exp %504 : vector<8x128xf32>
    %cst_129 = arith.constant 1.000000e+00 : f32
    %506 = vector.broadcast %cst_129 : f32 to vector<8x128xf32>
    %507 = arith.addf %506, %505 : vector<8x128xf32>
    %508 = arith.divf %506, %507 : vector<8x128xf32>
    %509 = arith.mulf %500, %481 : vector<8x128xf32>
    %510 = arith.mulf %494, %502 : vector<8x128xf32>
    %511 = arith.addf %509, %510 : vector<8x128xf32>
    %512 = math.tanh %511 : vector<8x128xf32>
    %513 = arith.mulf %508, %512 : vector<8x128xf32>
    %514 = vector.shape_cast %303 : vector<8x128xf32> to vector<1x8x128xf32>
    %515 = vector.shape_cast %333 : vector<8x128xf32> to vector<1x8x128xf32>
    %516 = vector.shape_cast %363 : vector<8x128xf32> to vector<1x8x128xf32>
    %517 = vector.shape_cast %393 : vector<8x128xf32> to vector<1x8x128xf32>
    %518 = vector.shape_cast %423 : vector<8x128xf32> to vector<1x8x128xf32>
    %519 = vector.shape_cast %453 : vector<8x128xf32> to vector<1x8x128xf32>
    %520 = vector.shape_cast %483 : vector<8x128xf32> to vector<1x8x128xf32>
    %521 = vector.shape_cast %513 : vector<8x128xf32> to vector<1x8x128xf32>
    %522 = tpu.concatenate %514, %515, %516, %517, %518, %519, %520, %521 in 0 : vector<1x8x128xf32>, vector<1x8x128xf32>, vector<1x8x128xf32>, vector<1x8x128xf32>, vector<1x8x128xf32>, vector<1x8x128xf32>, vector<1x8x128xf32>, vector<1x8x128xf32> -> vector<8x8x128xf32>
    %523 = vector.shape_cast %522 : vector<8x8x128xf32> to vector<64x128xf32>
    %524 = arith.truncf %523 : vector<64x128xf32> to vector<64x128xbf16>
    %c0_130 = arith.constant 0 : index
    %c0_131 = arith.constant 0 : index
    %525 = vector.load %arg10[%c0_130, %c0_131] : memref<128x128xbf16, #tpu.memory_space<vmem>>, vector<128x128xbf16>
    %cst_132 = arith.constant dense<0.000000e+00> : vector<64x128xf32>
    %526 = tpu.matmul %524, %525, %cst_132 {dimension_numbers = #tpu.dot_dimension_numbers<[1], [0], [0], [1], [0, 0, 1, 1], [], []>} : vector<64x128xbf16>, vector<128x128xbf16>, vector<64x128xf32> -> vector<64x128xf32>
    %c0_133 = arith.constant 0 : index
    %c0_134 = arith.constant 0 : index
    %527 = vector.load %arg11[%c0_133, %c0_134] : memref<1x128xf32, #tpu.memory_space<vmem>>, vector<1x128xf32>
    %528 = vector.broadcast %527 : vector<1x128xf32> to vector<64x128xf32>
    %529 = arith.addf %526, %528 : vector<64x128xf32>
    %530 = vector.shape_cast %529 : vector<64x128xf32> to vector<8x8x128xf32>
    %c0_135 = arith.constant 0 : index
    %c0_136 = arith.constant 0 : index
    %531 = vector.load %arg12[%c0_135, %c0_136] : memref<128x128xbf16, #tpu.memory_space<vmem>>, vector<128x128xbf16>
    %cst_137 = arith.constant dense<0.000000e+00> : vector<64x128xf32>
    %532 = tpu.matmul %524, %531, %cst_137 {dimension_numbers = #tpu.dot_dimension_numbers<[1], [0], [0], [1], [0, 0, 1, 1], [], []>} : vector<64x128xbf16>, vector<128x128xbf16>, vector<64x128xf32> -> vector<64x128xf32>
    %c0_138 = arith.constant 0 : index
    %c0_139 = arith.constant 0 : index
    %533 = vector.load %arg13[%c0_138, %c0_139] : memref<1x128xf32, #tpu.memory_space<vmem>>, vector<1x128xf32>
    %534 = vector.broadcast %533 : vector<1x128xf32> to vector<64x128xf32>
    %535 = arith.addf %532, %534 : vector<64x128xf32>
    %536 = vector.shape_cast %535 : vector<64x128xf32> to vector<8x8x128xf32>
    %537 = arith.truncf %513 : vector<8x128xf32> to vector<8x128xbf16>
    %c0_140 = arith.constant 0 : index
    %c0_141 = arith.constant 0 : index
    %538 = vector.load %arg8[%c0_140, %c0_141] : memref<128x128xbf16, #tpu.memory_space<vmem>>, vector<128x128xbf16>
    %cst_142 = arith.constant dense<0.000000e+00> : vector<8x128xf32>
    %539 = tpu.matmul %537, %538, %cst_142 {dimension_numbers = #tpu.dot_dimension_numbers<[1], [0], [0], [1], [0, 0, 1, 1], [], []>} : vector<8x128xbf16>, vector<128x128xbf16>, vector<8x128xf32> -> vector<8x128xf32>
    %c0_143 = arith.constant 0 : index
    %c0_144 = arith.constant 0 : index
    %540 = vector.load %arg9[%c0_143, %c0_144] : memref<1x128xf32, #tpu.memory_space<vmem>>, vector<1x128xf32>
    %541 = vector.broadcast %540 : vector<1x128xf32> to vector<8x128xf32>
    %542 = arith.addf %539, %541 : vector<8x128xf32>
    %543 = vector.shape_cast %542 : vector<8x128xf32> to vector<1x8x128xf32>
    %544 = vector.broadcast %543 : vector<1x8x128xf32> to vector<8x8x128xf32>
    %545 = arith.mulf %530, %544 : vector<8x8x128xf32>
    %546 = vector.shape_cast %545 : vector<8x8x128xf32> to vector<64x128xf32>
    %c0_145 = arith.constant 0 : index
    %c0_146 = arith.constant 0 : index
    %547 = vector.load %arg16[%c0_145, %c0_146] : memref<128x128xf32, #tpu.memory_space<vmem>>, vector<128x128xf32>
    %cst_147 = arith.constant dense<0.000000e+00> : vector<64x128xf32>
    %548 = tpu.matmul %546, %547, %cst_147 {dimension_numbers = #tpu.dot_dimension_numbers<[1], [0], [0], [1], [0, 0, 1, 1], [], []>} : vector<64x128xf32>, vector<128x128xf32>, vector<64x128xf32> -> vector<64x128xf32>
    %549 = vector.shape_cast %548 : vector<64x128xf32> to vector<8x8x128xf32>
    %cst_148 = arith.constant 0.353553385 : f32
    %550 = vector.broadcast %cst_148 : f32 to vector<8x8x128xf32>
    %551 = arith.mulf %549, %550 : vector<8x8x128xf32>
    %cst_149 = arith.constant dense<0xFF800000> : vector<8x128xf32>
    %552 = vector.multi_reduction <maximumf>, %551, %cst_149 [0] : vector<8x8x128xf32> to vector<8x128xf32>
    %553 = vector.shape_cast %552 : vector<8x128xf32> to vector<1x8x128xf32>
    %554 = vector.broadcast %553 : vector<1x8x128xf32> to vector<8x8x128xf32>
    %555 = arith.subf %551, %554 : vector<8x8x128xf32>
    %556 = math.exp %555 : vector<8x8x128xf32>
    %cst_150 = arith.constant dense<0.000000e+00> : vector<8x128xf32>
    %557 = vector.multi_reduction <add>, %556, %cst_150 [0] : vector<8x8x128xf32> to vector<8x128xf32>
    %558 = vector.shape_cast %557 : vector<8x128xf32> to vector<1x8x128xf32>
    %559 = tpu.reciprocal %558 {approx = true} : vector<1x8x128xf32> -> vector<1x8x128xf32>
    %560 = vector.broadcast %559 : vector<1x8x128xf32> to vector<8x8x128xf32>
    %561 = arith.mulf %556, %560 : vector<8x8x128xf32>
    %562 = arith.mulf %561, %536 : vector<8x8x128xf32>
    %cst_151 = arith.constant dense<0.000000e+00> : vector<8x128xf32>
    %563 = vector.multi_reduction <add>, %562, %cst_151 [0] : vector<8x8x128xf32> to vector<8x128xf32>
    %564 = arith.truncf %563 : vector<8x128xf32> to vector<8x128xbf16>
    %c0_152 = arith.constant 0 : index
    %c0_153 = arith.constant 0 : index
    %565 = vector.load %arg14[%c0_152, %c0_153] : memref<128x128xbf16, #tpu.memory_space<vmem>>, vector<128x128xbf16>
    %cst_154 = arith.constant dense<0.000000e+00> : vector<8x128xf32>
    %566 = tpu.matmul %564, %565, %cst_154 {dimension_numbers = #tpu.dot_dimension_numbers<[1], [0], [0], [1], [0, 0, 1, 1], [], []>} : vector<8x128xbf16>, vector<128x128xbf16>, vector<8x128xf32> -> vector<8x128xf32>
    %c0_155 = arith.constant 0 : index
    %c0_156 = arith.constant 0 : index
    %567 = vector.load %arg15[%c0_155, %c0_156] : memref<1x128xf32, #tpu.memory_space<vmem>>, vector<1x128xf32>
    %568 = vector.broadcast %567 : vector<1x128xf32> to vector<8x128xf32>
    %569 = arith.addf %566, %568 : vector<8x128xf32>
    %570 = arith.truncf %569 : vector<8x128xf32> to vector<8x128xbf16>
    %c0_157 = arith.constant 0 : index
    %c0_158 = arith.constant 0 : index
    %571 = vector.load %arg17[%c0_157, %c0_158] : memref<128x128xbf16, #tpu.memory_space<vmem>>, vector<128x128xbf16>
    %cst_159 = arith.constant dense<0.000000e+00> : vector<8x128xf32>
    %572 = tpu.matmul %570, %571, %cst_159 {dimension_numbers = #tpu.dot_dimension_numbers<[1], [0], [0], [1], [0, 0, 1, 1], [], []>} : vector<8x128xbf16>, vector<128x128xbf16>, vector<8x128xf32> -> vector<8x128xf32>
    %c0_160 = arith.constant 0 : index
    %c0_161 = arith.constant 0 : index
    %573 = vector.load %arg18[%c0_160, %c0_161] : memref<1x128xf32, #tpu.memory_space<vmem>>, vector<1x128xf32>
    %574 = vector.broadcast %573 : vector<1x128xf32> to vector<8x128xf32>
    %575 = arith.addf %572, %574 : vector<8x128xf32>
    %c0_162 = arith.constant 0 : index
    %c0_163 = arith.constant 0 : index
    %576 = vector.load %arg19[%c0_162, %c0_163] : memref<8x128xf32, #tpu.memory_space<vmem>>, vector<8x128xf32>
    tpu.vector_store %arg19[%c0_162, %c0_163], %575 {strides = array<i32>} : memref<8x128xf32, #tpu.memory_space<vmem>>, vector<8x128xf32>,
    return
  }
  func.func @transform_0(%arg0: i32) -> (i32, i32, i32) {
    %c0_i32 = arith.constant 0 : i32
    %c0_i32_0 = arith.constant 0 : i32
    %c0_i32_1 = arith.constant 0 : i32
    return %c0_i32, %arg0, %c0_i32_0 : i32, i32, i32
  }
  func.func @transform_1(%arg0: i32) -> (i32, i32) {
    %c0_i32 = arith.constant 0 : i32
    %c0_i32_0 = arith.constant 0 : i32
    %c0_i32_1 = arith.constant 0 : i32
    return %c0_i32, %c0_i32_0 : i32, i32
  }
  func.func @transform_2(%arg0: i32) -> (i32, i32) {
    %c0_i32 = arith.constant 0 : i32
    %c0_i32_0 = arith.constant 0 : i32
    %c0_i32_1 = arith.constant 0 : i32
    return %c0_i32, %c0_i32_0 : i32, i32
  }
  func.func @transform_3(%arg0: i32) -> (i32, i32) {
    %c0_i32 = arith.constant 0 : i32
    %c0_i32_0 = arith.constant 0 : i32
    %c0_i32_1 = arith.constant 0 : i32
    return %c0_i32, %c0_i32_0 : i32, i32
  }
  func.func @transform_4(%arg0: i32) -> (i32, i32) {
    %c0_i32 = arith.constant 0 : i32
    %c0_i32_0 = arith.constant 0 : i32
    %c0_i32_1 = arith.constant 0 : i32
    return %c0_i32, %c0_i32_0 : i32, i32
  }
  func.func @transform_5(%arg0: i32) -> (i32, i32) {
    %c0_i32 = arith.constant 0 : i32
    %c0_i32_0 = arith.constant 0 : i32
    %c0_i32_1 = arith.constant 0 : i32
    return %c0_i32, %c0_i32_0 : i32, i32
  }
  func.func @transform_6(%arg0: i32) -> (i32, i32) {
    %c0_i32 = arith.constant 0 : i32
    %c0_i32_0 = arith.constant 0 : i32
    %c0_i32_1 = arith.constant 0 : i32
    return %c0_i32, %c0_i32_0 : i32, i32
  }
  func.func @transform_7(%arg0: i32) -> (i32, i32) {
    %c0_i32 = arith.constant 0 : i32
    %c0_i32_0 = arith.constant 0 : i32
    %c0_i32_1 = arith.constant 0 : i32
    return %c0_i32, %c0_i32_0 : i32, i32
  }
  func.func @transform_8(%arg0: i32) -> (i32, i32) {
    %c0_i32 = arith.constant 0 : i32
    %c0_i32_0 = arith.constant 0 : i32
    %c0_i32_1 = arith.constant 0 : i32
    return %c0_i32, %c0_i32_0 : i32, i32
  }
  func.func @transform_9(%arg0: i32) -> (i32, i32) {
    %c0_i32 = arith.constant 0 : i32
    %c0_i32_0 = arith.constant 0 : i32
    %c0_i32_1 = arith.constant 0 : i32
    return %c0_i32, %c0_i32_0 : i32, i32
  }
  func.func @transform_10(%arg0: i32) -> (i32, i32) {
    %c0_i32 = arith.constant 0 : i32
    %c0_i32_0 = arith.constant 0 : i32
    %c0_i32_1 = arith.constant 0 : i32
    return %c0_i32, %c0_i32_0 : i32, i32
  }
  func.func @transform_11(%arg0: i32) -> (i32, i32) {
    %c0_i32 = arith.constant 0 : i32
    %c0_i32_0 = arith.constant 0 : i32
    %c0_i32_1 = arith.constant 0 : i32
    return %c0_i32, %c0_i32_0 : i32, i32
  }
  func.func @transform_12(%arg0: i32) -> (i32, i32) {
    %c0_i32 = arith.constant 0 : i32
    %c0_i32_0 = arith.constant 0 : i32
    %c0_i32_1 = arith.constant 0 : i32
    return %c0_i32, %c0_i32_0 : i32, i32
  }
  func.func @transform_13(%arg0: i32) -> (i32, i32) {
    %c0_i32 = arith.constant 0 : i32
    %c0_i32_0 = arith.constant 0 : i32
    %c0_i32_1 = arith.constant 0 : i32
    return %c0_i32, %c0_i32_0 : i32, i32
  }
  func.func @transform_14(%arg0: i32) -> (i32, i32) {
    %c0_i32 = arith.constant 0 : i32
    %c0_i32_0 = arith.constant 0 : i32
    %c0_i32_1 = arith.constant 0 : i32
    return %c0_i32, %c0_i32_0 : i32, i32
  }
  func.func @transform_15(%arg0: i32) -> (i32, i32) {
    %c0_i32 = arith.constant 0 : i32
    %c0_i32_0 = arith.constant 0 : i32
    %c0_i32_1 = arith.constant 0 : i32
    return %c0_i32, %c0_i32_0 : i32, i32
  }
  func.func @transform_16(%arg0: i32) -> (i32, i32) {
    %c0_i32 = arith.constant 0 : i32
    %c0_i32_0 = arith.constant 0 : i32
    %c0_i32_1 = arith.constant 0 : i32
    return %c0_i32, %c0_i32_0 : i32, i32
  }
  func.func @transform_17(%arg0: i32) -> (i32, i32) {
    %c0_i32 = arith.constant 0 : i32
    %c0_i32_0 = arith.constant 0 : i32
    %c0_i32_1 = arith.constant 0 : i32
    return %c0_i32, %c0_i32_0 : i32, i32
  }
  func.func @transform_18(%arg0: i32) -> (i32, i32) {
    %c0_i32 = arith.constant 0 : i32
    %c0_i32_0 = arith.constant 0 : i32
    return %arg0, %c0_i32 : i32, i32
  }
}

</mosaic_0001>

<bundles_post_ra>
// kernel: _lambda_.1
= control target key start
LH: loop header
LB: loop body
LE: loop exit
PB: predicated region body
PF: predicated region fallthrough
CT: control target
= control target key end

     0   :  { %s6634_s0 = inlined_call_operand.vmem [shape: f32[8,8,16], index: 0, kind: input, shape index: {}]   ;;  %s6635_s1 = inlined_call_operand.hbm [shape: bf16[16,512], index: 1, kind: input, shape index: {}]   ;;  %s6636_s2 = inlined_call_operand.hbm [shape: bf16[128,512], index: 2, kind: input, shape index: {}]   ;;  %s6637_s3 = inlined_call_operand.vmem [shape: f32[1,512], index: 3, kind: input, shape index: {}]   ;;  %s6638_s4 = inlined_call_operand.hbm [shape: bf16[128,512], index: 4, kind: input, shape index: {}]   ;;  %s6639_s5 = inlined_call_operand.hbm [shape: bf16[128,512], index: 5, kind: input, shape index: {}]   ;;  %s6640_s6 = inlined_call_operand.vmem [shape: f32[1,512], index: 6, kind: input, shape index: {}]   ;;  %s6641_s7 = inlined_call_operand.hbm [shape: bf16[128,128], index: 7, kind: input, shape index: {}]   ;;  %s6642_s8 = inlined_call_operand.hbm [shape: f32[1,128], index: 8, kind: input, shape index: {}]   ;;  %s6643_s9 = inlined_call_operand.hbm [shape: bf16[128,128], index: 9, kind: input, shape index: {}]   ;;  %s6644_s10 = inlined_call_operand.hbm [shape: f32[1,128], index: 10, kind: input, shape index: {}]   ;;  %s6645_s11 = inlined_call_operand.hbm [shape: bf16[128,128], index: 11, kind: input, shape index: {}]   ;;  %s6646_s12 = inlined_call_operand.vmem [shape: f32[1,128], index: 12, kind: input, shape index: {}]   ;;  %s6647_s13 = inlined_call_operand.hbm [shape: bf16[128,128], index: 13, kind: input, shape index: {}]   ;;  %s6648_s14 = inlined_call_operand.vmem [shape: f32[1,128], index: 14, kind: input, shape index: {}]   ;;  %s6649_s15 = inlined_call_operand.vmem [shape: f32[128,128], index: 15, kind: input, shape index: {}]   ;;  %s6650_s16 = inlined_call_operand.hbm [shape: bf16[128,128], index: 16, kind: input, shape index: {}]   ;;  %s6651_s17 = inlined_call_operand.vmem [shape: f32[1,128], index: 17, kind: input, shape index: {}]   ;;  %s6652_s18 = inlined_call_operand.vmem [shape: f32[8,128], index: 18, kind: output, shape index: {}]  }
   0x1   :  { %6662 = sst [smem:[#allocation47_spill]] %s6634_s0 }
   0x2   :  { %6663 = sst [smem:[#allocation48_spill]] %s6635_s1 }
   0x3   :  { %6664 = sst [smem:[#allocation49_spill]] %s6636_s2 }
   0x4   :  { %23 = vsyncpa [#allocation4], 0 }
   0x5   :  { %24 = vsyncpa [#allocation6], 0 }
   0x6   :  { %25 = vsyncpa [#allocation9], 0 }
   0x7   :  { %26 = vsyncpa [#allocation12], 0 }
   0x8   :  { %27 = vsyncpa [#allocation15], 0 }
   0x9   :  { %28 = vsyncpa [#allocation18], 0  ;;  %s5107_s27 = smov [#allocation5]   ;;  %s5108_s29 = smov [#allocation8]  }
   0xa   :  { %s48_s28 = sshll.u32 %s5107_s27, 4  ;;  %s74_s30 = sshll.u32 %s5108_s29, 4  ;;  %s49_s28 = int_to_ptr.vmem [resolvable:$true] %s48_s28  ;;  %s75_s30 = int_to_ptr.vmem [resolvable:$true] %s74_s30 }
   0xb   :  { %s4883_s0 = scalar_lea.vmem %s49_s28, 4096  ;;  %p4888_p1 = scmp.lt.s32.totalorder %s49_s28, %s49_s28 }
   0xc   :  { %p4884_p0 = scmp.ne.s32.totalorder %s49_s28, %s4883_s0  ;;  %p4889_p2 = scmp.lt.s32.totalorder %s4883_s0, %s4883_s0 }
   0xe   :  { %p4890_p3 = por %p4889_p2, %p4888_p1 }
  0x10   :  { %p4891_p4 = pnand %p4890_p3, %p4884_p0 }
  0x12   :  { %4894 = shalt.err (!%p4891_p4)
}
  0x13   :  { %s5109_s19 = smov 256   ;;  %s5110_s1 = smov 16  }
  0x14   :  { %s6665_s22 = sld [smem:[#allocation49_spill]]  ;;  %s4903_s2 = scalar_lea.vmem %s75_s30, 4096 }
  0x15   :  { %p4904_p5 = scmp.ne.s32.totalorder %s75_s30, %s4903_s2  ;;  %p4908_p6 = scmp.lt.s32.totalorder %s75_s30, %s75_s30 }
  0x16   :  { %p4909_p7 = scmp.lt.s32.totalorder %s4903_s2, %s4903_s2 }
  0x18   :  { %p4910_p8 = por %p4909_p7, %p4908_p6 }
  0x1a   :  { %54 = dma.hbm_to_vmem [thread:$0]  %s6665_s22, 4096, %s49_s28, [#allocation6], %s5109_s19, %s5109_s19, %s5110_s1  }
  0x1b   :  { %p4911_p9 = pnand %p4910_p8, %p4904_p5 }
  0x1d   :  { %4914 = shalt.err (!%p4911_p9)
}
  0x1e   :  { %80 = dma.hbm_to_vmem [thread:$0]  %s6639_s5, 4096, %s75_s30, [#allocation9], %s5109_s19, %s5109_s19, %s5110_s1  }
  0x1f   :  { %s5111_s25 = smov [#allocation11]   ;;  %s5112_s27 = smov [#allocation14]  }
  0x20   :  { %s101_s26 = sshll.u32 %s5111_s25, 4  ;;  %s123_s29 = sshll.u32 %s5112_s27, 4  ;;  %s102_s26 = int_to_ptr.vmem [resolvable:$true] %s101_s26  ;;  %s124_s29 = int_to_ptr.vmem [resolvable:$true] %s123_s29 }
  0x21   :  { %s4923_s28 = scalar_lea.vmem %s102_s26, 16  ;;  %s4927_s0 = scalar_lea.vmem %s102_s26, 32 }
  0x22   :  { %p4924_p10 = scmp.ne.s32.totalorder %s102_s26, %s4923_s28  ;;  %p4928_p11 = scmp.lt.s32.totalorder %s102_s26, %s102_s26 }
  0x23   :  { %p4929_p12 = scmp.lt.s32.totalorder %s4927_s0, %s4923_s28 }
  0x25   :  { %p4930_p13 = por %p4929_p12, %p4928_p11 }
  0x27   :  { %p4931_p0 = pnand %p4930_p13, %p4924_p10 }
  0x29   :  { %4934 = shalt.err (!%p4931_p0)
}
  0x2a   :  { %104 = dma.hbm_to_vmem [thread:$0]  %s6642_s8, 16, %s102_s26, [#allocation12]  }
  0x2b   :  { %s4943_s22 = scalar_lea.vmem %s124_s29, 16  ;;  %s4947_s5 = scalar_lea.vmem %s124_s29, 32 }
  0x2c   :  { %p4944_p1 = scmp.ne.s32.totalorder %s124_s29, %s4943_s22  ;;  %p4948_p2 = scmp.lt.s32.totalorder %s124_s29, %s124_s29 }
  0x2d   :  { %p4949_p3 = scmp.lt.s32.totalorder %s4947_s5, %s4943_s22 }
  0x2f   :  { %p4950_p4 = por %p4949_p3, %p4948_p2 }
  0x31   :  { %p4951_p5 = pnand %p4950_p4, %p4944_p1 }
  0x33   :  { %4954 = shalt.err (!%p4951_p5)
}
  0x34   :  { %126 = dma.hbm_to_vmem [thread:$0]  %s6644_s10, 16, %s124_s29, [#allocation15]  }
  0x35   :  { %s5113_s23 = smov [#allocation17]   ;;  %s5114_s25 = smov [#allocation3]  }
  0x36   :  { %s146_s24 = sshll.u32 %s5113_s23, 4  ;;  %s36_s27 = sshll.u32 %s5114_s25, 4  ;;  %s147_s24 = int_to_ptr.vmem [resolvable:$true] %s146_s24  ;;  %s37_s27 = int_to_ptr.vmem [resolvable:$true] %s36_s27 }
  0x37   :  { %s4963_s28 = scalar_lea.vmem %s147_s24, 1024  ;;  %p4968_p7 = scmp.lt.s32.totalorder %s147_s24, %s147_s24 }
  0x38   :  { %p4964_p6 = scmp.ne.s32.totalorder %s147_s24, %s4963_s28  ;;  %p4969_p8 = scmp.lt.s32.totalorder %s4963_s28, %s4963_s28 }
  0x3a   :  { %p4970_p9 = por %p4969_p8, %p4968_p7 }
  0x3c   :  { %p4971_p10 = pnand %p4970_p9, %p4964_p6 }
  0x3e   :  { %4974 = shalt.err (!%p4971_p10)
}
  0x3f   :  { %s5115_s8 = smov 64   ;;  %s5116_s26 = smov 4  }
  0x40   :  { %152 = dma.hbm_to_vmem [thread:$0]  %s6647_s13, 1024, %s147_s24, [#allocation18], %s5115_s8, %s5115_s8, %s5116_s26  }
  0x41   :  { %s4983_s29 = scalar_lea.vmem %s37_s27, 512  ;;  %p4988_p12 = scmp.lt.s32.totalorder %s37_s27, %s37_s27 }
  0x42   :  { %p4984_p11 = scmp.ne.s32.totalorder %s37_s27, %s4983_s29  ;;  %p4989_p13 = scmp.lt.s32.totalorder %s4983_s29, %s4983_s29 }
  0x44   :  { %p4990_p0 = por %p4989_p13, %p4988_p12 }
  0x46   :  { %p4991_p1 = pnand %p4990_p0, %p4984_p11 }
  0x48   :  { %4994 = shalt.err (!%p4991_p1)
}
  0x49   :  { %s6666_s22 = sld [smem:[#allocation48_spill]]  ;;  %s5117_s5 = smov [#allocation7]  }
  0x4a   :  { %s62_s30 = sshll.u32 %s5117_s5, 4  ;;  %s5118_s2 = smov [#allocation10]   ;;  %s63_s30 = int_to_ptr.vmem [resolvable:$true] %s62_s30 }
  0x4b   :  { %s88_s23 = sshll.u32 %s5118_s2, 4  ;;  %s5003_s13 = scalar_lea.vmem %s63_s30, 4096  ;;  %s89_s23 = int_to_ptr.vmem [resolvable:$true] %s88_s23 }
  0x4c   :  { %p5004_p2 = scmp.ne.s32.totalorder %s63_s30, %s5003_s13  ;;  %p5008_p3 = scmp.lt.s32.totalorder %s63_s30, %s63_s30 }
  0x4d   :  { %p5009_p4 = scmp.lt.s32.totalorder %s5003_s13, %s5003_s13 }
  0x4f   :  { %42 = dma.hbm_to_vmem [thread:$0]  %s6666_s22, 512, %s37_s27, [#allocation4], %s5109_s19, %s5109_s19, %s5110_s1  }
  0x50   :  { %p5010_p5 = por %p5009_p4, %p5008_p3 }
  0x52   :  { %p5011_p6 = pnand %p5010_p5, %p5004_p2 }
  0x54   :  { %5014 = shalt.err (!%p5011_p6)
}
  0x55   :  { %68 = dma.hbm_to_vmem [thread:$0]  %s6638_s4, 4096, %s63_s30, [#allocation6], %s5109_s19, %s5109_s19, %s5110_s1  }
  0x56   :  { %s5023_s27 = scalar_lea.vmem %s89_s23, 1024  ;;  %p5028_p8 = scmp.lt.s32.totalorder %s89_s23, %s89_s23 }
  0x57   :  { %p5024_p7 = scmp.ne.s32.totalorder %s89_s23, %s5023_s27  ;;  %p5029_p9 = scmp.lt.s32.totalorder %s5023_s27, %s5023_s27 }
  0x59   :  { %p5030_p10 = por %p5029_p9, %p5028_p8 }
  0x5b   :  { %p5031_p11 = pnand %p5030_p10, %p5024_p7 }
  0x5d   :  { %5034 = shalt.err (!%p5031_p11)
}
  0x5e   :  { %94 = dma.hbm_to_vmem [thread:$0]  %s6641_s7, 1024, %s89_s23, [#allocation9], %s5115_s8, %s5115_s8, %s5116_s26  }
  0x5f   :  { %s5119_s10 = smov [#allocation13]   ;;  %s5120_s20 = smov [#allocation16]  }
  0x60   :  { %s110_s29 = sshll.u32 %s5119_s10, 4  ;;  %s132_s21 = sshll.u32 %s5120_s20, 4  ;;  %s111_s29 = int_to_ptr.vmem [resolvable:$true] %s110_s29  ;;  %s133_s21 = int_to_ptr.vmem [resolvable:$true] %s132_s21 }
  0x61   :  { %s5043_s4 = scalar_lea.vmem %s111_s29, 1024  ;;  %p5048_p13 = scmp.lt.s32.totalorder %s111_s29, %s111_s29 }
  0x62   :  { %p5044_p12 = scmp.ne.s32.totalorder %s111_s29, %s5043_s4  ;;  %p5049_p0 = scmp.lt.s32.totalorder %s5043_s4, %s5043_s4 }
  0x64   :  { %p5050_p1 = por %p5049_p0, %p5048_p13 }
  0x66   :  { %p5051_p2 = pnand %p5050_p1, %p5044_p12 }
  0x68   :  { %5054 = shalt.err (!%p5051_p2)
}
  0x69   :  { %116 = dma.hbm_to_vmem [thread:$0]  %s6643_s9, 1024, %s111_s29, [#allocation12], %s5115_s8, %s5115_s8, %s5116_s26  }
  0x6a   :  { %s5063_s7 = scalar_lea.vmem %s133_s21, 1024  ;;  %p5068_p4 = scmp.lt.s32.totalorder %s133_s21, %s133_s21 }
  0x6b   :  { %p5064_p3 = scmp.ne.s32.totalorder %s133_s21, %s5063_s7  ;;  %p5069_p5 = scmp.lt.s32.totalorder %s5063_s7, %s5063_s7 }
  0x6d   :  { %p5070_p6 = por %p5069_p5, %p5068_p4 }
  0x6f   :  { %p5071_p7 = pnand %p5070_p6, %p5064_p3 }
  0x71   :  { %5074 = shalt.err (!%p5071_p7)
}
  0x72   :  { %138 = dma.hbm_to_vmem [thread:$0]  %s6645_s11, 1024, %s133_s21, [#allocation15], %s5115_s8, %s5115_s8, %s5116_s26  }
  0x73   :  { %s5121_s30 = smov [#allocation19]  }
  0x74   :  { %s162_s2 = sshll.u32 %s5121_s30, 4  ;;  %s163_s2 = int_to_ptr.vmem [resolvable:$true] %s162_s2 }
  0x75   :  { %s5083_s23 = scalar_lea.vmem %s163_s2, 1024  ;;  %p5088_p9 = scmp.lt.s32.totalorder %s163_s2, %s163_s2 }
  0x76   :  { %p5084_p8 = scmp.ne.s32.totalorder %s163_s2, %s5083_s23  ;;  %p5089_p10 = scmp.lt.s32.totalorder %s5083_s23, %s5083_s23 }
  0x78   :  { %p5090_p11 = por %p5089_p10, %p5088_p9 }
  0x7a   :  { %p5091_p12 = pnand %p5090_p11, %p5084_p8 }
  0x7c   :  { %5094 = shalt.err (!%p5091_p12)
}
  0x7d   :  { %168 = dma.hbm_to_vmem [thread:$0]  %s6650_s16, 1024, %s163_s2, [#allocation18], %s5115_s8, %s5115_s8, %s5116_s26  }
  0x7e   :  { %5095 = dma.done.wait [#allocation4], 512  }
  0x7f   :  { %5096 = vsyncadd [#allocation4], 4294966784 }
  0x80   :  { %5097 = dma.done.wait [#allocation6], 8192  }
  0x81   :  { %5098 = vsyncadd [#allocation6], 4294959104 }
  0x82   :  { %5099 = dma.done.wait [#allocation9], 5120  }
  0x83   :  { %5100 = vsyncadd [#allocation9], 4294962176 }
  0x84   :  { %5101 = dma.done.wait [#allocation12], 1040  }
  0x85   :  { %5102 = vsyncadd [#allocation12], 4294966256 }
  0x86   :  { %5103 = dma.done.wait [#allocation15], 1040  }
  0x87   :  { %5104 = vsyncadd [#allocation15], 4294966256 }
  0x88   :  { %5105 = dma.done.wait [#allocation18], 2048  }
  0x89   :  { %5106 = vsyncadd [#allocation18], 4294965248  ;;  %v6658_v0 = vmov 0   ;;  %v4347_v1 = vld [vmem:[#allocation3 + $0x4] ss:$16 sps:$4 sm:$0xff]   ;;  %s6667_s8 = sld [smem:[#allocation47_spill]]  ;;  %v255_v49 = vlaneseq }
  0x8a   :  { %340 = vmatprep.mubr.bf16.mxu0 %v6658_v0  ;;  %413 = vmatprep.mubr.bf16.mxu1 %v6658_v0  ;;  %v4349_v2 = vld [vmem:[#allocation3 + $0xc] ss:$16 sps:$4 sm:$0xff]   ;;  %v4351_v3 = vld [vmem:[#allocation3] ss:$16 sps:$4 sm:$0xff]   ;;  %v4352_v4 = vld [vmem:[#allocation3 + $0x8] ss:$16 sps:$4 sm:$0xff]  }
  0x8b   :  { %322 = vmatprep.subr.bf16.mxu0 %v4347_v1  ;;  %395 = vmatprep.subr.bf16.mxu1 %v4349_v2  ;;  %vm295_vm0 = vcmask 130048   ;;  %v5288_v8 = vld [vmem:[#allocation5 + $0xe4] ss:$16 sps:$4 sm:$0xff]   ;;  %v5290_v9 = vld [vmem:[#allocation5 + $0xec] ss:$16 sps:$4 sm:$0xff]   ;;  %v5456_v50 = vshrl.u32 %v255_v49, 7 }
  0x8c   :  { %323 = vmatpush1.bf16.msra.mxu0 %v4351_v3  ;;  %396 = vmatpush1.bf16.msra.mxu1 %v4352_v4  ;;  %v5292_v10 = vld [vmem:[#allocation5 + $0xe0] ss:$16 sps:$4 sm:$0xff]   ;;  %v5294_v11 = vld [vmem:[#allocation5 + $0xe8] ss:$16 sps:$4 sm:$0xff]   ;;  %v5297_v12 = vld [vmem:[#allocation5 + $0xc4] ss:$16 sps:$4 sm:$0xff]  }
  0x8d   :  { %650 = vmatprep.subr.bf16.mxu0 %v5288_v8  ;;  %v5301_v13 = vld [vmem:[#allocation5 + $0xcc] ss:$16 sps:$4 sm:$0xff]   ;;  %691 = vmatprep.subr.bf16.mxu1 %v5290_v9  ;;  %v5305_v14 = vld [vmem:[#allocation5 + $0xc0] ss:$16 sps:$4 sm:$0xff]   ;;  %v5307_v15 = vld [vmem:[#allocation5 + $0xc8] ss:$16 sps:$4 sm:$0xff]  }
  0x8e   :  { %v5319_v18 = vld [vmem:[#allocation5 + $0xa4] ss:$16 sps:$4 sm:$0xff]   ;;  %v5322_v20 = vld [vmem:[#allocation5 + $0xac] ss:$16 sps:$4 sm:$0xff]   ;;  %v5324_v21 = vld [vmem:[#allocation5 + $0xa0] ss:$16 sps:$4 sm:$0xff]  }
  0x8f   :  { %v205_v5 = vld [vmem:[%s6667_s8] sm:$0xff]  ;;  %v206_v6 = vld [vmem:[%s6667_s8 + $0x8] sm:$0xff]  ;;  %v207_v16 = vld [vmem:[%s6667_s8 + $0x10] sm:$0xff]  ;;  %6668 = vst [vmem:[#allocation26_spill] sm:$0xff] %v5456_v50  ;;  %v6654_v51 = vsub.s32 2, %v5456_v50  ;;  %v6657_v52 = vsub.s32 0, %v5456_v50 }
  0x90   :  { %v250_v7 = vpack.c.bf16 %v206_v6, %v205_v5  ;;  %v208_v17 = vld [vmem:[%s6667_s8 + $0x18] sm:$0xff]  ;;  %v5331_v23 = vld [vmem:[#allocation5 + $0x84] ss:$16 sps:$4 sm:$0xff]   ;;  %v5336_v25 = vld [vmem:[#allocation5 + $0x80] ss:$16 sps:$4 sm:$0xff]   ;;  %v6656_v57 = vsub.s32 1, %v5456_v50 }
  0x91   :  { %v251_v19 = vpack.c.bf16 %v208_v17, %v207_v16  ;;  %v5327_v22 = vld [vmem:[#allocation5 + $0xa8] ss:$16 sps:$4 sm:$0xff]   ;;  %v5334_v24 = vld [vmem:[#allocation5 + $0x8c] ss:$16 sps:$4 sm:$0xff]   ;;  %v209_v26 = vld [vmem:[%s6667_s8 + $0x20] sm:$0xff]  ;;  %v6655_v1 = vsub.s32 3, %v5456_v50 }
  0x92   :  { %3905 = vmatmul.mubr.msk.bf16.vlgmr.msra.gmra.mxu0 %vm295_vm0, %v250_v7  ;;  %3909 = vmatmul.mubr.msk.bf16.vlgmr.msra.gmra.mxu1 %vm295_vm0, %v250_v7  ;;  %v210_v27 = vld [vmem:[%s6667_s8 + $0x28] sm:$0xff]  ;;  %v5352_v29 = vld [vmem:[#allocation5 + $0x64] ss:$16 sps:$4 sm:$0xff]   ;;  %v5359_v32 = vld [vmem:[#allocation5 + $0x60] ss:$16 sps:$4 sm:$0xff]   ;;  %vm5124_vm1 = vmmov 0  }
  0x93   :  { %651 = vmatpush1.bf16.msra.mxu0 %v5292_v10  ;;  %692 = vmatpush1.bf16.msra.mxu1 %v5294_v11  ;;  %v5350_v28 = vld [vmem:[#allocation5 + $0x88] ss:$16 sps:$4 sm:$0xff]   ;;  %v5356_v30 = vld [vmem:[#allocation5 + $0x6c] ss:$16 sps:$4 sm:$0xff]   ;;  %v252_v31 = vpack.c.bf16 %v210_v27, %v209_v26  ;;  %v5365_v34 = vld [vmem:[#allocation5 + $0x44] ss:$16 sps:$4 sm:$0xff]  }
  0x94   :  { %652 = vmatprep.subr.bf16.mxu0 %v5297_v12  ;;  %693 = vmatprep.subr.bf16.mxu1 %v5301_v13  ;;  %v5361_v33 = vld [vmem:[#allocation5 + $0x68] ss:$16 sps:$4 sm:$0xff]   ;;  %v5368_v35 = vld [vmem:[#allocation5 + $0x4c] ss:$16 sps:$4 sm:$0xff]   ;;  %v5372_v36 = vld [vmem:[#allocation5 + $0x40] ss:$16 sps:$4 sm:$0xff]  }
  0x95   :  { %350 = vmatprep.mubr.bf16.mxu0 %v6658_v0  ;;  %423 = vmatprep.mubr.bf16.mxu1 %v6658_v0  ;;  %v5374_v37 = vld [vmem:[#allocation5 + $0x48] ss:$16 sps:$4 sm:$0xff]   ;;  %v211_v38 = vld [vmem:[%s6667_s8 + $0x30] sm:$0xff]  ;;  %v5390_v41 = vld [vmem:[#allocation5 + $0x2c] ss:$16 sps:$4 sm:$0xff]  }
  0x96   :  { %v212_v39 = vld [vmem:[%s6667_s8 + $0x38] sm:$0xff]  ;;  %v5386_v40 = vld [vmem:[#allocation5 + $0x24] ss:$16 sps:$4 sm:$0xff]   ;;  %v5392_v42 = vld [vmem:[#allocation5 + $0x20] ss:$16 sps:$4 sm:$0xff]  }
  0x97   :  { %653 = vmatpush1.bf16.msra.mxu0 %v5305_v14  ;;  %694 = vmatpush1.bf16.msra.mxu1 %v5307_v15  ;;  %v253_v43 = vpack.c.bf16 %v212_v39, %v211_v38  ;;  %v5394_v44 = vld [vmem:[#allocation5 + $0x28] ss:$16 sps:$4 sm:$0xff]   ;;  %v5396_v45 = vld [vmem:[#allocation5 + $0x4] ss:$16 sps:$4 sm:$0xff]   ;;  %v5399_v46 = vld [vmem:[#allocation5 + $0xc] ss:$16 sps:$4 sm:$0xff]  }
  0x98   :  { %654 = vmatprep.subr.bf16.mxu0 %v5319_v18  ;;  %695 = vmatprep.subr.bf16.mxu1 %v5322_v20  ;;  %v5404_v47 = vld [vmem:[#allocation5] ss:$16 sps:$4 sm:$0xff]   ;;  %v5408_v48 = vld [vmem:[#allocation5 + $0x8] ss:$16 sps:$4 sm:$0xff]  }
  0x99   :  { %v249_v53 = vld [vmem:[%s6637_s3] sm:$0xf] }
  0x9a   :  { %3906 = vmatmul.mubr.msk.bf16.gmra.mxu0 %vm295_vm0, %v251_v19  ;;  %3910 = vmatmul.mubr.msk.bf16.gmra.mxu1 %vm295_vm0, %v251_v19  ;;  %v5469_v56 = vrot.slane %v249_v53, %v6654_v51  ;;  %v258_v60 = vrot.slane %v249_v53, %v6657_v52  ;;  %v262_v63 = vrot.slane %v249_v53, %v6656_v57 }
  0x9b   :  { %655 = vmatpush1.bf16.msra.mxu0 %v5324_v21  ;;  %360 = vmatprep.mubr.bf16.mxu0 %v6658_v0  ;;  %v5492_v17 = vrot.slane %v249_v53, %v6655_v1 }
  0x9c   :  { %696 = vmatpush1.bf16.msra.mxu1 %v5327_v22  ;;  %656 = vmatprep.subr.bf16.mxu0 %v5331_v23 }
  0x9d   :  { %697 = vmatprep.subr.bf16.mxu1 %v5334_v24  ;;  %433 = vmatprep.mubr.bf16.mxu1 %v6658_v0 }
  0x9f   :  { %657 = vmatpush1.bf16.msra.mxu0 %v5336_v25 }
  0xa0   :  { %698 = vmatpush1.bf16.msra.mxu1 %v5350_v28  ;;  %658 = vmatprep.subr.bf16.mxu0 %v5352_v29 }
  0xa1   :  { %699 = vmatprep.subr.bf16.mxu1 %v5356_v30 }
  0xa2   :  { %3907 = vmatmul.mubr.msk.bf16.gmra.mxu0 %vm295_vm0, %v252_v31  ;;  %3911 = vmatmul.mubr.msk.bf16.gmra.mxu1 %vm295_vm0, %v252_v31 }
  0xa3   :  { %659 = vmatpush1.bf16.msra.mxu0 %v5359_v32  ;;  %370 = vmatprep.mubr.bf16.mxu0 %v6658_v0 }
  0xa4   :  { %700 = vmatpush1.bf16.msra.mxu1 %v5361_v33  ;;  %660 = vmatprep.subr.bf16.mxu0 %v5365_v34 }
  0xa5   :  { %701 = vmatprep.subr.bf16.mxu1 %v5368_v35  ;;  %443 = vmatprep.mubr.bf16.mxu1 %v6658_v0 }
  0xa7   :  { %661 = vmatpush1.bf16.msra.mxu0 %v5372_v36 }
  0xa8   :  { %702 = vmatpush1.bf16.msra.mxu1 %v5374_v37  ;;  %662 = vmatprep.subr.bf16.mxu0 %v5386_v40 }
  0xa9   :  { %703 = vmatprep.subr.bf16.mxu1 %v5390_v41 }
  0xaa   :  { %3908 = vmatmul.mubr.msk.bf16.gmra.mxu0 %vm295_vm0, %v253_v43  ;;  %3912 = vmatmul.mubr.msk.bf16.gmra.mxu1 %vm295_vm0, %v253_v43 }
  0xab   :  { %663 = vmatpush1.bf16.msra.mxu0 %v5392_v42  ;;  %682 = vmatprep.mubr.bf16.mxu0 %v6658_v0 }
  0xac   :  { %704 = vmatpush1.bf16.msra.mxu1 %v5394_v44  ;;  %664 = vmatprep.subr.bf16.mxu0 %v5396_v45 }
  0xad   :  { %705 = vmatprep.subr.bf16.mxu1 %v5399_v46  ;;  %723 = vmatprep.mubr.bf16.mxu1 %v6658_v0 }
  0xaf   :  { %665 = vmatpush1.bf16.msra.mxu0 %v5404_v47 }
  0xb0   :  { %706 = vmatpush1.bf16.msra.mxu1 %v5408_v48  ;;  %766 = vmatprep.subr.bf16.mxu0 %v5288_v8 }
  0xb1   :  { %807 = vmatprep.subr.bf16.mxu1 %v5290_v9 }
  0xb2   :  { %683 = vmatmul.mubr.bf16.vlgmr.msra.gmra.mxu0 %v6658_v0 }
  0xb3   :  { %724 = vmatmul.mubr.bf16.vlgmr.msra.gmra.mxu1 %v6658_v0  ;;  %767 = vmatpush1.bf16.msra.mxu0 %v5292_v10 }
  0xb4   :  { %808 = vmatpush1.bf16.msra.mxu1 %v5294_v11  ;;  %768 = vmatprep.subr.bf16.mxu0 %v5297_v12 }
  0xb5   :  { %809 = vmatprep.subr.bf16.mxu1 %v5301_v13  ;;  %798 = vmatprep.mubr.bf16.mxu0 %v6658_v0 }
  0xb6   :  { %839 = vmatprep.mubr.bf16.mxu1 %v6658_v0 }
  0xb7   :  { %769 = vmatpush1.bf16.msra.mxu0 %v5305_v14 }
  0xb8   :  { %810 = vmatpush1.bf16.msra.mxu1 %v5307_v15  ;;  %770 = vmatprep.subr.bf16.mxu0 %v5319_v18 }
  0xb9   :  { %811 = vmatprep.subr.bf16.mxu1 %v5322_v20 }
  0xbb   :  { %771 = vmatpush1.bf16.msra.mxu0 %v5324_v21 }
  0xbc   :  { %812 = vmatpush1.bf16.msra.mxu1 %v5327_v22  ;;  %772 = vmatprep.subr.bf16.mxu0 %v5331_v23 }
  0xbd   :  { %813 = vmatprep.subr.bf16.mxu1 %v5334_v24 }
  0xbf   :  { %773 = vmatpush1.bf16.msra.mxu0 %v5336_v25 }
  0xc0   :  { %814 = vmatpush1.bf16.msra.mxu1 %v5350_v28  ;;  %774 = vmatprep.subr.bf16.mxu0 %v5352_v29 }
  0xc1   :  { %815 = vmatprep.subr.bf16.mxu1 %v5356_v30 }
  0xc3   :  { %775 = vmatpush1.bf16.msra.mxu0 %v5359_v32 }
  0xc4   :  { %816 = vmatpush1.bf16.msra.mxu1 %v5361_v33  ;;  %776 = vmatprep.subr.bf16.mxu0 %v5365_v34 }
  0xc5   :  { %817 = vmatprep.subr.bf16.mxu1 %v5368_v35 }
  0xc7   :  { %777 = vmatpush1.bf16.msra.mxu0 %v5372_v36 }
  0xc8   :  { %818 = vmatpush1.bf16.msra.mxu1 %v5374_v37  ;;  %778 = vmatprep.subr.bf16.mxu0 %v5386_v40 }
  0xc9   :  { %819 = vmatprep.subr.bf16.mxu1 %v5390_v41 }
  0xcb   :  { %779 = vmatpush1.bf16.msra.mxu0 %v5392_v42 }
  0xcc   :  { %820 = vmatpush1.bf16.msra.mxu1 %v5394_v44  ;;  %780 = vmatprep.subr.bf16.mxu0 %v5396_v45 }
  0xcd   :  { %821 = vmatprep.subr.bf16.mxu1 %v5399_v46 }
  0xcf   :  { %781 = vmatpush1.bf16.msra.mxu0 %v5404_v47 }
  0xd0   :  { %822 = vmatpush1.bf16.msra.mxu1 %v5408_v48  ;;  %882 = vmatprep.subr.bf16.mxu0 %v5288_v8 }
  0xd1   :  { %923 = vmatprep.subr.bf16.mxu1 %v5290_v9 }
 0x152   :  { %v5463_v54 = vpop.f32.mrf.mxu0  ;;  %v5465_v55 = vpop.f32.mrf.mxu1 }
 0x154   :  { %v5472_v58 = vpop.f32.mrf.mxu0  ;;  %v5474_v59 = vpop.f32.mrf.mxu1 }
 0x156   :  { %v346_v61 = vpop.f32.mrf.mxu0  ;;  %v419_v62 = vpop.f32.mrf.mxu1 }
 0x157   :  { %v5481_v2 = vadd.f32 %v346_v61, %v258_v60  ;;  %v5484_v3 = vadd.f32 %v419_v62, %v5469_v56 }
 0x158   :  { %v348_v4 = vpop.f32.mrf.mxu0  ;;  %v5486_v5 = vpop.f32.mrf.mxu1 }
 0x159   :  { %v5488_v6 = vadd.f32 %v348_v4, %v262_v63 }
 0x15a   :  { %v352_v7 = vpop.f32.mrf.mxu0  ;;  %v425_v16 = vpop.f32.mrf.mxu1 }
 0x15b   :  { %v5494_v19 = vadd.f32 %v352_v7, %v258_v60  ;;  %v5497_v26 = vadd.f32 %v425_v16, %v5469_v56 }
 0x15c   :  { %v354_v27 = vpop.f32.mrf.mxu0  ;;  %v427_v31 = vpop.f32.mrf.mxu1 }
 0x15d   :  { %6669 = vst [vmem:[#allocation27_spill] sm:$0xff] %v5497_v26  ;;  %v5499_v38 = vadd.f32 %v354_v27, %v262_v63  ;;  %v5502_v39 = vadd.f32 %v427_v31, %v5492_v17 }
 0x15e   :  { %v356_v43 = vpop.f32.mrf.mxu0  ;;  %v429_v49 = vpop.f32.mrf.mxu1 }
 0x15f   :  { %v5504_v61 = vadd.f32 %v356_v43, %v258_v60  ;;  %v5507_v62 = vadd.f32 %v429_v49, %v5469_v56 }
 0x160   :  { %v358_v53 = vpop.f32.mrf.mxu0  ;;  %v431_v4 = vpop.f32.mrf.mxu1 }
 0x161   :  { %6670 = vst [vmem:[#allocation28_spill] sm:$0xff] %v5504_v61  ;;  %6671 = vst [vmem:[#allocation29_spill] sm:$0xff] %v5507_v62  ;;  %v5509_v7 = vadd.f32 %v358_v53, %v262_v63  ;;  %v5512_v16 = vadd.f32 %v431_v4, %v5492_v17 }
 0x162   :  { %v362_v51 = vpop.f32.mrf.mxu0  ;;  %v435_v27 = vpop.f32.mrf.mxu1 }
 0x163   :  { %6672 = vst [vmem:[#allocation30_spill] sm:$0xff] %v5509_v7  ;;  %6673 = vst [vmem:[#allocation31_spill] sm:$0xff] %v5512_v16  ;;  %v5514_v1 = vadd.f32 %v362_v51, %v258_v60  ;;  %v5517_v31 = vadd.f32 %v435_v27, %v5469_v56 }
 0x164   :  { %v364_v57 = vpop.f32.mrf.mxu0  ;;  %v437_v43 = vpop.f32.mrf.mxu1 }
 0x165   :  { %6674 = vst [vmem:[#allocation32_spill] sm:$0xff] %v5514_v1  ;;  %6675 = vst [vmem:[#allocation33_spill] sm:$0xff] %v5517_v31  ;;  %v5519_v52 = vadd.f32 %v364_v57, %v262_v63  ;;  %v5522_v49 = vadd.f32 %v437_v43, %v5492_v17 }
 0x166   :  { %v366_v0 = vpop.f32.mrf.mxu0  ;;  %v439_v53 = vpop.f32.mrf.mxu1 }
 0x167   :  { %6676 = vst [vmem:[#allocation34_spill] sm:$0xff] %v5519_v52  ;;  %6677 = vst [vmem:[#allocation35_spill] sm:$0xff] %v5522_v49  ;;  %v5524_v50 = vadd.f32 %v366_v0, %v258_v60  ;;  %v5527_v4 = vadd.f32 %v439_v53, %v5469_v56 }
 0x168   :  { %v368_v62 = vpop.f32.mrf.mxu0  ;;  %v441_v51 = vpop.f32.mrf.mxu1 }
 0x169   :  { %6678 = vst [vmem:[#allocation36_spill] sm:$0xff] %v5524_v50  ;;  %6679 = vst [vmem:[#allocation37_spill] sm:$0xff] %v5527_v4  ;;  %v5529_v1 = vadd.f32 %v368_v62, %v262_v63  ;;  %v5532_v27 = vadd.f32 %v441_v51, %v5492_v17 }
 0x16a   :  { %v372_v31 = vpop.f32.mrf.mxu0  ;;  %v445_v57 = vpop.f32.mrf.mxu1 }
 0x16b   :  { %6680 = vst [vmem:[#allocation38_spill] sm:$0xff] %v5529_v1  ;;  %6681 = vst [vmem:[#allocation39_spill] sm:$0xff] %v5532_v27  ;;  %v5534_v52 = vadd.f32 %v372_v31, %v258_v60  ;;  %v5537_v43 = vadd.f32 %v445_v57, %v5469_v56 }
 0x16c   :  { %v374_v49 = vpop.f32.mrf.mxu0  ;;  %v447_v0 = vpop.f32.mrf.mxu1 }
 0x16d   :  { %6682 = vst [vmem:[#allocation40_spill] sm:$0xff] %v5534_v52  ;;  %6683 = vst [vmem:[#allocation41_spill] sm:$0xff] %v5537_v43  ;;  %v5539_v50 = vadd.f32 %v374_v49, %v262_v63  ;;  %v5542_v53 = vadd.f32 %v447_v0, %v5492_v17  ;;  %v343_v52 = vadd.f32 %v5463_v54, %v258_v60 }
 0x16e   :  { %v376_v4 = vpop.f32.mrf.mxu0  ;;  %v449_v62 = vpop.f32.mrf.mxu1  ;;  %v345_v0 = vadd.f32 %v5472_v58, %v262_v63  ;;  %v416_v58 = vadd.f32 %v5465_v55, %v5469_v56 }
 0x16f   :  { %6684 = vst [vmem:[#allocation42_spill] sm:$0xff] %v5539_v50  ;;  %6685 = vst [vmem:[#allocation43_spill] sm:$0xff] %v5542_v53  ;;  %v5544_v1 = vadd.f32 %v376_v4, %v258_v60  ;;  %v5547_v51 = vadd.f32 %v449_v62, %v5469_v56  ;;  %v418_v60 = vadd.f32 %v5474_v59, %v5492_v17 }
 0x170   :  { %v378_v27 = vpop.f32.mrf.mxu0  ;;  %v451_v31 = vpop.f32.mrf.mxu1 }
 0x171   :  { %6686 = vst [vmem:[#allocation44_spill] sm:$0xff] %v5544_v1  ;;  %6687 = vst [vmem:[#allocation45_spill] sm:$0xff] %v5547_v51  ;;  %v5550_v57 = vadd.f32 %v378_v27, %v262_v63  ;;  %v5553_v43 = vadd.f32 %v451_v31, %v5492_v17 }
 0x172   :  { %v684_v49 = vpop.f32.mrf.mxu0 }
 0x173   :  { %v732_v53 = vadd.f32 %v684_v49, %v343_v52  ;;  %v725_v50 = vpop.f32.mrf.mxu1 }
 0x174   :  { %v686_v16 = vpop.f32.mrf.mxu0  ;;  %v734_v31 = vadd.f32 %v725_v50, %v416_v58 }
 0x175   :  { %v3945_v4 = vmul.f32 -1.442695, %v732_v53  ;;  %v733_v1 = vadd.f32 %v686_v16, %v345_v0  ;;  %v727_v7 = vpop.f32.mrf.mxu1 }
 0x176   :  { %v688_v62 = vpop.f32.mrf.mxu0  ;;  %v735_v27 = vadd.f32 %v727_v7, %v418_v60 }
 0x177   :  { %4537 = vpow2.f32 %v3945_v4  ;;  %v3946_v51 = vmul.f32 -1.442695, %v733_v1  ;;  %v729_v61 = vpop.f32.mrf.mxu1 }
 0x178   :  { %v689_v26 = vpop.f32.mrf.mxu0  ;;  %v3947_v52 = vmul.f32 -1.442695, %v735_v27 }
 0x179   :  { %4539 = vpow2.f32 %v3946_v51  ;;  %v730_v54 = vpop.f32.mrf.mxu1 }
 0x17a   :  { %4541 = vpow2.f32 %v3947_v52  ;;  %v6688_v54 = vmov 0  }
 0x184   :  { %v4538_v63 = vpop.eup %4537 }
 0x185   :  { %v739_v53 = vadd.f32 1.0, %v4538_v63 }
 0x186   :  { %v4540_v16 = vpop.eup %4539 }
 0x187   :  { %4543 = vrcp.f32 %v739_v53  ;;  %v745_v49 = vadd.f32 1.0, %v4540_v16  ;;  %v4542_v1 = vpop.eup %4541 }
 0x188   :  { %4545 = vtanh.f32 %v734_v31  ;;  %v752_v0 = vadd.f32 1.0, %v4542_v1 }
 0x189   :  { %4547 = vrcp.f32 %v745_v49 }
 0x18a   :  { %4549 = vrcp.f32 %v752_v0 }
 0x194   :  { %v4544_v26 = vpop.eup %4543 }
 0x195   :  { %v4546_v61 = vpop.eup %4545 }
 0x196   :  { %v4548_v51 = vpop.eup %4547  ;;  %v756_v7 = vmul.f32 %v4546_v61, %v4544_v26 }
 0x197   :  { %v755_v59 = vmul.f32 0.0, %v4548_v51  ;;  %v4550_v50 = vpop.eup %4549 }
 0x199   :  { %v5560_v4 = vadd.f32 %v756_v7, %v755_v59 }
 0x19b   :  { %4551 = vtanh.f32 %v5560_v4 }
 0x1a8   :  { %v4552_v55 = vpop.eup %4551 }
 0x1a9   :  { %v5563_v56 = vmul.f32 %v4552_v55, %v4550_v50 }
 0x1ab   :  { %v765_v62 = vpack.c.bf16 %v5563_v56, %v5563_v56 }
 0x1ad   :  { %799 = vmatmul.mubr.bf16.vlgmr.msra.gmra.mxu0 %v765_v62  ;;  %840 = vmatmul.mubr.bf16.vlgmr.msra.gmra.mxu1 %v765_v62 }
 0x1ae   :  { %883 = vmatpush1.bf16.msra.mxu0 %v5292_v10  ;;  %924 = vmatpush1.bf16.msra.mxu1 %v5294_v11 }
 0x1af   :  { %884 = vmatprep.subr.bf16.mxu0 %v5297_v12  ;;  %925 = vmatprep.subr.bf16.mxu1 %v5301_v13 }
 0x1b0   :  { %914 = vmatprep.mubr.bf16.mxu0 %v6688_v54  ;;  %955 = vmatprep.mubr.bf16.mxu1 %v6688_v54 }
 0x1b2   :  { %885 = vmatpush1.bf16.msra.mxu0 %v5305_v14  ;;  %926 = vmatpush1.bf16.msra.mxu1 %v5307_v15 }
 0x1b3   :  { %886 = vmatprep.subr.bf16.mxu0 %v5319_v18  ;;  %927 = vmatprep.subr.bf16.mxu1 %v5322_v20 }
 0x1b6   :  { %887 = vmatpush1.bf16.msra.mxu0 %v5324_v21  ;;  %928 = vmatpush1.bf16.msra.mxu1 %v5327_v22 }
 0x1b7   :  { %888 = vmatprep.subr.bf16.mxu0 %v5331_v23  ;;  %929 = vmatprep.subr.bf16.mxu1 %v5334_v24 }
 0x1ba   :  { %889 = vmatpush1.bf16.msra.mxu0 %v5336_v25  ;;  %930 = vmatpush1.bf16.msra.mxu1 %v5350_v28 }
 0x1bb   :  { %890 = vmatprep.subr.bf16.mxu0 %v5352_v29  ;;  %931 = vmatprep.subr.bf16.mxu1 %v5356_v30 }
 0x1be   :  { %891 = vmatpush1.bf16.msra.mxu0 %v5359_v32  ;;  %932 = vmatpush1.bf16.msra.mxu1 %v5361_v33 }
 0x1bf   :  { %892 = vmatprep.subr.bf16.mxu0 %v5365_v34  ;;  %933 = vmatprep.subr.bf16.mxu1 %v5368_v35 }
 0x1c2   :  { %893 = vmatpush1.bf16.msra.mxu0 %v5372_v36  ;;  %934 = vmatpush1.bf16.msra.mxu1 %v5374_v37 }
 0x1c3   :  { %894 = vmatprep.subr.bf16.mxu0 %v5386_v40  ;;  %935 = vmatprep.subr.bf16.mxu1 %v5390_v41 }
 0x1c6   :  { %895 = vmatpush1.bf16.msra.mxu0 %v5392_v42  ;;  %936 = vmatpush1.bf16.msra.mxu1 %v5394_v44 }
 0x1c7   :  { %896 = vmatprep.subr.bf16.mxu0 %v5396_v45  ;;  %937 = vmatprep.subr.bf16.mxu1 %v5399_v46 }
 0x1ca   :  { %897 = vmatpush1.bf16.msra.mxu0 %v5404_v47  ;;  %938 = vmatpush1.bf16.msra.mxu1 %v5408_v48 }
 0x1cb   :  { %998 = vmatprep.subr.bf16.mxu0 %v5288_v8  ;;  %1039 = vmatprep.subr.bf16.mxu1 %v5290_v9  ;;  %v422_v8 = vadd.f32 %v5486_v5, %v5492_v17 }
 0x26d   :  { %v800_v60 = vpop.f32.mrf.mxu0  ;;  %v841_v27 = vpop.f32.mrf.mxu1 }
 0x26e   :  { %v848_v58 = vadd.f32 %v800_v60, %v5481_v2  ;;  %v850_v51 = vadd.f32 %v841_v27, %v5484_v3 }
 0x26f   :  { %v802_v52 = vpop.f32.mrf.mxu0  ;;  %v843_v63 = vpop.f32.mrf.mxu1 }
 0x270   :  { %v3948_v31 = vmul.f32 -1.442695, %v848_v58  ;;  %v849_v53 = vadd.f32 %v802_v52, %v5488_v6  ;;  %v851_v9 = vadd.f32 %v843_v63, %v422_v8 }
 0x271   :  { %v804_v16 = vpop.f32.mrf.mxu0  ;;  %v845_v49 = vpop.f32.mrf.mxu1 }
 0x272   :  { %4553 = vpow2.f32 %v3948_v31  ;;  %v3949_v1 = vmul.f32 -1.442695, %v849_v53  ;;  %v3950_v0 = vmul.f32 -1.442695, %v851_v9 }
 0x273   :  { %v805_v26 = vpop.f32.mrf.mxu0  ;;  %v846_v61 = vpop.f32.mrf.mxu1 }
 0x274   :  { %4555 = vpow2.f32 %v3949_v1 }
 0x275   :  { %4557 = vtanh.f32 %v850_v51 }
 0x276   :  { %4559 = vpow2.f32 %v3950_v0 }
 0x27f   :  { %v4554_v2 = vpop.eup %4553 }
 0x280   :  { %v855_v59 = vadd.f32 1.0, %v4554_v2 }
 0x281   :  { %v4556_v7 = vpop.eup %4555 }
 0x282   :  { %4561 = vrcp.f32 %v855_v59  ;;  %v861_v6 = vadd.f32 1.0, %v4556_v7  ;;  %v4558_v50 = vpop.eup %4557  ;;  %v5664_v59 = vld [vmem:[#allocation5 + $0xe0] ss:$16 sps:$4 sm:$0xff]   ;;  %v5667_v7 = vld [vmem:[#allocation5 + $0xe8] ss:$16 sps:$4 sm:$0xff]  }
 0x283   :  { %v4560_v55 = vpop.eup %4559 }
 0x284   :  { %4563 = vrcp.f32 %v861_v6  ;;  %v868_v52 = vadd.f32 1.0, %v4560_v55  ;;  %v5670_v6 = vld [vmem:[#allocation5 + $0xc4] ss:$16 sps:$4 sm:$0xff]   ;;  %v5678_v55 = vld [vmem:[#allocation5 + $0xc0] ss:$16 sps:$4 sm:$0xff]  }
 0x286   :  { %4565 = vrcp.f32 %v868_v52  ;;  %v5690_v52 = vld [vmem:[#allocation5 + $0xa0] ss:$16 sps:$4 sm:$0xff]  }
 0x28f   :  { %v4562_v62 = vpop.eup %4561 }
 0x290   :  { %v872_v60 = vmul.f32 %v4562_v62, %v4558_v50  ;;  %v5673_v50 = vld [vmem:[#allocation5 + $0xcc] ss:$16 sps:$4 sm:$0xff]   ;;  %v5681_v62 = vld [vmem:[#allocation5 + $0xc8] ss:$16 sps:$4 sm:$0xff]  }
 0x291   :  { %v4564_v58 = vpop.eup %4563 }
 0x292   :  { %v871_v5 = vmul.f32 %v4564_v58, %v5560_v4  ;;  %v5687_v58 = vld [vmem:[#allocation5 + $0xac] ss:$16 sps:$4 sm:$0xff]  }
 0x293   :  { %v4566_v3 = vpop.eup %4565 }
 0x294   :  { %v5607_v17 = vadd.f32 %v872_v60, %v871_v5  ;;  %v5684_v60 = vld [vmem:[#allocation5 + $0xa4] ss:$16 sps:$4 sm:$0xff]   ;;  %v5693_v5 = vld [vmem:[#allocation5 + $0xa8] ss:$16 sps:$4 sm:$0xff]  }
 0x296   :  { %4567 = vtanh.f32 %v5607_v17 }
 0x2a3   :  { %v4568_v27 = vpop.eup %4567 }
 0x2a4   :  { %v5610_v63 = vmul.f32 %v4568_v27, %v4566_v3  ;;  %v5699_v3 = vld [vmem:[#allocation5 + $0x8c] ss:$16 sps:$4 sm:$0xff]   ;;  %v5702_v27 = vld [vmem:[#allocation5 + $0x80] ss:$16 sps:$4 sm:$0xff]  }
 0x2a6   :  { %v881_v31 = vpack.c.bf16 %v5610_v63, %v5610_v63 }
 0x2a8   :  { %915 = vmatmul.mubr.bf16.vlgmr.msra.gmra.mxu0 %v881_v31  ;;  %956 = vmatmul.mubr.bf16.vlgmr.msra.gmra.mxu1 %v881_v31  ;;  %v5705_v31 = vld [vmem:[#allocation5 + $0x88] ss:$16 sps:$4 sm:$0xff]  }
 0x2a9   :  { %999 = vmatpush1.bf16.msra.mxu0 %v5292_v10  ;;  %1040 = vmatpush1.bf16.msra.mxu1 %v5294_v11  ;;  %v5646_v10 = vld [vmem:[#allocation5 + $0xe4] ss:$16 sps:$4 sm:$0xff]   ;;  %v5649_v11 = vld [vmem:[#allocation5 + $0xec] ss:$16 sps:$4 sm:$0xff]  }
 0x2aa   :  { %1000 = vmatprep.subr.bf16.mxu0 %v5297_v12  ;;  %1041 = vmatprep.subr.bf16.mxu1 %v5301_v13 }
 0x2ab   :  { %1030 = vmatprep.mubr.bf16.mxu0 %v6688_v54  ;;  %1071 = vmatprep.mubr.bf16.mxu1 %v6688_v54 }
 0x2ad   :  { %1001 = vmatpush1.bf16.msra.mxu0 %v5305_v14  ;;  %1042 = vmatpush1.bf16.msra.mxu1 %v5307_v15 }
 0x2ae   :  { %1002 = vmatprep.subr.bf16.mxu0 %v5319_v18  ;;  %1043 = vmatprep.subr.bf16.mxu1 %v5322_v20 }
 0x2b1   :  { %1003 = vmatpush1.bf16.msra.mxu0 %v5324_v21  ;;  %1044 = vmatpush1.bf16.msra.mxu1 %v5327_v22 }
 0x2b2   :  { %1004 = vmatprep.subr.bf16.mxu0 %v5331_v23  ;;  %1045 = vmatprep.subr.bf16.mxu1 %v5334_v24 }
 0x2b5   :  { %1005 = vmatpush1.bf16.msra.mxu0 %v5336_v25  ;;  %1046 = vmatpush1.bf16.msra.mxu1 %v5350_v28 }
 0x2b6   :  { %1006 = vmatprep.subr.bf16.mxu0 %v5352_v29  ;;  %1047 = vmatprep.subr.bf16.mxu1 %v5356_v30  ;;  %v6689_v30 = vld [vmem:[#allocation27_spill] sm:$0xff] }
 0x2b9   :  { %1007 = vmatpush1.bf16.msra.mxu0 %v5359_v32  ;;  %1048 = vmatpush1.bf16.msra.mxu1 %v5361_v33 }
 0x2ba   :  { %1008 = vmatprep.subr.bf16.mxu0 %v5365_v34  ;;  %1049 = vmatprep.subr.bf16.mxu1 %v5368_v35 }
 0x2bd   :  { %1009 = vmatpush1.bf16.msra.mxu0 %v5372_v36  ;;  %1050 = vmatpush1.bf16.msra.mxu1 %v5374_v37 }
 0x2be   :  { %1010 = vmatprep.subr.bf16.mxu0 %v5386_v40  ;;  %1051 = vmatprep.subr.bf16.mxu1 %v5390_v41 }
 0x2c1   :  { %1011 = vmatpush1.bf16.msra.mxu0 %v5392_v42  ;;  %1052 = vmatpush1.bf16.msra.mxu1 %v5394_v44 }
 0x2c2   :  { %1012 = vmatprep.subr.bf16.mxu0 %v5396_v45  ;;  %1053 = vmatprep.subr.bf16.mxu1 %v5399_v46 }
 0x2c5   :  { %1013 = vmatpush1.bf16.msra.mxu0 %v5404_v47  ;;  %1054 = vmatpush1.bf16.msra.mxu1 %v5408_v48 }
 0x2c6   :  { %1114 = vmatprep.subr.bf16.mxu0 %v5646_v10  ;;  %1155 = vmatprep.subr.bf16.mxu1 %v5649_v11 }
 0x368   :  { %v916_v12 = vpop.f32.mrf.mxu0  ;;  %v957_v13 = vpop.f32.mrf.mxu1 }
 0x369   :  { %v964_v14 = vadd.f32 %v916_v12, %v5494_v19  ;;  %v966_v32 = vadd.f32 %v957_v13, %v6689_v30  ;;  %v5708_v12 = vld [vmem:[#allocation5 + $0x64] ss:$16 sps:$4 sm:$0xff]   ;;  %v5711_v13 = vld [vmem:[#allocation5 + $0x6c] ss:$16 sps:$4 sm:$0xff]  }
 0x36a   :  { %v918_v15 = vpop.f32.mrf.mxu0  ;;  %v959_v18 = vpop.f32.mrf.mxu1 }
 0x36b   :  { %v3951_v20 = vmul.f32 -1.442695, %v964_v14  ;;  %v965_v21 = vadd.f32 %v918_v15, %v5499_v38  ;;  %v967_v29 = vadd.f32 %v959_v18, %v5502_v39  ;;  %v5714_v14 = vld [vmem:[#allocation5 + $0x60] ss:$16 sps:$4 sm:$0xff]   ;;  %v5717_v15 = vld [vmem:[#allocation5 + $0x68] ss:$16 sps:$4 sm:$0xff]  }
 0x36c   :  { %v920_v22 = vpop.f32.mrf.mxu0  ;;  %v961_v23 = vpop.f32.mrf.mxu1  ;;  %v5720_v18 = vld [vmem:[#allocation5 + $0x44] ss:$16 sps:$4 sm:$0xff]  }
 0x36d   :  { %4569 = vpow2.f32 %v3951_v20  ;;  %v3952_v24 = vmul.f32 -1.442695, %v965_v21  ;;  %v3953_v33 = vmul.f32 -1.442695, %v967_v29 }
 0x36e   :  { %v921_v25 = vpop.f32.mrf.mxu0  ;;  %v962_v28 = vpop.f32.mrf.mxu1 }
 0x36f   :  { %4571 = vpow2.f32 %v3952_v24  ;;  %v6693_v25 = vld [vmem:[#allocation29_spill] sm:$0xff] }
 0x370   :  { %4573 = vtanh.f32 %v966_v32 }
 0x371   :  { %4575 = vpow2.f32 %v3953_v33 }
 0x37a   :  { %v4570_v34 = vpop.eup %4569 }
 0x37b   :  { %v971_v4 = vadd.f32 1.0, %v4570_v34 }
 0x37c   :  { %v4572_v19 = vpop.eup %4571 }
 0x37d   :  { %4577 = vrcp.f32 %v971_v4  ;;  %v977_v53 = vadd.f32 1.0, %v4572_v19  ;;  %v4574_v38 = vpop.eup %4573 }
 0x37e   :  { %v4576_v16 = vpop.eup %4575 }
 0x37f   :  { %4579 = vrcp.f32 %v977_v53  ;;  %v984_v61 = vadd.f32 1.0, %v4576_v16 }
 0x381   :  { %4581 = vrcp.f32 %v984_v61 }
 0x38a   :  { %v4578_v49 = vpop.eup %4577 }
 0x38b   :  { %v988_v1 = vmul.f32 %v4578_v49, %v4574_v38 }
 0x38c   :  { %v4580_v26 = vpop.eup %4579 }
 0x38d   :  { %v987_v8 = vmul.f32 %v4580_v26, %v5607_v17  ;;  %v5696_v17 = vld [vmem:[#allocation5 + $0x84] ss:$16 sps:$4 sm:$0xff]  }
 0x38e   :  { %v4582_v9 = vpop.eup %4581 }
 0x38f   :  { %v5657_v39 = vadd.f32 %v988_v1, %v987_v8 }
 0x391   :  { %4583 = vtanh.f32 %v5657_v39 }
 0x39e   :  { %v4584_v51 = vpop.eup %4583 }
 0x39f   :  { %v5660_v0 = vmul.f32 %v4584_v51, %v4582_v9 }
 0x3a1   :  { %v997_v2 = vpack.c.bf16 %v5660_v0, %v5660_v0 }
 0x3a3   :  { %1031 = vmatmul.mubr.bf16.vlgmr.msra.gmra.mxu0 %v997_v2  ;;  %1072 = vmatmul.mubr.bf16.vlgmr.msra.gmra.mxu1 %v997_v2  ;;  %v5772_v2 = vld [vmem:[#allocation5 + $0x40] ss:$16 sps:$4 sm:$0xff]  }
 0x3a4   :  { %1115 = vmatpush1.bf16.msra.mxu0 %v5664_v59  ;;  %1156 = vmatpush1.bf16.msra.mxu1 %v5667_v7 }
 0x3a5   :  { %1116 = vmatprep.subr.bf16.mxu0 %v5670_v6  ;;  %1157 = vmatprep.subr.bf16.mxu1 %v5673_v50 }
 0x3a6   :  { %1146 = vmatprep.mubr.bf16.mxu0 %v6688_v54  ;;  %1187 = vmatprep.mubr.bf16.mxu1 %v6688_v54 }
 0x3a8   :  { %1117 = vmatpush1.bf16.msra.mxu0 %v5678_v55  ;;  %1158 = vmatpush1.bf16.msra.mxu1 %v5681_v62 }
 0x3a9   :  { %1118 = vmatprep.subr.bf16.mxu0 %v5684_v60  ;;  %1159 = vmatprep.subr.bf16.mxu1 %v5687_v58 }
 0x3ac   :  { %1119 = vmatpush1.bf16.msra.mxu0 %v5690_v52  ;;  %1160 = vmatpush1.bf16.msra.mxu1 %v5693_v5 }
 0x3ad   :  { %1120 = vmatprep.subr.bf16.mxu0 %v5696_v17  ;;  %1161 = vmatprep.subr.bf16.mxu1 %v5699_v3 }
 0x3b0   :  { %1121 = vmatpush1.bf16.msra.mxu0 %v5702_v27  ;;  %1162 = vmatpush1.bf16.msra.mxu1 %v5705_v31 }
 0x3b1   :  { %1122 = vmatprep.subr.bf16.mxu0 %v5708_v12  ;;  %1163 = vmatprep.subr.bf16.mxu1 %v5711_v13 }
 0x3b4   :  { %1123 = vmatpush1.bf16.msra.mxu0 %v5714_v14  ;;  %1164 = vmatpush1.bf16.msra.mxu1 %v5717_v15 }
 0x3b5   :  { %1124 = vmatprep.subr.bf16.mxu0 %v5720_v18  ;;  %1165 = vmatprep.subr.bf16.mxu1 %v5368_v35 }
 0x3b8   :  { %1125 = vmatpush1.bf16.msra.mxu0 %v5372_v36  ;;  %1166 = vmatpush1.bf16.msra.mxu1 %v5374_v37  ;;  %v6690_v37 = vld [vmem:[#allocation28_spill] sm:$0xff] }
 0x3b9   :  { %1126 = vmatprep.subr.bf16.mxu0 %v5386_v40  ;;  %1167 = vmatprep.subr.bf16.mxu1 %v5390_v41 }
 0x3bc   :  { %1127 = vmatpush1.bf16.msra.mxu0 %v5392_v42  ;;  %1168 = vmatpush1.bf16.msra.mxu1 %v5394_v44  ;;  %v6691_v44 = vld [vmem:[#allocation30_spill] sm:$0xff] }
 0x3bd   :  { %1128 = vmatprep.subr.bf16.mxu0 %v5396_v45  ;;  %1169 = vmatprep.subr.bf16.mxu1 %v5399_v46 }
 0x3c0   :  { %1129 = vmatpush1.bf16.msra.mxu0 %v5404_v47  ;;  %1170 = vmatpush1.bf16.msra.mxu1 %v5408_v48  ;;  %v6692_v48 = vld [vmem:[#allocation31_spill] sm:$0xff] }
 0x3c1   :  { %1230 = vmatprep.subr.bf16.mxu0 %v5646_v10  ;;  %1271 = vmatprep.subr.bf16.mxu1 %v5649_v11 }
 0x463   :  { %v1032_v35 = vpop.f32.mrf.mxu0  ;;  %v1073_v36 = vpop.f32.mrf.mxu1 }
 0x464   :  { %v1080_v40 = vadd.f32 %v1032_v35, %v6690_v37  ;;  %v1082_v28 = vadd.f32 %v1073_v36, %v6693_v25  ;;  %v5775_v35 = vld [vmem:[#allocation5 + $0x48] ss:$16 sps:$4 sm:$0xff]   ;;  %v5778_v36 = vld [vmem:[#allocation5 + $0x24] ss:$16 sps:$4 sm:$0xff]   ;;  %v5781_v37 = vld [vmem:[#allocation5 + $0x2c] ss:$16 sps:$4 sm:$0xff]  }
 0x465   :  { %v1034_v41 = vpop.f32.mrf.mxu0  ;;  %v1075_v42 = vpop.f32.mrf.mxu1  ;;  %v6695_v25 = vld [vmem:[#allocation34_spill] sm:$0xff] }
 0x466   :  { %v3954_v20 = vmul.f32 -1.442695, %v1080_v40  ;;  %v1081_v21 = vadd.f32 %v1034_v41, %v6691_v44  ;;  %v1083_v24 = vadd.f32 %v1075_v42, %v6692_v48  ;;  %v5784_v40 = vld [vmem:[#allocation5 + $0x20] ss:$16 sps:$4 sm:$0xff]   ;;  %v5787_v41 = vld [vmem:[#allocation5 + $0x28] ss:$16 sps:$4 sm:$0xff]  }
 0x467   :  { %v1036_v45 = vpop.f32.mrf.mxu0  ;;  %v1077_v22 = vpop.f32.mrf.mxu1  ;;  %v5790_v42 = vld [vmem:[#allocation5 + $0x4] ss:$16 sps:$4 sm:$0xff]   ;;  %v5796_v44 = vld [vmem:[#allocation5] ss:$16 sps:$4 sm:$0xff]  }
 0x468   :  { %4585 = vpow2.f32 %v3954_v20  ;;  %v3955_v46 = vmul.f32 -1.442695, %v1081_v21  ;;  %v3956_v29 = vmul.f32 -1.442695, %v1083_v24  ;;  %v5793_v20 = vld [vmem:[#allocation5 + $0xc] ss:$16 sps:$4 sm:$0xff]  }
 0x469   :  { %v1037_v47 = vpop.f32.mrf.mxu0  ;;  %v1078_v23 = vpop.f32.mrf.mxu1  ;;  %v5799_v21 = vld [vmem:[#allocation5 + $0x8] ss:$16 sps:$4 sm:$0xff]  }
 0x46a   :  { %4587 = vpow2.f32 %v3955_v46  ;;  %v6694_v46 = vld [vmem:[#allocation32_spill] sm:$0xff] }
 0x46b   :  { %4589 = vtanh.f32 %v1082_v28 }
 0x46c   :  { %4591 = vpow2.f32 %v3956_v29 }
 0x475   :  { %v4586_v30 = vpop.eup %4585 }
 0x476   :  { %v1087_v32 = vadd.f32 1.0, %v4586_v30 }
 0x477   :  { %v4588_v33 = vpop.eup %4587 }
 0x478   :  { %4593 = vrcp.f32 %v1087_v32  ;;  %v1093_v34 = vadd.f32 1.0, %v4588_v33  ;;  %v4590_v4 = vpop.eup %4589 }
 0x479   :  { %v4592_v19 = vpop.eup %4591 }
 0x47a   :  { %4595 = vrcp.f32 %v1093_v34  ;;  %v1100_v49 = vadd.f32 1.0, %v4592_v19 }
 0x47c   :  { %4597 = vrcp.f32 %v1100_v49 }
 0x485   :  { %v4594_v53 = vpop.eup %4593 }
 0x486   :  { %v1104_v38 = vmul.f32 %v4594_v53, %v4590_v4  ;;  %v6696_v4 = vld [vmem:[#allocation35_spill] sm:$0xff]  ;;  %v6697_v53 = vld [vmem:[#allocation33_spill] sm:$0xff] }
 0x487   :  { %v4596_v16 = vpop.eup %4595 }
 0x488   :  { %v1103_v1 = vmul.f32 %v4596_v16, %v5657_v39  ;;  %v5769_v39 = vld [vmem:[#allocation5 + $0x4c] ss:$16 sps:$4 sm:$0xff]  }
 0x489   :  { %v4598_v61 = vpop.eup %4597 }
 0x48a   :  { %v5741_v26 = vadd.f32 %v1104_v38, %v1103_v1 }
 0x48c   :  { %4599 = vtanh.f32 %v5741_v26 }
 0x499   :  { %v4600_v8 = vpop.eup %4599 }
 0x49a   :  { %v5744_v9 = vmul.f32 %v4600_v8, %v4598_v61 }
 0x49c   :  { %v1113_v51 = vpack.c.bf16 %v5744_v9, %v5744_v9 }
 0x49e   :  { %1147 = vmatmul.mubr.bf16.vlgmr.msra.gmra.mxu0 %v1113_v51  ;;  %1188 = vmatmul.mubr.bf16.vlgmr.msra.gmra.mxu1 %v1113_v51 }
 0x49f   :  { %1231 = vmatpush1.bf16.msra.mxu0 %v5664_v59  ;;  %1272 = vmatpush1.bf16.msra.mxu1 %v5667_v7 }
 0x4a0   :  { %1232 = vmatprep.subr.bf16.mxu0 %v5670_v6  ;;  %1273 = vmatprep.subr.bf16.mxu1 %v5673_v50 }
 0x4a1   :  { %1262 = vmatprep.mubr.bf16.mxu0 %v6688_v54  ;;  %1303 = vmatprep.mubr.bf16.mxu1 %v6688_v54 }
 0x4a3   :  { %1233 = vmatpush1.bf16.msra.mxu0 %v5678_v55  ;;  %1274 = vmatpush1.bf16.msra.mxu1 %v5681_v62 }
 0x4a4   :  { %1234 = vmatprep.subr.bf16.mxu0 %v5684_v60  ;;  %1275 = vmatprep.subr.bf16.mxu1 %v5687_v58 }
 0x4a7   :  { %1235 = vmatpush1.bf16.msra.mxu0 %v5690_v52  ;;  %1276 = vmatpush1.bf16.msra.mxu1 %v5693_v5 }
 0x4a8   :  { %1236 = vmatprep.subr.bf16.mxu0 %v5696_v17  ;;  %1277 = vmatprep.subr.bf16.mxu1 %v5699_v3 }
 0x4ab   :  { %1237 = vmatpush1.bf16.msra.mxu0 %v5702_v27  ;;  %1278 = vmatpush1.bf16.msra.mxu1 %v5705_v31 }
 0x4ac   :  { %1238 = vmatprep.subr.bf16.mxu0 %v5708_v12  ;;  %1279 = vmatprep.subr.bf16.mxu1 %v5711_v13 }
 0x4af   :  { %1239 = vmatpush1.bf16.msra.mxu0 %v5714_v14  ;;  %1280 = vmatpush1.bf16.msra.mxu1 %v5717_v15 }
 0x4b0   :  { %1240 = vmatprep.subr.bf16.mxu0 %v5720_v18  ;;  %1281 = vmatprep.subr.bf16.mxu1 %v5769_v39 }
 0x4b3   :  { %1241 = vmatpush1.bf16.msra.mxu0 %v5772_v2  ;;  %1282 = vmatpush1.bf16.msra.mxu1 %v5775_v35 }
 0x4b4   :  { %1242 = vmatprep.subr.bf16.mxu0 %v5778_v36  ;;  %1283 = vmatprep.subr.bf16.mxu1 %v5781_v37 }
 0x4b7   :  { %1243 = vmatpush1.bf16.msra.mxu0 %v5784_v40  ;;  %1284 = vmatpush1.bf16.msra.mxu1 %v5787_v41 }
 0x4b8   :  { %1244 = vmatprep.subr.bf16.mxu0 %v5790_v42  ;;  %1285 = vmatprep.subr.bf16.mxu1 %v5793_v20 }
 0x4bb   :  { %1245 = vmatpush1.bf16.msra.mxu0 %v5796_v44  ;;  %1286 = vmatpush1.bf16.msra.mxu1 %v5799_v21 }
 0x4bc   :  { %1346 = vmatprep.subr.bf16.mxu0 %v5646_v10  ;;  %1387 = vmatprep.subr.bf16.mxu1 %v5649_v11 }
 0x55e   :  { %v1148_v45 = vpop.f32.mrf.mxu0  ;;  %v1189_v22 = vpop.f32.mrf.mxu1 }
 0x55f   :  { %v1196_v47 = vadd.f32 %v1148_v45, %v6694_v46  ;;  %v1198_v38 = vadd.f32 %v1189_v22, %v6697_v53 }
 0x560   :  { %v1150_v23 = vpop.f32.mrf.mxu0  ;;  %v1191_v48 = vpop.f32.mrf.mxu1 }
 0x561   :  { %v3957_v24 = vmul.f32 -1.442695, %v1196_v47  ;;  %v1197_v28 = vadd.f32 %v1150_v23, %v6695_v25  ;;  %v1199_v19 = vadd.f32 %v1191_v48, %v6696_v4 }
 0x562   :  { %v1152_v29 = vpop.f32.mrf.mxu0  ;;  %v1193_v30 = vpop.f32.mrf.mxu1 }
 0x563   :  { %4601 = vpow2.f32 %v3957_v24  ;;  %v3958_v32 = vmul.f32 -1.442695, %v1197_v28  ;;  %v3959_v16 = vmul.f32 -1.442695, %v1199_v19 }
 0x564   :  { %v1153_v33 = vpop.f32.mrf.mxu0  ;;  %v1194_v34 = vpop.f32.mrf.mxu1 }
 0x565   :  { %4603 = vpow2.f32 %v3958_v32  ;;  %v6698_v33 = vld [vmem:[#allocation36_spill] sm:$0xff] }
 0x566   :  { %4605 = vtanh.f32 %v1198_v38  ;;  %v6699_v38 = vld [vmem:[#allocation38_spill] sm:$0xff] }
 0x567   :  { %4607 = vpow2.f32 %v3959_v16 }
 0x570   :  { %v4602_v49 = vpop.eup %4601 }
 0x571   :  { %v1203_v1 = vadd.f32 1.0, %v4602_v49 }
 0x572   :  { %v4604_v61 = vpop.eup %4603 }
 0x573   :  { %4609 = vrcp.f32 %v1203_v1  ;;  %v1209_v8 = vadd.f32 1.0, %v4604_v61  ;;  %v4606_v51 = vpop.eup %4605 }
 0x574   :  { %v4608_v45 = vpop.eup %4607 }
 0x575   :  { %4611 = vrcp.f32 %v1209_v8  ;;  %v1216_v24 = vadd.f32 1.0, %v4608_v45  ;;  %v6700_v45 = vld [vmem:[#allocation39_spill] sm:$0xff] }
 0x577   :  { %4613 = vrcp.f32 %v1216_v24 }
 0x580   :  { %v4610_v46 = vpop.eup %4609 }
 0x581   :  { %v1220_v47 = vmul.f32 %v4610_v46, %v4606_v51  ;;  %v6701_v46 = vld [vmem:[#allocation37_spill] sm:$0xff] }
 0x582   :  { %v4612_v23 = vpop.eup %4611 }
 0x583   :  { %v1219_v25 = vmul.f32 %v4612_v23, %v5741_v26 }
 0x584   :  { %v4614_v22 = vpop.eup %4613 }
 0x585   :  { %v5809_v48 = vadd.f32 %v1220_v47, %v1219_v25 }
 0x587   :  { %4615 = vtanh.f32 %v5809_v48 }
 0x594   :  { %v4616_v28 = vpop.eup %4615 }
 0x595   :  { %v5812_v29 = vmul.f32 %v4616_v28, %v4614_v22 }
 0x597   :  { %v1229_v30 = vpack.c.bf16 %v5812_v29, %v5812_v29 }
 0x599   :  { %1263 = vmatmul.mubr.bf16.vlgmr.msra.gmra.mxu0 %v1229_v30  ;;  %1304 = vmatmul.mubr.bf16.vlgmr.msra.gmra.mxu1 %v1229_v30 }
 0x59a   :  { %1347 = vmatpush1.bf16.msra.mxu0 %v5664_v59  ;;  %1388 = vmatpush1.bf16.msra.mxu1 %v5667_v7 }
 0x59b   :  { %1348 = vmatprep.subr.bf16.mxu0 %v5670_v6  ;;  %1389 = vmatprep.subr.bf16.mxu1 %v5673_v50 }
 0x59c   :  { %1378 = vmatprep.mubr.bf16.mxu0 %v6688_v54  ;;  %1419 = vmatprep.mubr.bf16.mxu1 %v6688_v54 }
 0x59e   :  { %1349 = vmatpush1.bf16.msra.mxu0 %v5678_v55  ;;  %1390 = vmatpush1.bf16.msra.mxu1 %v5681_v62 }
 0x59f   :  { %1350 = vmatprep.subr.bf16.mxu0 %v5684_v60  ;;  %1391 = vmatprep.subr.bf16.mxu1 %v5687_v58 }
 0x5a2   :  { %1351 = vmatpush1.bf16.msra.mxu0 %v5690_v52  ;;  %1392 = vmatpush1.bf16.msra.mxu1 %v5693_v5 }
 0x5a3   :  { %1352 = vmatprep.subr.bf16.mxu0 %v5696_v17  ;;  %1393 = vmatprep.subr.bf16.mxu1 %v5699_v3 }
 0x5a6   :  { %1353 = vmatpush1.bf16.msra.mxu0 %v5702_v27  ;;  %1394 = vmatpush1.bf16.msra.mxu1 %v5705_v31 }
 0x5a7   :  { %1354 = vmatprep.subr.bf16.mxu0 %v5708_v12  ;;  %1395 = vmatprep.subr.bf16.mxu1 %v5711_v13 }
 0x5aa   :  { %1355 = vmatpush1.bf16.msra.mxu0 %v5714_v14  ;;  %1396 = vmatpush1.bf16.msra.mxu1 %v5717_v15 }
 0x5ab   :  { %1356 = vmatprep.subr.bf16.mxu0 %v5720_v18  ;;  %1397 = vmatprep.subr.bf16.mxu1 %v5769_v39 }
 0x5ae   :  { %1357 = vmatpush1.bf16.msra.mxu0 %v5772_v2  ;;  %1398 = vmatpush1.bf16.msra.mxu1 %v5775_v35 }
 0x5af   :  { %1358 = vmatprep.subr.bf16.mxu0 %v5778_v36  ;;  %1399 = vmatprep.subr.bf16.mxu1 %v5781_v37 }
 0x5b2   :  { %1359 = vmatpush1.bf16.msra.mxu0 %v5784_v40  ;;  %1400 = vmatpush1.bf16.msra.mxu1 %v5787_v41 }
 0x5b3   :  { %1360 = vmatprep.subr.bf16.mxu0 %v5790_v42  ;;  %1401 = vmatprep.subr.bf16.mxu1 %v5793_v20 }
 0x5b6   :  { %1361 = vmatpush1.bf16.msra.mxu0 %v5796_v44  ;;  %1402 = vmatpush1.bf16.msra.mxu1 %v5799_v21 }
 0x5b7   :  { %1462 = vmatprep.subr.bf16.mxu0 %v5646_v10  ;;  %1503 = vmatprep.subr.bf16.mxu1 %v5649_v11 }
 0x659   :  { %v1264_v26 = vpop.f32.mrf.mxu0  ;;  %v1305_v32 = vpop.f32.mrf.mxu1 }
 0x65a   :  { %v1312_v34 = vadd.f32 %v1264_v26, %v6698_v33  ;;  %v1314_v11 = vadd.f32 %v1305_v32, %v6701_v46  ;;  %v4404_v46 = vld [vmem:[#allocation7 + $0xe8] ss:$16 sps:$4 sm:$0xff]  }
 0x65b   :  { %v1266_v4 = vpop.f32.mrf.mxu0  ;;  %v1307_v19 = vpop.f32.mrf.mxu1 }
 0x65c   :  { %v3960_v53 = vmul.f32 -1.442695, %v1312_v34  ;;  %v1313_v16 = vadd.f32 %v1266_v4, %v6699_v38  ;;  %v1315_v10 = vadd.f32 %v1307_v19, %v6700_v45 }
 0x65d   :  { %v1268_v49 = vpop.f32.mrf.mxu0  ;;  %v1309_v1 = vpop.f32.mrf.mxu1 }
 0x65e   :  { %4617 = vpow2.f32 %v3960_v53  ;;  %v3961_v61 = vmul.f32 -1.442695, %v1313_v16  ;;  %v3962_v47 = vmul.f32 -1.442695, %v1315_v10  ;;  %v4401_v10 = vld [vmem:[#allocation7 + $0xe0] ss:$16 sps:$4 sm:$0xff]  }
 0x65f   :  { %v1269_v8 = vpop.f32.mrf.mxu0  ;;  %v1310_v51 = vpop.f32.mrf.mxu1 }
 0x660   :  { %4619 = vpow2.f32 %v3961_v61 }
 0x661   :  { %4621 = vtanh.f32 %v1314_v11 }
 0x662   :  { %4623 = vpow2.f32 %v3962_v47  ;;  %v4409_v47 = vld [vmem:[#allocation7 + $0xc4] ss:$16 sps:$4 sm:$0xff]  }
 0x66b   :  { %v4618_v23 = vpop.eup %4617 }
 0x66c   :  { %v1319_v24 = vadd.f32 1.0, %v4618_v23  ;;  %v4412_v23 = vld [vmem:[#allocation7 + $0xcc] ss:$16 sps:$4 sm:$0xff]  }
 0x66d   :  { %v4620_v25 = vpop.eup %4619 }
 0x66e   :  { %4625 = vrcp.f32 %v1319_v24  ;;  %v1325_v22 = vadd.f32 1.0, %v4620_v25  ;;  %v4622_v28 = vpop.eup %4621  ;;  %v4407_v24 = vld [vmem:[#allocation7 + $0xc0] ss:$16 sps:$4 sm:$0xff]   ;;  %v4410_v25 = vld [vmem:[#allocation7 + $0xc8] ss:$16 sps:$4 sm:$0xff]  }
 0x66f   :  { %v4624_v30 = vpop.eup %4623 }
 0x670   :  { %4627 = vrcp.f32 %v1325_v22  ;;  %v1332_v4 = vadd.f32 1.0, %v4624_v30  ;;  %v4415_v22 = vld [vmem:[#allocation7 + $0xa4] ss:$16 sps:$4 sm:$0xff]   ;;  %v4413_v30 = vld [vmem:[#allocation7 + $0xa0] ss:$16 sps:$4 sm:$0xff]  }
 0x672   :  { %4629 = vrcp.f32 %v1332_v4  ;;  %v4419_v4 = vld [vmem:[#allocation7 + $0x80] ss:$16 sps:$4 sm:$0xff]  }
 0x67b   :  { %v4626_v26 = vpop.eup %4625 }
 0x67c   :  { %v1336_v33 = vmul.f32 %v4626_v26, %v4622_v28  ;;  %v4418_v28 = vld [vmem:[#allocation7 + $0xac] ss:$16 sps:$4 sm:$0xff]   ;;  %v4416_v26 = vld [vmem:[#allocation7 + $0xa8] ss:$16 sps:$4 sm:$0xff]  }
 0x67d   :  { %v4628_v34 = vpop.eup %4627 }
 0x67e   :  { %v1335_v53 = vmul.f32 %v4628_v34, %v5809_v48  ;;  %v4424_v34 = vld [vmem:[#allocation7 + $0x8c] ss:$16 sps:$4 sm:$0xff]  }
 0x67f   :  { %v4630_v32 = vpop.eup %4629 }
 0x680   :  { %v5855_v19 = vadd.f32 %v1336_v33, %v1335_v53  ;;  %v4421_v33 = vld [vmem:[#allocation7 + $0x84] ss:$16 sps:$4 sm:$0xff]   ;;  %v4422_v53 = vld [vmem:[#allocation7 + $0x88] ss:$16 sps:$4 sm:$0xff]  }
 0x682   :  { %4631 = vtanh.f32 %v5855_v19 }
 0x68f   :  { %v4632_v38 = vpop.eup %4631 }
 0x690   :  { %v5858_v16 = vmul.f32 %v4632_v38, %v4630_v32  ;;  %v4430_v32 = vld [vmem:[#allocation7 + $0x6c] ss:$16 sps:$4 sm:$0xff]   ;;  %v4425_v38 = vld [vmem:[#allocation7 + $0x60] ss:$16 sps:$4 sm:$0xff]  }
 0x692   :  { %v1345_v49 = vpack.c.bf16 %v5858_v16, %v5858_v16 }
 0x694   :  { %1379 = vmatmul.mubr.bf16.vlgmr.msra.gmra.mxu0 %v1345_v49  ;;  %1420 = vmatmul.mubr.bf16.vlgmr.msra.gmra.mxu1 %v1345_v49  ;;  %v4428_v49 = vld [vmem:[#allocation7 + $0x68] ss:$16 sps:$4 sm:$0xff]  }
 0x695   :  { %1463 = vmatpush1.bf16.msra.mxu0 %v5664_v59  ;;  %1504 = vmatpush1.bf16.msra.mxu1 %v5667_v7  ;;  %v4403_v59 = vld [vmem:[#allocation7 + $0xe4] ss:$16 sps:$4 sm:$0xff]   ;;  %v4406_v7 = vld [vmem:[#allocation7 + $0xec] ss:$16 sps:$4 sm:$0xff]  }
 0x696   :  { %1464 = vmatprep.subr.bf16.mxu0 %v5670_v6  ;;  %1505 = vmatprep.subr.bf16.mxu1 %v5673_v50 }
 0x697   :  { %1494 = vmatprep.mubr.bf16.mxu0 %v6688_v54  ;;  %1535 = vmatprep.mubr.bf16.mxu1 %v6688_v54 }
 0x699   :  { %1465 = vmatpush1.bf16.msra.mxu0 %v5678_v55  ;;  %1506 = vmatpush1.bf16.msra.mxu1 %v5681_v62  ;;  %v6702_v55 = vld [vmem:[#allocation40_spill] sm:$0xff] }
 0x69a   :  { %1466 = vmatprep.subr.bf16.mxu0 %v5684_v60  ;;  %1507 = vmatprep.subr.bf16.mxu1 %v5687_v58 }
 0x69d   :  { %1467 = vmatpush1.bf16.msra.mxu0 %v5690_v52  ;;  %1508 = vmatpush1.bf16.msra.mxu1 %v5693_v5  ;;  %v6703_v5 = vld [vmem:[#allocation42_spill] sm:$0xff] }
 0x69e   :  { %1468 = vmatprep.subr.bf16.mxu0 %v5696_v17  ;;  %1509 = vmatprep.subr.bf16.mxu1 %v5699_v3 }
 0x6a1   :  { %1469 = vmatpush1.bf16.msra.mxu0 %v5702_v27  ;;  %1510 = vmatpush1.bf16.msra.mxu1 %v5705_v31 }
 0x6a2   :  { %1470 = vmatprep.subr.bf16.mxu0 %v5708_v12  ;;  %1511 = vmatprep.subr.bf16.mxu1 %v5711_v13 }
 0x6a5   :  { %1471 = vmatpush1.bf16.msra.mxu0 %v5714_v14  ;;  %1512 = vmatpush1.bf16.msra.mxu1 %v5717_v15  ;;  %v6704_v14 = vld [vmem:[#allocation43_spill] sm:$0xff] }
 0x6a6   :  { %1472 = vmatprep.subr.bf16.mxu0 %v5720_v18  ;;  %1513 = vmatprep.subr.bf16.mxu1 %v5769_v39  ;;  %v6705_v18 = vld [vmem:[#allocation41_spill] sm:$0xff] }
 0x6a9   :  { %1473 = vmatpush1.bf16.msra.mxu0 %v5772_v2  ;;  %1514 = vmatpush1.bf16.msra.mxu1 %v5775_v35 }
 0x6aa   :  { %1474 = vmatprep.subr.bf16.mxu0 %v5778_v36  ;;  %1515 = vmatprep.subr.bf16.mxu1 %v5781_v37 }
 0x6ad   :  { %1475 = vmatpush1.bf16.msra.mxu0 %v5784_v40  ;;  %1516 = vmatpush1.bf16.msra.mxu1 %v5787_v41 }
 0x6ae   :  { %1476 = vmatprep.subr.bf16.mxu0 %v5790_v42  ;;  %1517 = vmatprep.subr.bf16.mxu1 %v5793_v20 }
 0x6b1   :  { %1477 = vmatpush1.bf16.msra.mxu0 %v5796_v44  ;;  %1518 = vmatpush1.bf16.msra.mxu1 %v5799_v21 }
 0x6b2   :  { %1822 = vmatprep.subr.bf16.mxu0 %v4403_v59  ;;  %1895 = vmatprep.subr.bf16.mxu1 %v4406_v7  ;;  %v4433_v59 = vld [vmem:[#allocation7 + $0x44] ss:$16 sps:$4 sm:$0xff]   ;;  %v4436_v7 = vld [vmem:[#allocation7 + $0x4c] ss:$16 sps:$4 sm:$0xff]  }
 0x754   :  { %v1380_v6 = vpop.f32.mrf.mxu0  ;;  %v1421_v50 = vpop.f32.mrf.mxu1 }
 0x755   :  { %v1428_v62 = vadd.f32 %v1380_v6, %v6702_v55  ;;  %v1430_v39 = vadd.f32 %v1421_v50, %v6705_v18  ;;  %v4431_v6 = vld [vmem:[#allocation7 + $0x40] ss:$16 sps:$4 sm:$0xff]   ;;  %v4434_v50 = vld [vmem:[#allocation7 + $0x48] ss:$16 sps:$4 sm:$0xff]   ;;  %v4439_v55 = vld [vmem:[#allocation7 + $0x24] ss:$16 sps:$4 sm:$0xff]  }
 0x756   :  { %v1382_v60 = vpop.f32.mrf.mxu0  ;;  %v1423_v58 = vpop.f32.mrf.mxu1  ;;  %v5946_v18 = vld [vmem:[#allocation8 + $0xac] ss:$16 sps:$4 sm:$0xff]  }
 0x757   :  { %v3963_v52 = vmul.f32 -1.442695, %v1428_v62  ;;  %v1429_v17 = vadd.f32 %v1382_v60, %v6703_v5  ;;  %v1431_v15 = vadd.f32 %v1423_v58, %v6704_v14  ;;  %v4442_v62 = vld [vmem:[#allocation7 + $0x2c] ss:$16 sps:$4 sm:$0xff]   ;;  %v4437_v60 = vld [vmem:[#allocation7 + $0x20] ss:$16 sps:$4 sm:$0xff]  }
 0x758   :  { %v1384_v3 = vpop.f32.mrf.mxu0  ;;  %v1425_v27 = vpop.f32.mrf.mxu1  ;;  %v4440_v58 = vld [vmem:[#allocation7 + $0x28] ss:$16 sps:$4 sm:$0xff]   ;;  %v4448_v5 = vld [vmem:[#allocation7 + $0xc] ss:$16 sps:$4 sm:$0xff]  }
 0x759   :  { %4633 = vpow2.f32 %v3963_v52  ;;  %v3964_v31 = vmul.f32 -1.442695, %v1429_v17  ;;  %v3965_v2 = vmul.f32 -1.442695, %v1431_v15  ;;  %v4445_v52 = vld [vmem:[#allocation7 + $0x4] ss:$16 sps:$4 sm:$0xff]   ;;  %v1637_v27 = vpack.c.bf16 %v5610_v63, %v5563_v56 }
 0x75a   :  { %v1385_v12 = vpop.f32.mrf.mxu0  ;;  %v1426_v13 = vpop.f32.mrf.mxu1  ;;  %v4443_v17 = vld [vmem:[#allocation7] ss:$16 sps:$4 sm:$0xff]   ;;  %v4446_v3 = vld [vmem:[#allocation7 + $0x8] ss:$16 sps:$4 sm:$0xff]   ;;  %v5920_v56 = vld [vmem:[#allocation8 + $0xe4] ss:$16 sps:$4 sm:$0xff]  }
 0x75b   :  { %4635 = vpow2.f32 %v3964_v31  ;;  %v1638_v31 = vpack.c.bf16 %v5744_v9, %v5660_v0  ;;  %v1639_v12 = vpack.c.bf16 %v5858_v16, %v5812_v29  ;;  %v5922_v63 = vld [vmem:[#allocation8 + $0xec] ss:$16 sps:$4 sm:$0xff]   ;;  %v5924_v0 = vld [vmem:[#allocation8 + $0xe0] ss:$16 sps:$4 sm:$0xff]   ;;  %v5926_v9 = vld [vmem:[#allocation8 + $0xe8] ss:$16 sps:$4 sm:$0xff]  }
 0x75c   :  { %4637 = vtanh.f32 %v1430_v39  ;;  %v5932_v29 = vld [vmem:[#allocation8 + $0xc4] ss:$16 sps:$4 sm:$0xff]   ;;  %v5934_v16 = vld [vmem:[#allocation8 + $0xcc] ss:$16 sps:$4 sm:$0xff]   ;;  %v5936_v13 = vld [vmem:[#allocation8 + $0xc0] ss:$16 sps:$4 sm:$0xff]  }
 0x75d   :  { %4639 = vpow2.f32 %v3965_v2  ;;  %v5938_v14 = vld [vmem:[#allocation8 + $0xc8] ss:$16 sps:$4 sm:$0xff]   ;;  %v5944_v15 = vld [vmem:[#allocation8 + $0xa4] ss:$16 sps:$4 sm:$0xff]   ;;  %v5948_v39 = vld [vmem:[#allocation8 + $0xa0] ss:$16 sps:$4 sm:$0xff]  }
 0x75e   :  { %v5950_v2 = vld [vmem:[#allocation8 + $0xa8] ss:$16 sps:$4 sm:$0xff]  }
 0x766   :  { %v4634_v35 = vpop.eup %4633 }
 0x767   :  { %v1435_v36 = vadd.f32 1.0, %v4634_v35  ;;  %v5956_v35 = vld [vmem:[#allocation8 + $0x84] ss:$16 sps:$4 sm:$0xff]  }
 0x768   :  { %v4636_v37 = vpop.eup %4635 }
 0x769   :  { %4641 = vrcp.f32 %v1435_v36  ;;  %v1441_v40 = vadd.f32 1.0, %v4636_v37  ;;  %v4638_v41 = vpop.eup %4637  ;;  %v5958_v36 = vld [vmem:[#allocation8 + $0x8c] ss:$16 sps:$4 sm:$0xff]   ;;  %v5960_v37 = vld [vmem:[#allocation8 + $0x80] ss:$16 sps:$4 sm:$0xff]  }
 0x76a   :  { %v4640_v42 = vpop.eup %4639 }
 0x76b   :  { %4643 = vrcp.f32 %v1441_v40  ;;  %v1448_v48 = vadd.f32 1.0, %v4640_v42  ;;  %v5962_v40 = vld [vmem:[#allocation8 + $0x88] ss:$16 sps:$4 sm:$0xff]   ;;  %v5970_v42 = vld [vmem:[#allocation8 + $0x6c] ss:$16 sps:$4 sm:$0xff]  }
 0x76d   :  { %4645 = vrcp.f32 %v1448_v48  ;;  %v5982_v48 = vld [vmem:[#allocation8 + $0x4c] ss:$16 sps:$4 sm:$0xff]  }
 0x776   :  { %v4642_v20 = vpop.eup %4641 }
 0x777   :  { %v1452_v44 = vmul.f32 %v4642_v20, %v4638_v41  ;;  %v5968_v41 = vld [vmem:[#allocation8 + $0x64] ss:$16 sps:$4 sm:$0xff]   ;;  %v5972_v20 = vld [vmem:[#allocation8 + $0x60] ss:$16 sps:$4 sm:$0xff]  }
 0x778   :  { %v4644_v21 = vpop.eup %4643 }
 0x779   :  { %v1451_v1 = vmul.f32 %v4644_v21, %v5855_v19  ;;  %v4427_v19 = vld [vmem:[#allocation7 + $0x64] ss:$16 sps:$4 sm:$0xff]  }
 0x77a   :  { %v4646_v8 = vpop.eup %4645  ;;  %v5980_v21 = vld [vmem:[#allocation8 + $0x44] ss:$16 sps:$4 sm:$0xff]  }
 0x77b   :  { %v5899_v61 = vadd.f32 %v1452_v44, %v1451_v1  ;;  %v5974_v44 = vld [vmem:[#allocation8 + $0x68] ss:$16 sps:$4 sm:$0xff]   ;;  %v5984_v1 = vld [vmem:[#allocation8 + $0x40] ss:$16 sps:$4 sm:$0xff]  }
 0x77d   :  { %4647 = vtanh.f32 %v5899_v61 }
 0x78a   :  { %v4648_v51 = vpop.eup %4647 }
 0x78b   :  { %v5902_v45 = vmul.f32 %v4648_v51, %v4646_v8  ;;  %v5986_v8 = vld [vmem:[#allocation8 + $0x48] ss:$16 sps:$4 sm:$0xff]   ;;  %v5992_v51 = vld [vmem:[#allocation8 + $0x24] ss:$16 sps:$4 sm:$0xff]  }
 0x78d   :  { %v1461_v11 = vpack.c.bf16 %v5902_v45, %v5902_v45 }
 0x78f   :  { %1495 = vmatmul.mubr.bf16.vlgmr.msra.gmra.mxu0 %v1461_v11  ;;  %1536 = vmatmul.mubr.bf16.vlgmr.msra.gmra.mxu1 %v1461_v11  ;;  %v5998_v11 = vld [vmem:[#allocation8 + $0x28] ss:$16 sps:$4 sm:$0xff]  }
 0x790   :  { %1823 = vmatpush1.bf16.msra.mxu0 %v4401_v10  ;;  %1896 = vmatpush1.bf16.msra.mxu1 %v4404_v46  ;;  %v5994_v10 = vld [vmem:[#allocation8 + $0x2c] ss:$16 sps:$4 sm:$0xff]   ;;  %v5996_v46 = vld [vmem:[#allocation8 + $0x20] ss:$16 sps:$4 sm:$0xff]  }
 0x791   :  { %1824 = vmatprep.subr.bf16.mxu0 %v4409_v47  ;;  %1897 = vmatprep.subr.bf16.mxu1 %v4412_v23  ;;  %v6000_v47 = vld [vmem:[#allocation8 + $0x4] ss:$16 sps:$4 sm:$0xff]   ;;  %v6004_v23 = vld [vmem:[#allocation8 + $0xc] ss:$16 sps:$4 sm:$0xff]  }
 0x792   :  { %1854 = vmatprep.mubr.bf16.mxu0 %v6688_v54  ;;  %1927 = vmatprep.mubr.bf16.mxu1 %v6688_v54 }
 0x794   :  { %1825 = vmatpush1.bf16.msra.mxu0 %v4407_v24  ;;  %1898 = vmatpush1.bf16.msra.mxu1 %v4410_v25  ;;  %v6008_v24 = vld [vmem:[#allocation8] ss:$16 sps:$4 sm:$0xff]   ;;  %v6010_v25 = vld [vmem:[#allocation8 + $0x8] ss:$16 sps:$4 sm:$0xff]  }
 0x795   :  { %1826 = vmatprep.subr.bf16.mxu0 %v4415_v22  ;;  %1899 = vmatprep.subr.bf16.mxu1 %v4418_v28 }
 0x798   :  { %1827 = vmatpush1.bf16.msra.mxu0 %v4413_v30  ;;  %1900 = vmatpush1.bf16.msra.mxu1 %v4416_v26  ;;  %v6706_v30 = vld [vmem:[#allocation44_spill] sm:$0xff] }
 0x799   :  { %1828 = vmatprep.subr.bf16.mxu0 %v4421_v33  ;;  %1901 = vmatprep.subr.bf16.mxu1 %v4424_v34 }
 0x79c   :  { %1829 = vmatpush1.bf16.msra.mxu0 %v4419_v4  ;;  %1902 = vmatpush1.bf16.msra.mxu1 %v4422_v53 }
 0x79d   :  { %1830 = vmatprep.subr.bf16.mxu0 %v4427_v19  ;;  %1903 = vmatprep.subr.bf16.mxu1 %v4430_v32 }
 0x7a0   :  { %1831 = vmatpush1.bf16.msra.mxu0 %v4425_v38  ;;  %1904 = vmatpush1.bf16.msra.mxu1 %v4428_v49 }
 0x7a1   :  { %1832 = vmatprep.subr.bf16.mxu0 %v4433_v59  ;;  %1905 = vmatprep.subr.bf16.mxu1 %v4436_v7 }
 0x7a4   :  { %1833 = vmatpush1.bf16.msra.mxu0 %v4431_v6  ;;  %1906 = vmatpush1.bf16.msra.mxu1 %v4434_v50  ;;  %v6707_v6 = vld [vmem:[#allocation45_spill] sm:$0xff] }
 0x7a5   :  { %1834 = vmatprep.subr.bf16.mxu0 %v4439_v55  ;;  %1907 = vmatprep.subr.bf16.mxu1 %v4442_v62 }
 0x7a8   :  { %1835 = vmatpush1.bf16.msra.mxu0 %v4437_v60  ;;  %1908 = vmatpush1.bf16.msra.mxu1 %v4440_v58 }
 0x7a9   :  { %1836 = vmatprep.subr.bf16.mxu0 %v4445_v52  ;;  %1909 = vmatprep.subr.bf16.mxu1 %v4448_v5 }
 0x7ac   :  { %1837 = vmatpush1.bf16.msra.mxu0 %v4443_v17  ;;  %1910 = vmatpush1.bf16.msra.mxu1 %v4446_v3 }
 0x7ad   :  { %2164 = vmatprep.subr.bf16.mxu0 %v5920_v56  ;;  %2205 = vmatprep.subr.bf16.mxu1 %v5922_v63 }
 0x7af   :  { %1855 = vmatmul.mubr.bf16.vlgmr.msra.gmra.mxu0 %v1637_v27  ;;  %1928 = vmatmul.mubr.bf16.vlgmr.msra.gmra.mxu1 %v1637_v27 }
 0x7b0   :  { %1864 = vmatprep.mubr.bf16.mxu0 %v6688_v54  ;;  %1937 = vmatprep.mubr.bf16.mxu1 %v6688_v54 }
 0x7b1   :  { %2165 = vmatpush1.bf16.msra.mxu0 %v5924_v0  ;;  %2206 = vmatpush1.bf16.msra.mxu1 %v5926_v9 }
 0x7b2   :  { %2166 = vmatprep.subr.bf16.mxu0 %v5932_v29  ;;  %2207 = vmatprep.subr.bf16.mxu1 %v5934_v16 }
 0x7b5   :  { %2167 = vmatpush1.bf16.msra.mxu0 %v5936_v13  ;;  %2208 = vmatpush1.bf16.msra.mxu1 %v5938_v14 }
 0x7b6   :  { %2168 = vmatprep.subr.bf16.mxu0 %v5944_v15  ;;  %2209 = vmatprep.subr.bf16.mxu1 %v5946_v18 }
 0x7b7   :  { %1865 = vmatmul.mubr.bf16.gmra.mxu0 %v1638_v31  ;;  %1938 = vmatmul.mubr.bf16.gmra.mxu1 %v1638_v31 }
 0x7b8   :  { %1874 = vmatprep.mubr.bf16.mxu0 %v6688_v54  ;;  %1947 = vmatprep.mubr.bf16.mxu1 %v6688_v54 }
 0x7b9   :  { %2169 = vmatpush1.bf16.msra.mxu0 %v5948_v39  ;;  %2210 = vmatpush1.bf16.msra.mxu1 %v5950_v2 }
 0x7ba   :  { %2170 = vmatprep.subr.bf16.mxu0 %v5956_v35  ;;  %2211 = vmatprep.subr.bf16.mxu1 %v5958_v36 }
 0x7bd   :  { %2171 = vmatpush1.bf16.msra.mxu0 %v5960_v37  ;;  %2212 = vmatpush1.bf16.msra.mxu1 %v5962_v40 }
 0x7be   :  { %2172 = vmatprep.subr.bf16.mxu0 %v5968_v41  ;;  %2213 = vmatprep.subr.bf16.mxu1 %v5970_v42 }
 0x7bf   :  { %1875 = vmatmul.mubr.bf16.gmra.mxu0 %v1639_v12  ;;  %1948 = vmatmul.mubr.bf16.gmra.mxu1 %v1639_v12 }
 0x7c0   :  { %1884 = vmatprep.mubr.bf16.mxu0 %v6688_v54  ;;  %1957 = vmatprep.mubr.bf16.mxu1 %v6688_v54 }
 0x7c1   :  { %2173 = vmatpush1.bf16.msra.mxu0 %v5972_v20  ;;  %2214 = vmatpush1.bf16.msra.mxu1 %v5974_v44 }
 0x7c2   :  { %2174 = vmatprep.subr.bf16.mxu0 %v5980_v21  ;;  %2215 = vmatprep.subr.bf16.mxu1 %v5982_v48 }
 0x7c5   :  { %2175 = vmatpush1.bf16.msra.mxu0 %v5984_v1  ;;  %2216 = vmatpush1.bf16.msra.mxu1 %v5986_v8 }
 0x7c6   :  { %2176 = vmatprep.subr.bf16.mxu0 %v5992_v51  ;;  %2217 = vmatprep.subr.bf16.mxu1 %v5994_v10 }
 0x7c9   :  { %2177 = vmatpush1.bf16.msra.mxu0 %v5996_v46  ;;  %2218 = vmatpush1.bf16.msra.mxu1 %v5998_v11 }
 0x7ca   :  { %2178 = vmatprep.subr.bf16.mxu0 %v6000_v47  ;;  %2219 = vmatprep.subr.bf16.mxu1 %v6004_v23 }
 0x7cd   :  { %2179 = vmatpush1.bf16.msra.mxu0 %v6008_v24  ;;  %2220 = vmatpush1.bf16.msra.mxu1 %v6010_v25 }
 0x7ce   :  { %2279 = vmatprep.subr.bf16.mxu0 %v5920_v56  ;;  %2320 = vmatprep.subr.bf16.mxu1 %v5922_v63 }
 0x84f   :  { %v1496_v22 = vpop.f32.mrf.mxu0  ;;  %v1537_v28 = vpop.f32.mrf.mxu1 }
 0x850   :  { %v1544_v26 = vadd.f32 %v1496_v22, %v6706_v30  ;;  %v1546_v50 = vadd.f32 %v1537_v28, %v6707_v6 }
 0x851   :  { %v1498_v33 = vpop.f32.mrf.mxu0  ;;  %v1539_v34 = vpop.f32.mrf.mxu1 }
 0x852   :  { %v3966_v4 = vmul.f32 -1.442695, %v1544_v26  ;;  %v1545_v53 = vadd.f32 %v1498_v33, %v5550_v57  ;;  %v1547_v7 = vadd.f32 %v1539_v34, %v5553_v43 }
 0x853   :  { %v1500_v19 = vpop.f32.mrf.mxu0  ;;  %v1541_v32 = vpop.f32.mrf.mxu1 }
 0x854   :  { %4649 = vpow2.f32 %v3966_v4  ;;  %v3967_v38 = vmul.f32 -1.442695, %v1545_v53  ;;  %v3968_v55 = vmul.f32 -1.442695, %v1547_v7 }
 0x855   :  { %v1501_v49 = vpop.f32.mrf.mxu0  ;;  %v1542_v59 = vpop.f32.mrf.mxu1 }
 0x856   :  { %4651 = vpow2.f32 %v3967_v38 }
 0x857   :  { %4653 = vtanh.f32 %v1546_v50 }
 0x858   :  { %4655 = vpow2.f32 %v3968_v55 }
 0x861   :  { %v4650_v62 = vpop.eup %4649 }
 0x862   :  { %v1551_v60 = vadd.f32 1.0, %v4650_v62 }
 0x863   :  { %v4652_v58 = vpop.eup %4651 }
 0x864   :  { %4657 = vrcp.f32 %v1551_v60  ;;  %v1557_v52 = vadd.f32 1.0, %v4652_v58  ;;  %v4654_v57 = vpop.eup %4653 }
 0x865   :  { %v4656_v5 = vpop.eup %4655 }
 0x866   :  { %4659 = vrcp.f32 %v1557_v52  ;;  %v1564_v31 = vadd.f32 1.0, %v4656_v5 }
 0x868   :  { %4661 = vrcp.f32 %v1564_v31  ;;  %v1636_v31 = vld [vmem:[%s6640_s6] sm:$0xf] }
 0x871   :  { %v4658_v17 = vpop.eup %4657 }
 0x872   :  { %v1568_v3 = vmul.f32 %v4658_v17, %v4654_v57 }
 0x873   :  { %v4660_v27 = vpop.eup %4659 }
 0x874   :  { %v1567_v12 = vmul.f32 %v4660_v27, %v5899_v61  ;;  %v1856_v61 = vpop.f32.mrf.mxu0 }
 0x875   :  { %v4662_v22 = vpop.eup %4661 }
 0x876   :  { %v1569_v43 = vadd.f32 %v1568_v3, %v1567_v12  ;;  %v1858_v33 = vpop.f32.mrf.mxu0 }
 0x878   :  { %4663 = vtanh.f32 %v1569_v43  ;;  %v6062_v4 = vpop.f32.mrf.mxu0 }
 0x87a   :  { %v6066_v19 = vpop.f32.mrf.mxu0 }
 0x87c   :  { %v6070_v38 = vpop.f32.mrf.mxu0 }
 0x87e   :  { %v6074_v59 = vpop.f32.mrf.mxu0 }
 0x880   :  { %v6078_v6 = vpop.f32.mrf.mxu0 }
 0x881   :  { %6709 = vst [vmem:[#allocation28_spill] sm:$0xff] %v6078_v6 }
 0x882   :  { %v6082_v55 = vpop.f32.mrf.mxu0 }
 0x883   :  { %6711 = vst [vmem:[#allocation31_spill] sm:$0xff] %v6082_v55 }
 0x884   :  { %v6086_v60 = vpop.f32.mrf.mxu0 }
 0x885   :  { %v4664_v28 = vpop.eup %4663  ;;  %6713 = vst [vmem:[#allocation32_spill] sm:$0xff] %v6086_v60 }
 0x886   :  { %v1571_v30 = vmul.f32 %v4664_v28, %v4662_v22  ;;  %v6090_v52 = vpop.f32.mrf.mxu0 }
 0x887   :  { %6715 = vst [vmem:[#allocation35_spill] sm:$0xff] %v6090_v52 }
 0x888   :  { %v1640_v26 = vpack.c.bf16 %v1571_v30, %v5902_v45  ;;  %v1929_v45 = vpop.f32.mrf.mxu1  ;;  %v6094_v5 = vpop.f32.mrf.mxu0  ;;  %v6725_v30 = vld [vmem:[#allocation26_spill] sm:$0xff] }
 0x889   :  { %6717 = vst [vmem:[#allocation36_spill] sm:$0xff] %v6094_v5  ;;  %v6732_v6 = vsub.s32 3, %v6725_v30 }
 0x88a   :  { %1885 = vmatmul.mubr.bf16.gmra.mxu0 %v1640_v26  ;;  %1958 = vmatmul.mubr.bf16.gmra.mxu1 %v1640_v26  ;;  %v1931_v34 = vpop.f32.mrf.mxu1  ;;  %v6098_v3 = vpop.f32.mrf.mxu0  ;;  %v6726_v26 = vsub.s32 0, %v6725_v30 }
 0x88b   :  { %2196 = vmatprep.mubr.bf16.mxu0 %v6688_v54  ;;  %2237 = vmatprep.mubr.bf16.mxu1 %v6688_v54  ;;  %6719 = vst [vmem:[#allocation39_spill] sm:$0xff] %v6098_v3 }
 0x88c   :  { %v6064_v53 = vpop.f32.mrf.mxu1  ;;  %v6115_v5 = vrot.slane %v1636_v31, %v6726_v26 }
 0x88e   :  { %v6068_v32 = vpop.f32.mrf.mxu1 }
 0x890   :  { %v6072_v49 = vpop.f32.mrf.mxu1 }
 0x891   :  { %6708 = vst [vmem:[#allocation27_spill] sm:$0xff] %v6072_v49 }
 0x892   :  { %2197 = vmatmul.mubr.bf16.vlgmr.msra.gmra.mxu0 %v6688_v54  ;;  %2238 = vmatmul.mubr.bf16.vlgmr.msra.gmra.mxu1 %v6688_v54  ;;  %v6076_v7 = vpop.f32.mrf.mxu1 }
 0x893   :  { %2280 = vmatpush1.bf16.msra.mxu0 %v5924_v0  ;;  %2321 = vmatpush1.bf16.msra.mxu1 %v5926_v9 }
 0x894   :  { %2281 = vmatprep.subr.bf16.mxu0 %v5932_v29  ;;  %2322 = vmatprep.subr.bf16.mxu1 %v5934_v16  ;;  %v6080_v50 = vpop.f32.mrf.mxu1 }
 0x895   :  { %2311 = vmatprep.mubr.bf16.mxu0 %v6688_v54  ;;  %2352 = vmatprep.mubr.bf16.mxu1 %v6688_v54  ;;  %6710 = vst [vmem:[#allocation30_spill] sm:$0xff] %v6080_v50 }
 0x896   :  { %v6084_v62 = vpop.f32.mrf.mxu1 }
 0x897   :  { %2282 = vmatpush1.bf16.msra.mxu0 %v5936_v13  ;;  %2323 = vmatpush1.bf16.msra.mxu1 %v5938_v14  ;;  %6712 = vst [vmem:[#allocation29_spill] sm:$0xff] %v6084_v62 }
 0x898   :  { %2283 = vmatprep.subr.bf16.mxu0 %v5944_v15  ;;  %2324 = vmatprep.subr.bf16.mxu1 %v5946_v18  ;;  %v6088_v58 = vpop.f32.mrf.mxu1 }
 0x899   :  { %6714 = vst [vmem:[#allocation34_spill] sm:$0xff] %v6088_v58 }
 0x89a   :  { %v6092_v57 = vpop.f32.mrf.mxu1 }
 0x89b   :  { %2284 = vmatpush1.bf16.msra.mxu0 %v5948_v39  ;;  %2325 = vmatpush1.bf16.msra.mxu1 %v5950_v2  ;;  %6716 = vst [vmem:[#allocation33_spill] sm:$0xff] %v6092_v57 }
 0x89c   :  { %2285 = vmatprep.subr.bf16.mxu0 %v5956_v35  ;;  %2326 = vmatprep.subr.bf16.mxu1 %v5958_v36  ;;  %v6096_v17 = vpop.f32.mrf.mxu1 }
 0x89d   :  { %6718 = vst [vmem:[#allocation38_spill] sm:$0xff] %v6096_v17 }
 0x89e   :  { %v6100_v27 = vpop.f32.mrf.mxu1 }
 0x89f   :  { %2286 = vmatpush1.bf16.msra.mxu0 %v5960_v37  ;;  %2327 = vmatpush1.bf16.msra.mxu1 %v5962_v40  ;;  %6720 = vst [vmem:[#allocation37_spill] sm:$0xff] %v6100_v27  ;;  %v6729_v27 = vsub.s32 1, %v6725_v30 }
 0x8a0   :  { %2287 = vmatprep.subr.bf16.mxu0 %v5968_v41  ;;  %2328 = vmatprep.subr.bf16.mxu1 %v5970_v42 }
 0x8a1   :  { %v6123_v58 = vrot.slane %v1636_v31, %v6729_v27 }
 0x8a3   :  { %2288 = vmatpush1.bf16.msra.mxu0 %v5972_v20  ;;  %2329 = vmatpush1.bf16.msra.mxu1 %v5974_v44  ;;  %v1859_v52 = vadd.f32 %v1858_v33, %v6123_v58  ;;  %v6733_v33 = vsub.s32 2, %v6725_v30 }
 0x8a4   :  { %2289 = vmatprep.subr.bf16.mxu0 %v5980_v21  ;;  %2330 = vmatprep.subr.bf16.mxu1 %v5982_v48 }
 0x8a7   :  { %2290 = vmatpush1.bf16.msra.mxu0 %v5984_v1  ;;  %2331 = vmatpush1.bf16.msra.mxu1 %v5986_v8 }
 0x8a8   :  { %2291 = vmatprep.subr.bf16.mxu0 %v5992_v51  ;;  %2332 = vmatprep.subr.bf16.mxu1 %v5994_v10 }
 0x8ab   :  { %2292 = vmatpush1.bf16.msra.mxu0 %v5996_v46  ;;  %2333 = vmatpush1.bf16.msra.mxu1 %v5998_v11 }
 0x8ac   :  { %2293 = vmatprep.subr.bf16.mxu0 %v6000_v47  ;;  %2334 = vmatprep.subr.bf16.mxu1 %v6004_v23 }
 0x8af   :  { %2294 = vmatpush1.bf16.msra.mxu0 %v6008_v24  ;;  %2335 = vmatpush1.bf16.msra.mxu1 %v6010_v25 }
 0x8b0   :  { %2394 = vmatprep.subr.bf16.mxu0 %v5920_v56  ;;  %2435 = vmatprep.subr.bf16.mxu1 %v5922_v63 }
 0x94a   :  { %v6105_v12 = vpop.f32.mrf.mxu0  ;;  %v6107_v43 = vpop.f32.mrf.mxu1 }
 0x94b   :  { %6721 = vst [vmem:[#allocation40_spill] sm:$0xff] %v6105_v12  ;;  %6722 = vst [vmem:[#allocation42_spill] sm:$0xff] %v6107_v43  ;;  %v1857_v43 = vadd.f32 %v1856_v61, %v6115_v5 }
 0x94c   :  { %v6109_v22 = vpop.f32.mrf.mxu0  ;;  %v6111_v28 = vpop.f32.mrf.mxu1 }
 0x94d   :  { %6723 = vst [vmem:[#allocation43_spill] sm:$0xff] %v6109_v22  ;;  %6724 = vst [vmem:[#allocation41_spill] sm:$0xff] %v6111_v28 }
 0x94e   :  { %v6117_v17 = vpop.f32.mrf.mxu0  ;;  %v6119_v3 = vpop.f32.mrf.mxu1 }
 0x94f   :  { %6727 = vst [vmem:[#allocation44_spill] sm:$0xff] %v6117_v17  ;;  %6728 = vst [vmem:[#allocation45_spill] sm:$0xff] %v6119_v3 }
 0x950   :  { %v6125_v57 = vpop.f32.mrf.mxu0  ;;  %v6127_v12 = vpop.f32.mrf.mxu1 }
 0x951   :  { %6730 = vst [vmem:[#allocation26_spill] sm:$0xff] %v6125_v57  ;;  %6731 = vst [vmem:[#allocation46_spill] sm:$0xff] %v6127_v12  ;;  %v6133_v57 = vrot.slane %v1636_v31, %v6732_v6 }
 0x952   :  { %v2198_v22 = vpop.f32.mrf.mxu0  ;;  %v2239_v28 = vpop.f32.mrf.mxu1 }
 0x953   :  { %v2246_v26 = vadd.f32 %v2198_v22, %v1857_v43  ;;  %v1932_v61 = vadd.f32 %v1931_v34, %v6133_v57  ;;  %v6138_v43 = vrot.slane %v1636_v31, %v6733_v33 }
 0x954   :  { %v2200_v60 = vpop.f32.mrf.mxu0  ;;  %v2241_v50 = vpop.f32.mrf.mxu1 }
 0x955   :  { %v4033_v17 = vmul.f32 -1.442695, %v2246_v26  ;;  %v2247_v62 = vadd.f32 %v2200_v60, %v1859_v52  ;;  %v2249_v22 = vadd.f32 %v2241_v50, %v1932_v61  ;;  %v1930_v60 = vadd.f32 %v1929_v45, %v6138_v43 }
 0x956   :  { %v2202_v3 = vpop.f32.mrf.mxu0  ;;  %v2243_v55 = vpop.f32.mrf.mxu1 }
 0x957   :  { %4665 = vpow2.f32 %v4033_v17  ;;  %v4034_v27 = vmul.f32 -1.442695, %v2247_v62  ;;  %v4035_v52 = vmul.f32 -1.442695, %v2249_v22  ;;  %v2248_v17 = vadd.f32 %v2239_v28, %v1930_v60 }
 0x958   :  { %v2203_v12 = vpop.f32.mrf.mxu0  ;;  %v2244_v49 = vpop.f32.mrf.mxu1  ;;  %v1861_v22 = vadd.f32 %v6062_v4, %v6115_v5  ;;  %v1936_v4 = vadd.f32 %v6068_v32, %v6133_v57 }
 0x959   :  { %4667 = vpow2.f32 %v4034_v27 }
 0x95a   :  { %4669 = vpow2.f32 %v4035_v52 }
 0x964   :  { %v4666_v55 = vpop.eup %4665 }
 0x965   :  { %v2253_v62 = vadd.f32 1.0, %v4666_v55  ;;  %v1863_v55 = vadd.f32 %v6066_v19, %v6123_v58 }
 0x966   :  { %v4668_v3 = vpop.eup %4667 }
 0x967   :  { %4671 = vrcp.f32 %v2253_v62  ;;  %v2259_v6 = vadd.f32 1.0, %v4668_v3  ;;  %v4670_v49 = vpop.eup %4669 }
 0x968   :  { %4673 = vtanh.f32 %v2248_v17  ;;  %v2266_v30 = vadd.f32 1.0, %v4670_v49 }
 0x969   :  { %4675 = vrcp.f32 %v2259_v6 }
 0x96a   :  { %4677 = vrcp.f32 %v2266_v30 }
 0x974   :  { %v4672_v12 = vpop.eup %4671 }
 0x975   :  { %v4674_v34 = vpop.eup %4673 }
 0x976   :  { %v4676_v26 = vpop.eup %4675  ;;  %v2270_v27 = vmul.f32 %v4674_v34, %v4672_v12 }
 0x977   :  { %v2269_v31 = vmul.f32 0.0, %v4676_v26  ;;  %v4678_v45 = vpop.eup %4677 }
 0x979   :  { %v6141_v50 = vadd.f32 %v2270_v27, %v2269_v31 }
 0x97b   :  { %4679 = vtanh.f32 %v6141_v50 }
 0x988   :  { %v4680_v28 = vpop.eup %4679 }
 0x989   :  { %v6144_v61 = vmul.f32 %v4680_v28, %v4678_v45  ;;  %v1934_v45 = vadd.f32 %v6064_v53, %v6138_v43 }
 0x98b   :  { %v2278_v33 = vpack.c.bf16 %v6144_v61, %v6144_v61 }
 0x98d   :  { %2312 = vmatmul.mubr.bf16.vlgmr.msra.gmra.mxu0 %v2278_v33  ;;  %2353 = vmatmul.mubr.bf16.vlgmr.msra.gmra.mxu1 %v2278_v33 }
 0x98e   :  { %2395 = vmatpush1.bf16.msra.mxu0 %v5924_v0  ;;  %2436 = vmatpush1.bf16.msra.mxu1 %v5926_v9 }
 0x98f   :  { %2396 = vmatprep.subr.bf16.mxu0 %v5932_v29  ;;  %2437 = vmatprep.subr.bf16.mxu1 %v5934_v16 }
 0x990   :  { %2426 = vmatprep.mubr.bf16.mxu0 %v6688_v54  ;;  %2467 = vmatprep.mubr.bf16.mxu1 %v6688_v54 }
 0x992   :  { %2397 = vmatpush1.bf16.msra.mxu0 %v5936_v13  ;;  %2438 = vmatpush1.bf16.msra.mxu1 %v5938_v14 }
 0x993   :  { %2398 = vmatprep.subr.bf16.mxu0 %v5944_v15  ;;  %2439 = vmatprep.subr.bf16.mxu1 %v5946_v18 }
 0x996   :  { %2399 = vmatpush1.bf16.msra.mxu0 %v5948_v39  ;;  %2440 = vmatpush1.bf16.msra.mxu1 %v5950_v2 }
 0x997   :  { %2400 = vmatprep.subr.bf16.mxu0 %v5956_v35  ;;  %2441 = vmatprep.subr.bf16.mxu1 %v5958_v36 }
 0x99a   :  { %2401 = vmatpush1.bf16.msra.mxu0 %v5960_v37  ;;  %2442 = vmatpush1.bf16.msra.mxu1 %v5962_v40 }
 0x99b   :  { %2402 = vmatprep.subr.bf16.mxu0 %v5968_v41  ;;  %2443 = vmatprep.subr.bf16.mxu1 %v5970_v42 }
 0x99e   :  { %2403 = vmatpush1.bf16.msra.mxu0 %v5972_v20  ;;  %2444 = vmatpush1.bf16.msra.mxu1 %v5974_v44 }
 0x99f   :  { %2404 = vmatprep.subr.bf16.mxu0 %v5980_v21  ;;  %2445 = vmatprep.subr.bf16.mxu1 %v5982_v48 }
 0x9a2   :  { %2405 = vmatpush1.bf16.msra.mxu0 %v5984_v1  ;;  %2446 = vmatpush1.bf16.msra.mxu1 %v5986_v8 }
 0x9a3   :  { %2406 = vmatprep.subr.bf16.mxu0 %v5992_v51  ;;  %2447 = vmatprep.subr.bf16.mxu1 %v5994_v10 }
 0x9a6   :  { %2407 = vmatpush1.bf16.msra.mxu0 %v5996_v46  ;;  %2448 = vmatpush1.bf16.msra.mxu1 %v5998_v11 }
 0x9a7   :  { %2408 = vmatprep.subr.bf16.mxu0 %v6000_v47  ;;  %2449 = vmatprep.subr.bf16.mxu1 %v6004_v23 }
 0x9aa   :  { %2409 = vmatpush1.bf16.msra.mxu0 %v6008_v24  ;;  %2450 = vmatpush1.bf16.msra.mxu1 %v6010_v25 }
 0x9ab   :  { %2509 = vmatprep.subr.bf16.mxu0 %v5920_v56  ;;  %2550 = vmatprep.subr.bf16.mxu1 %v5922_v63 }
 0xa4d   :  { %v2313_v60 = vpop.f32.mrf.mxu0  ;;  %v2354_v52 = vpop.f32.mrf.mxu1 }
 0xa4e   :  { %v2361_v17 = vadd.f32 %v2313_v60, %v1861_v22  ;;  %v2363_v19 = vadd.f32 %v2354_v52, %v1934_v45 }
 0xa4f   :  { %v2315_v62 = vpop.f32.mrf.mxu0  ;;  %v2356_v3 = vpop.f32.mrf.mxu1 }
 0xa50   :  { %v4036_v6 = vmul.f32 -1.442695, %v2361_v17  ;;  %v2362_v49 = vadd.f32 %v2315_v62, %v1863_v55  ;;  %v2364_v27 = vadd.f32 %v2356_v3, %v1936_v4 }
 0xa51   :  { %v2317_v12 = vpop.f32.mrf.mxu0  ;;  %v2358_v34 = vpop.f32.mrf.mxu1 }
 0xa52   :  { %4681 = vpow2.f32 %v4036_v6  ;;  %v4037_v26 = vmul.f32 -1.442695, %v2362_v49  ;;  %v4038_v28 = vmul.f32 -1.442695, %v2364_v27  ;;  %v1869_v27 = vadd.f32 %v6074_v59, %v6123_v58 }
 0xa53   :  { %v2318_v30 = vpop.f32.mrf.mxu0  ;;  %v2359_v31 = vpop.f32.mrf.mxu1 }
 0xa54   :  { %4683 = vpow2.f32 %v4037_v26 }
 0xa55   :  { %4685 = vtanh.f32 %v2363_v19 }
 0xa56   :  { %4687 = vpow2.f32 %v4038_v28 }
 0xa5f   :  { %v4682_v33 = vpop.eup %4681 }
 0xa60   :  { %v2368_v22 = vadd.f32 1.0, %v4682_v33 }
 0xa61   :  { %v4684_v60 = vpop.eup %4683 }
 0xa62   :  { %4689 = vrcp.f32 %v2368_v22  ;;  %v2374_v55 = vadd.f32 1.0, %v4684_v60  ;;  %v4686_v17 = vpop.eup %4685 }
 0xa63   :  { %v4688_v62 = vpop.eup %4687 }
 0xa64   :  { %4691 = vrcp.f32 %v2374_v55  ;;  %v2381_v32 = vadd.f32 1.0, %v4688_v62 }
 0xa66   :  { %4693 = vrcp.f32 %v2381_v32 }
 0xa6f   :  { %v4690_v6 = vpop.eup %4689 }
 0xa70   :  { %v2385_v49 = vmul.f32 %v4690_v6, %v4686_v17 }
 0xa71   :  { %v4692_v12 = vpop.eup %4691 }
 0xa72   :  { %v2384_v3 = vmul.f32 %v4692_v12, %v6141_v50  ;;  %v1867_v50 = vadd.f32 %v6070_v38, %v6115_v5  ;;  %v1942_v38 = vadd.f32 %v6076_v7, %v6133_v57  ;;  %v6734_v12 = vld [vmem:[#allocation27_spill] sm:$0xff] }
 0xa73   :  { %v4694_v53 = vpop.eup %4693  ;;  %v1940_v32 = vadd.f32 %v6734_v12, %v6138_v43 }
 0xa74   :  { %v6191_v34 = vadd.f32 %v2385_v49, %v2384_v3 }
 0xa76   :  { %4695 = vtanh.f32 %v6191_v34 }
 0xa83   :  { %v4696_v52 = vpop.eup %4695 }
 0xa84   :  { %v6194_v26 = vmul.f32 %v4696_v52, %v4694_v53 }
 0xa86   :  { %v2393_v30 = vpack.c.bf16 %v6194_v26, %v6194_v26 }
 0xa88   :  { %2427 = vmatmul.mubr.bf16.vlgmr.msra.gmra.mxu0 %v2393_v30  ;;  %2468 = vmatmul.mubr.bf16.vlgmr.msra.gmra.mxu1 %v2393_v30 }
 0xa89   :  { %2510 = vmatpush1.bf16.msra.mxu0 %v5924_v0  ;;  %2551 = vmatpush1.bf16.msra.mxu1 %v5926_v9 }
 0xa8a   :  { %2511 = vmatprep.subr.bf16.mxu0 %v5932_v29  ;;  %2552 = vmatprep.subr.bf16.mxu1 %v5934_v16 }
 0xa8b   :  { %2541 = vmatprep.mubr.bf16.mxu0 %v6688_v54  ;;  %2582 = vmatprep.mubr.bf16.mxu1 %v6688_v54 }
 0xa8d   :  { %2512 = vmatpush1.bf16.msra.mxu0 %v5936_v13  ;;  %2553 = vmatpush1.bf16.msra.mxu1 %v5938_v14 }
 0xa8e   :  { %2513 = vmatprep.subr.bf16.mxu0 %v5944_v15  ;;  %2554 = vmatprep.subr.bf16.mxu1 %v5946_v18 }
 0xa91   :  { %2514 = vmatpush1.bf16.msra.mxu0 %v5948_v39  ;;  %2555 = vmatpush1.bf16.msra.mxu1 %v5950_v2 }
 0xa92   :  { %2515 = vmatprep.subr.bf16.mxu0 %v5956_v35  ;;  %2556 = vmatprep.subr.bf16.mxu1 %v5958_v36 }
 0xa95   :  { %2516 = vmatpush1.bf16.msra.mxu0 %v5960_v37  ;;  %2557 = vmatpush1.bf16.msra.mxu1 %v5962_v40 }
 0xa96   :  { %2517 = vmatprep.subr.bf16.mxu0 %v5968_v41  ;;  %2558 = vmatprep.subr.bf16.mxu1 %v5970_v42 }
 0xa99   :  { %2518 = vmatpush1.bf16.msra.mxu0 %v5972_v20  ;;  %2559 = vmatpush1.bf16.msra.mxu1 %v5974_v44 }
 0xa9a   :  { %2519 = vmatprep.subr.bf16.mxu0 %v5980_v21  ;;  %2560 = vmatprep.subr.bf16.mxu1 %v5982_v48 }
 0xa9d   :  { %2520 = vmatpush1.bf16.msra.mxu0 %v5984_v1  ;;  %2561 = vmatpush1.bf16.msra.mxu1 %v5986_v8 }
 0xa9e   :  { %2521 = vmatprep.subr.bf16.mxu0 %v5992_v51  ;;  %2562 = vmatprep.subr.bf16.mxu1 %v5994_v10 }
 0xaa1   :  { %2522 = vmatpush1.bf16.msra.mxu0 %v5996_v46  ;;  %2563 = vmatpush1.bf16.msra.mxu1 %v5998_v11 }
 0xaa2   :  { %2523 = vmatprep.subr.bf16.mxu0 %v6000_v47  ;;  %2564 = vmatprep.subr.bf16.mxu1 %v6004_v23 }
 0xaa5   :  { %2524 = vmatpush1.bf16.msra.mxu0 %v6008_v24  ;;  %2565 = vmatpush1.bf16.msra.mxu1 %v6010_v25 }
 0xaa6   :  { %2624 = vmatprep.subr.bf16.mxu0 %v5920_v56  ;;  %2665 = vmatprep.subr.bf16.mxu1 %v5922_v63 }
 0xb48   :  { %v2428_v31 = vpop.f32.mrf.mxu0  ;;  %v2469_v4 = vpop.f32.mrf.mxu1 }
 0xb49   :  { %v2476_v45 = vadd.f32 %v2428_v31, %v1867_v50  ;;  %v2478_v59 = vadd.f32 %v2469_v4, %v1940_v32 }
 0xb4a   :  { %v2430_v19 = vpop.f32.mrf.mxu0  ;;  %v2471_v28 = vpop.f32.mrf.mxu1 }
 0xb4b   :  { %v4039_v33 = vmul.f32 -1.442695, %v2476_v45  ;;  %v2477_v22 = vadd.f32 %v2430_v19, %v1869_v27  ;;  %v2479_v49 = vadd.f32 %v2471_v28, %v1942_v38 }
 0xb4c   :  { %v2432_v60 = vpop.f32.mrf.mxu0  ;;  %v2473_v55 = vpop.f32.mrf.mxu1 }
 0xb4d   :  { %4697 = vpow2.f32 %v4039_v33  ;;  %v4040_v17 = vmul.f32 -1.442695, %v2477_v22  ;;  %v4041_v3 = vmul.f32 -1.442695, %v2479_v49  ;;  %v6736_v49 = vld [vmem:[#allocation31_spill] sm:$0xff] }
 0xb4e   :  { %v2433_v62 = vpop.f32.mrf.mxu0  ;;  %v2474_v6 = vpop.f32.mrf.mxu1  ;;  %v1873_v12 = vadd.f32 %v6736_v49, %v6123_v58 }
 0xb4f   :  { %4699 = vpow2.f32 %v4040_v17 }
 0xb50   :  { %4701 = vtanh.f32 %v2478_v59 }
 0xb51   :  { %4703 = vpow2.f32 %v4041_v3 }
 0xb5a   :  { %v4698_v53 = vpop.eup %4697 }
 0xb5b   :  { %v2483_v52 = vadd.f32 1.0, %v4698_v53 }
 0xb5c   :  { %v4700_v30 = vpop.eup %4699 }
 0xb5d   :  { %4705 = vrcp.f32 %v2483_v52  ;;  %v2489_v50 = vadd.f32 1.0, %v4700_v30  ;;  %v4702_v31 = vpop.eup %4701 }
 0xb5e   :  { %v4704_v27 = vpop.eup %4703 }
 0xb5f   :  { %4707 = vrcp.f32 %v2489_v50  ;;  %v2496_v7 = vadd.f32 1.0, %v4704_v27 }
 0xb61   :  { %4709 = vrcp.f32 %v2496_v7 }
 0xb6a   :  { %v4706_v45 = vpop.eup %4705 }
 0xb6b   :  { %v2500_v19 = vmul.f32 %v4706_v45, %v4702_v31 }
 0xb6c   :  { %v4708_v33 = vpop.eup %4707 }
 0xb6d   :  { %v2499_v28 = vmul.f32 %v4708_v33, %v6191_v34  ;;  %v6735_v34 = vld [vmem:[#allocation28_spill] sm:$0xff] }
 0xb6e   :  { %v4710_v4 = vpop.eup %4709  ;;  %v1871_v62 = vadd.f32 %v6735_v34, %v6115_v5 }
 0xb6f   :  { %v6241_v22 = vadd.f32 %v2500_v19, %v2499_v28  ;;  %v6737_v19 = vld [vmem:[#allocation29_spill] sm:$0xff]  ;;  %v6738_v28 = vld [vmem:[#allocation30_spill] sm:$0xff] }
 0xb70   :  { %v1946_v33 = vadd.f32 %v6737_v19, %v6133_v57 }
 0xb71   :  { %4711 = vtanh.f32 %v6241_v22 }
 0xb7e   :  { %v4712_v60 = vpop.eup %4711 }
 0xb7f   :  { %v6244_v55 = vmul.f32 %v4712_v60, %v4710_v4  ;;  %v1944_v4 = vadd.f32 %v6738_v28, %v6138_v43 }
 0xb81   :  { %v2508_v17 = vpack.c.bf16 %v6244_v55, %v6244_v55 }
 0xb83   :  { %2542 = vmatmul.mubr.bf16.vlgmr.msra.gmra.mxu0 %v2508_v17  ;;  %2583 = vmatmul.mubr.bf16.vlgmr.msra.gmra.mxu1 %v2508_v17 }
 0xb84   :  { %2625 = vmatpush1.bf16.msra.mxu0 %v5924_v0  ;;  %2666 = vmatpush1.bf16.msra.mxu1 %v5926_v9 }
 0xb85   :  { %2626 = vmatprep.subr.bf16.mxu0 %v5932_v29  ;;  %2667 = vmatprep.subr.bf16.mxu1 %v5934_v16 }
 0xb86   :  { %2656 = vmatprep.mubr.bf16.mxu0 %v6688_v54  ;;  %2697 = vmatprep.mubr.bf16.mxu1 %v6688_v54 }
 0xb88   :  { %2627 = vmatpush1.bf16.msra.mxu0 %v5936_v13  ;;  %2668 = vmatpush1.bf16.msra.mxu1 %v5938_v14 }
 0xb89   :  { %2628 = vmatprep.subr.bf16.mxu0 %v5944_v15  ;;  %2669 = vmatprep.subr.bf16.mxu1 %v5946_v18 }
 0xb8c   :  { %2629 = vmatpush1.bf16.msra.mxu0 %v5948_v39  ;;  %2670 = vmatpush1.bf16.msra.mxu1 %v5950_v2 }
 0xb8d   :  { %2630 = vmatprep.subr.bf16.mxu0 %v5956_v35  ;;  %2671 = vmatprep.subr.bf16.mxu1 %v5958_v36 }
 0xb90   :  { %2631 = vmatpush1.bf16.msra.mxu0 %v5960_v37  ;;  %2672 = vmatpush1.bf16.msra.mxu1 %v5962_v40 }
 0xb91   :  { %2632 = vmatprep.subr.bf16.mxu0 %v5968_v41  ;;  %2673 = vmatprep.subr.bf16.mxu1 %v5970_v42 }
 0xb94   :  { %2633 = vmatpush1.bf16.msra.mxu0 %v5972_v20  ;;  %2674 = vmatpush1.bf16.msra.mxu1 %v5974_v44 }
 0xb95   :  { %2634 = vmatprep.subr.bf16.mxu0 %v5980_v21  ;;  %2675 = vmatprep.subr.bf16.mxu1 %v5982_v48 }
 0xb98   :  { %2635 = vmatpush1.bf16.msra.mxu0 %v5984_v1  ;;  %2676 = vmatpush1.bf16.msra.mxu1 %v5986_v8 }
 0xb99   :  { %2636 = vmatprep.subr.bf16.mxu0 %v5992_v51  ;;  %2677 = vmatprep.subr.bf16.mxu1 %v5994_v10 }
 0xb9c   :  { %2637 = vmatpush1.bf16.msra.mxu0 %v5996_v46  ;;  %2678 = vmatpush1.bf16.msra.mxu1 %v5998_v11 }
 0xb9d   :  { %2638 = vmatprep.subr.bf16.mxu0 %v6000_v47  ;;  %2679 = vmatprep.subr.bf16.mxu1 %v6004_v23 }
 0xba0   :  { %2639 = vmatpush1.bf16.msra.mxu0 %v6008_v24  ;;  %2680 = vmatpush1.bf16.msra.mxu1 %v6010_v25 }
 0xba1   :  { %2739 = vmatprep.subr.bf16.mxu0 %v5920_v56  ;;  %2780 = vmatprep.subr.bf16.mxu1 %v5922_v63 }
 0xc43   :  { %v2543_v6 = vpop.f32.mrf.mxu0  ;;  %v2584_v38 = vpop.f32.mrf.mxu1 }
 0xc44   :  { %v2591_v32 = vadd.f32 %v2543_v6, %v1871_v62  ;;  %v2593_v60 = vadd.f32 %v2584_v38, %v1944_v4 }
 0xc45   :  { %v2545_v59 = vpop.f32.mrf.mxu0  ;;  %v2586_v3 = vpop.f32.mrf.mxu1 }
 0xc46   :  { %v4042_v53 = vmul.f32 -1.442695, %v2591_v32  ;;  %v2592_v52 = vadd.f32 %v2545_v59, %v1873_v12  ;;  %v2594_v7 = vadd.f32 %v2586_v3, %v1946_v33 }
 0xc47   :  { %v2547_v30 = vpop.f32.mrf.mxu0  ;;  %v2588_v50 = vpop.f32.mrf.mxu1 }
 0xc48   :  { %4713 = vpow2.f32 %v4042_v53  ;;  %v4043_v31 = vmul.f32 -1.442695, %v2592_v52  ;;  %v4044_v17 = vmul.f32 -1.442695, %v2594_v7 }
 0xc49   :  { %v2548_v27 = vpop.f32.mrf.mxu0  ;;  %v2589_v45 = vpop.f32.mrf.mxu1 }
 0xc4a   :  { %4715 = vpow2.f32 %v4043_v31 }
 0xc4b   :  { %4717 = vtanh.f32 %v2593_v60 }
 0xc4c   :  { %4719 = vpow2.f32 %v4044_v17  ;;  %v6348_v17 = vld [vmem:[#allocation8 + $0xe0] ss:$16 sps:$4 sm:$0xff]  }
 0xc55   :  { %v4714_v34 = vpop.eup %4713 }
 0xc56   :  { %v2598_v62 = vadd.f32 1.0, %v4714_v34  ;;  %v6351_v34 = vld [vmem:[#allocation8 + $0xe8] ss:$16 sps:$4 sm:$0xff]  }
 0xc57   :  { %v4716_v6 = vpop.eup %4715 }
 0xc58   :  { %4721 = vrcp.f32 %v2598_v62  ;;  %v2604_v49 = vadd.f32 1.0, %v4716_v6  ;;  %v4718_v12 = vpop.eup %4717  ;;  %v6354_v62 = vld [vmem:[#allocation8 + $0xc4] ss:$16 sps:$4 sm:$0xff]   ;;  %v6357_v6 = vld [vmem:[#allocation8 + $0xcc] ss:$16 sps:$4 sm:$0xff]  }
 0xc59   :  { %v4720_v32 = vpop.eup %4719 }
 0xc5a   :  { %4723 = vrcp.f32 %v2604_v49  ;;  %v2611_v30 = vadd.f32 1.0, %v4720_v32  ;;  %v6362_v49 = vld [vmem:[#allocation8 + $0xc0] ss:$16 sps:$4 sm:$0xff]   ;;  %v6368_v32 = vld [vmem:[#allocation8 + $0xa4] ss:$16 sps:$4 sm:$0xff]  }
 0xc5c   :  { %4725 = vrcp.f32 %v2611_v30  ;;  %v6380_v30 = vld [vmem:[#allocation8 + $0x84] ss:$16 sps:$4 sm:$0xff]  }
 0xc65   :  { %v4722_v59 = vpop.eup %4721 }
 0xc66   :  { %v2615_v53 = vmul.f32 %v4722_v59, %v4718_v12  ;;  %v6365_v12 = vld [vmem:[#allocation8 + $0xc8] ss:$16 sps:$4 sm:$0xff]   ;;  %v6371_v59 = vld [vmem:[#allocation8 + $0xac] ss:$16 sps:$4 sm:$0xff]  }
 0xc67   :  { %v4724_v52 = vpop.eup %4723 }
 0xc68   :  { %v2614_v3 = vmul.f32 %v4724_v52, %v6241_v22  ;;  %v6377_v52 = vld [vmem:[#allocation8 + $0xa8] ss:$16 sps:$4 sm:$0xff]  }
 0xc69   :  { %v4726_v38 = vpop.eup %4725 }
 0xc6a   :  { %v6291_v50 = vadd.f32 %v2615_v53, %v2614_v3  ;;  %v6374_v53 = vld [vmem:[#allocation8 + $0xa0] ss:$16 sps:$4 sm:$0xff]   ;;  %v6383_v3 = vld [vmem:[#allocation8 + $0x8c] ss:$16 sps:$4 sm:$0xff]  }
 0xc6c   :  { %4727 = vtanh.f32 %v6291_v50 }
 0xc79   :  { %v4728_v31 = vpop.eup %4727 }
 0xc7a   :  { %v6294_v27 = vmul.f32 %v4728_v31, %v4726_v38  ;;  %v6389_v38 = vld [vmem:[#allocation8 + $0x88] ss:$16 sps:$4 sm:$0xff]   ;;  %v6392_v31 = vld [vmem:[#allocation8 + $0x64] ss:$16 sps:$4 sm:$0xff]  }
 0xc7c   :  { %v2623_v45 = vpack.c.bf16 %v6294_v27, %v6294_v27 }
 0xc7e   :  { %2657 = vmatmul.mubr.bf16.vlgmr.msra.gmra.mxu0 %v2623_v45  ;;  %2698 = vmatmul.mubr.bf16.vlgmr.msra.gmra.mxu1 %v2623_v45  ;;  %v6395_v45 = vld [vmem:[#allocation8 + $0x6c] ss:$16 sps:$4 sm:$0xff]  }
 0xc7f   :  { %2740 = vmatpush1.bf16.msra.mxu0 %v5924_v0  ;;  %2781 = vmatpush1.bf16.msra.mxu1 %v5926_v9  ;;  %v6739_v0 = vld [vmem:[#allocation32_spill] sm:$0xff] }
 0xc80   :  { %2741 = vmatprep.subr.bf16.mxu0 %v5932_v29  ;;  %2782 = vmatprep.subr.bf16.mxu1 %v5934_v16  ;;  %v1877_v9 = vadd.f32 %v6739_v0, %v6115_v5  ;;  %v6398_v0 = vld [vmem:[#allocation8 + $0x60] ss:$16 sps:$4 sm:$0xff]  }
 0xc81   :  { %2771 = vmatprep.mubr.bf16.mxu0 %v6688_v54  ;;  %2812 = vmatprep.mubr.bf16.mxu1 %v6688_v54 }
 0xc83   :  { %2742 = vmatpush1.bf16.msra.mxu0 %v5936_v13  ;;  %2783 = vmatpush1.bf16.msra.mxu1 %v5938_v14  ;;  %v6740_v13 = vld [vmem:[#allocation35_spill] sm:$0xff] }
 0xc84   :  { %2743 = vmatprep.subr.bf16.mxu0 %v5944_v15  ;;  %2784 = vmatprep.subr.bf16.mxu1 %v5946_v18  ;;  %v1879_v14 = vadd.f32 %v6740_v13, %v6123_v58  ;;  %v6410_v13 = vld [vmem:[#allocation8 + $0x40] ss:$16 sps:$4 sm:$0xff]  }
 0xc87   :  { %2744 = vmatpush1.bf16.msra.mxu0 %v5948_v39  ;;  %2785 = vmatpush1.bf16.msra.mxu1 %v5950_v2 }
 0xc88   :  { %2745 = vmatprep.subr.bf16.mxu0 %v5956_v35  ;;  %2786 = vmatprep.subr.bf16.mxu1 %v5958_v36 }
 0xc8b   :  { %2746 = vmatpush1.bf16.msra.mxu0 %v5960_v37  ;;  %2787 = vmatpush1.bf16.msra.mxu1 %v5962_v40 }
 0xc8c   :  { %2747 = vmatprep.subr.bf16.mxu0 %v5968_v41  ;;  %2788 = vmatprep.subr.bf16.mxu1 %v5970_v42 }
 0xc8f   :  { %2748 = vmatpush1.bf16.msra.mxu0 %v5972_v20  ;;  %2789 = vmatpush1.bf16.msra.mxu1 %v5974_v44  ;;  %v6742_v44 = vld [vmem:[#allocation34_spill] sm:$0xff] }
 0xc90   :  { %2749 = vmatprep.subr.bf16.mxu0 %v5980_v21  ;;  %2790 = vmatprep.subr.bf16.mxu1 %v5982_v48  ;;  %v1950_v21 = vadd.f32 %v6742_v44, %v6138_v43 }
 0xc93   :  { %2750 = vmatpush1.bf16.msra.mxu0 %v5984_v1  ;;  %2791 = vmatpush1.bf16.msra.mxu1 %v5986_v8 }
 0xc94   :  { %2751 = vmatprep.subr.bf16.mxu0 %v5992_v51  ;;  %2792 = vmatprep.subr.bf16.mxu1 %v5994_v10 }
 0xc97   :  { %2752 = vmatpush1.bf16.msra.mxu0 %v5996_v46  ;;  %2793 = vmatpush1.bf16.msra.mxu1 %v5998_v11 }
 0xc98   :  { %2753 = vmatprep.subr.bf16.mxu0 %v6000_v47  ;;  %2794 = vmatprep.subr.bf16.mxu1 %v6004_v23 }
 0xc9b   :  { %2754 = vmatpush1.bf16.msra.mxu0 %v6008_v24  ;;  %2795 = vmatpush1.bf16.msra.mxu1 %v6010_v25 }
 0xc9c   :  { %2854 = vmatprep.subr.bf16.mxu0 %v5920_v56  ;;  %2895 = vmatprep.subr.bf16.mxu1 %v5922_v63  ;;  %v6741_v63 = vld [vmem:[#allocation33_spill] sm:$0xff] }
 0xc9d   :  { %v1952_v42 = vadd.f32 %v6741_v63, %v6133_v57  ;;  %v6743_v63 = vld [vmem:[#allocation36_spill] sm:$0xff] }
 0xd3e   :  { %v2658_v29 = vpop.f32.mrf.mxu0  ;;  %v2699_v16 = vpop.f32.mrf.mxu1 }
 0xd3f   :  { %v2706_v15 = vadd.f32 %v2658_v29, %v1877_v9  ;;  %v2708_v48 = vadd.f32 %v2699_v16, %v1950_v21  ;;  %v6401_v9 = vld [vmem:[#allocation8 + $0x68] ss:$16 sps:$4 sm:$0xff]   ;;  %v6404_v29 = vld [vmem:[#allocation8 + $0x44] ss:$16 sps:$4 sm:$0xff]   ;;  %v6407_v16 = vld [vmem:[#allocation8 + $0x4c] ss:$16 sps:$4 sm:$0xff]  }
 0xd40   :  { %v2660_v18 = vpop.f32.mrf.mxu0  ;;  %v2701_v39 = vpop.f32.mrf.mxu1  ;;  %v6744_v21 = vld [vmem:[#allocation39_spill] sm:$0xff] }
 0xd41   :  { %v4045_v2 = vmul.f32 -1.442695, %v2706_v15  ;;  %v2707_v35 = vadd.f32 %v2660_v18, %v1879_v14  ;;  %v2709_v20 = vadd.f32 %v2701_v39, %v1952_v42  ;;  %v6413_v14 = vld [vmem:[#allocation8 + $0x48] ss:$16 sps:$4 sm:$0xff]   ;;  %v6416_v15 = vld [vmem:[#allocation8 + $0x24] ss:$16 sps:$4 sm:$0xff]   ;;  %v1881_v42 = vadd.f32 %v6743_v63, %v6115_v5 }
 0xd42   :  { %v2662_v36 = vpop.f32.mrf.mxu0  ;;  %v2703_v37 = vpop.f32.mrf.mxu1  ;;  %v6419_v18 = vld [vmem:[#allocation8 + $0x2c] ss:$16 sps:$4 sm:$0xff]   ;;  %v6422_v39 = vld [vmem:[#allocation8 + $0x20] ss:$16 sps:$4 sm:$0xff]  }
 0xd43   :  { %4729 = vpow2.f32 %v4045_v2  ;;  %v4046_v40 = vmul.f32 -1.442695, %v2707_v35  ;;  %v4047_v1 = vmul.f32 -1.442695, %v2709_v20  ;;  %v6425_v2 = vld [vmem:[#allocation8 + $0x28] ss:$16 sps:$4 sm:$0xff]  }
 0xd44   :  { %v2663_v56 = vpop.f32.mrf.mxu0  ;;  %v2704_v41 = vpop.f32.mrf.mxu1  ;;  %v6428_v35 = vld [vmem:[#allocation8 + $0x4] ss:$16 sps:$4 sm:$0xff]   ;;  %v6431_v36 = vld [vmem:[#allocation8 + $0xc] ss:$16 sps:$4 sm:$0xff]   ;;  %v6434_v37 = vld [vmem:[#allocation8] ss:$16 sps:$4 sm:$0xff]  }
 0xd45   :  { %4731 = vpow2.f32 %v4046_v40  ;;  %v6437_v40 = vld [vmem:[#allocation8 + $0x8] ss:$16 sps:$4 sm:$0xff]   ;;  %v4873_v56 = vld [vmem:[#allocation8 + $0xe4] ss:$16 sps:$4 sm:$0xff]   ;;  %v4874_v41 = vld [vmem:[#allocation8 + $0xec] ss:$16 sps:$4 sm:$0xff]  }
 0xd46   :  { %4733 = vtanh.f32 %v2708_v48  ;;  %v1883_v48 = vadd.f32 %v6744_v21, %v6123_v58 }
 0xd47   :  { %4735 = vpow2.f32 %v4047_v1 }
 0xd50   :  { %v4730_v8 = vpop.eup %4729 }
 0xd51   :  { %v2713_v51 = vadd.f32 1.0, %v4730_v8 }
 0xd52   :  { %v4732_v10 = vpop.eup %4731 }
 0xd53   :  { %4737 = vrcp.f32 %v2713_v51  ;;  %v2719_v46 = vadd.f32 1.0, %v4732_v10  ;;  %v4734_v11 = vpop.eup %4733 }
 0xd54   :  { %v4736_v47 = vpop.eup %4735 }
 0xd55   :  { %4739 = vrcp.f32 %v2719_v46  ;;  %v2726_v22 = vadd.f32 1.0, %v4736_v47 }
 0xd57   :  { %4741 = vrcp.f32 %v2726_v22  ;;  %v6745_v22 = vld [vmem:[#allocation37_spill] sm:$0xff] }
 0xd60   :  { %v4738_v23 = vpop.eup %4737 }
 0xd61   :  { %v2730_v24 = vmul.f32 %v4738_v23, %v4734_v11 }
 0xd62   :  { %v4740_v25 = vpop.eup %4739 }
 0xd63   :  { %v2729_v19 = vmul.f32 %v4740_v25, %v6291_v50  ;;  %v6386_v50 = vld [vmem:[#allocation8 + $0x80] ss:$16 sps:$4 sm:$0xff]  }
 0xd64   :  { %v4742_v7 = vpop.eup %4741 }
 0xd65   :  { %v6341_v33 = vadd.f32 %v2730_v24, %v2729_v19  ;;  %v1956_v19 = vadd.f32 %v6745_v22, %v6133_v57 }
 0xd67   :  { %4743 = vtanh.f32 %v6341_v33 }
 0xd74   :  { %v4744_v28 = vpop.eup %4743 }
 0xd75   :  { %v6344_v4 = vmul.f32 %v4744_v28, %v4742_v7  ;;  %v6746_v28 = vld [vmem:[#allocation38_spill] sm:$0xff] }
 0xd77   :  { %v2738_v60 = vpack.c.bf16 %v6344_v4, %v6344_v4 }
 0xd79   :  { %2772 = vmatmul.mubr.bf16.vlgmr.msra.gmra.mxu0 %v2738_v60  ;;  %2813 = vmatmul.mubr.bf16.vlgmr.msra.gmra.mxu1 %v2738_v60  ;;  %v1954_v60 = vadd.f32 %v6746_v28, %v6138_v43 }
 0xd7a   :  { %2855 = vmatpush1.bf16.msra.mxu0 %v6348_v17  ;;  %2896 = vmatpush1.bf16.msra.mxu1 %v6351_v34 }
 0xd7b   :  { %2856 = vmatprep.subr.bf16.mxu0 %v6354_v62  ;;  %2897 = vmatprep.subr.bf16.mxu1 %v6357_v6 }
 0xd7c   :  { %2886 = vmatprep.mubr.bf16.mxu0 %v6688_v54  ;;  %2927 = vmatprep.mubr.bf16.mxu1 %v6688_v54 }
 0xd7e   :  { %2857 = vmatpush1.bf16.msra.mxu0 %v6362_v49  ;;  %2898 = vmatpush1.bf16.msra.mxu1 %v6365_v12 }
 0xd7f   :  { %2858 = vmatprep.subr.bf16.mxu0 %v6368_v32  ;;  %2899 = vmatprep.subr.bf16.mxu1 %v6371_v59 }
 0xd82   :  { %2859 = vmatpush1.bf16.msra.mxu0 %v6374_v53  ;;  %2900 = vmatpush1.bf16.msra.mxu1 %v6377_v52 }
 0xd83   :  { %2860 = vmatprep.subr.bf16.mxu0 %v6380_v30  ;;  %2901 = vmatprep.subr.bf16.mxu1 %v6383_v3 }
 0xd86   :  { %2861 = vmatpush1.bf16.msra.mxu0 %v6386_v50  ;;  %2902 = vmatpush1.bf16.msra.mxu1 %v6389_v38 }
 0xd87   :  { %2862 = vmatprep.subr.bf16.mxu0 %v6392_v31  ;;  %2903 = vmatprep.subr.bf16.mxu1 %v6395_v45 }
 0xd8a   :  { %2863 = vmatpush1.bf16.msra.mxu0 %v6398_v0  ;;  %2904 = vmatpush1.bf16.msra.mxu1 %v6401_v9 }
 0xd8b   :  { %2864 = vmatprep.subr.bf16.mxu0 %v6404_v29  ;;  %2905 = vmatprep.subr.bf16.mxu1 %v6407_v16 }
 0xd8e   :  { %2865 = vmatpush1.bf16.msra.mxu0 %v6410_v13  ;;  %2906 = vmatpush1.bf16.msra.mxu1 %v6413_v14 }
 0xd8f   :  { %2866 = vmatprep.subr.bf16.mxu0 %v6416_v15  ;;  %2907 = vmatprep.subr.bf16.mxu1 %v6419_v18 }
 0xd92   :  { %2867 = vmatpush1.bf16.msra.mxu0 %v6422_v39  ;;  %2908 = vmatpush1.bf16.msra.mxu1 %v6425_v2 }
 0xd93   :  { %2868 = vmatprep.subr.bf16.mxu0 %v6428_v35  ;;  %2909 = vmatprep.subr.bf16.mxu1 %v6431_v36 }
 0xd96   :  { %2869 = vmatpush1.bf16.msra.mxu0 %v6434_v37  ;;  %2910 = vmatpush1.bf16.msra.mxu1 %v6437_v40 }
 0xd97   :  { %2969 = vmatprep.subr.bf16.mxu0 %v4873_v56  ;;  %3010 = vmatprep.subr.bf16.mxu1 %v4874_v41 }
 0xe39   :  { %v2773_v20 = vpop.f32.mrf.mxu0  ;;  %v2814_v44 = vpop.f32.mrf.mxu1 }
 0xe3a   :  { %v2821_v1 = vadd.f32 %v2773_v20, %v1881_v42  ;;  %v2823_v56 = vadd.f32 %v2814_v44, %v1954_v60 }
 0xe3b   :  { %v2775_v8 = vpop.f32.mrf.mxu0  ;;  %v2816_v51 = vpop.f32.mrf.mxu1 }
 0xe3c   :  { %v4048_v10 = vmul.f32 -1.442695, %v2821_v1  ;;  %v2822_v46 = vadd.f32 %v2775_v8, %v1883_v48  ;;  %v2824_v7 = vadd.f32 %v2816_v51, %v1956_v19 }
 0xe3d   :  { %v2777_v11 = vpop.f32.mrf.mxu0  ;;  %v2818_v47 = vpop.f32.mrf.mxu1 }
 0xe3e   :  { %4745 = vpow2.f32 %v4048_v10  ;;  %v4049_v23 = vmul.f32 -1.442695, %v2822_v46  ;;  %v4050_v41 = vmul.f32 -1.442695, %v2824_v7 }
 0xe3f   :  { %v2778_v24 = vpop.f32.mrf.mxu0  ;;  %v2819_v25 = vpop.f32.mrf.mxu1 }
 0xe40   :  { %4747 = vpow2.f32 %v4049_v23 }
 0xe41   :  { %4749 = vtanh.f32 %v2823_v56 }
 0xe42   :  { %4751 = vpow2.f32 %v4050_v41 }
 0xe4b   :  { %v4746_v63 = vpop.eup %4745 }
 0xe4c   :  { %v2828_v42 = vadd.f32 1.0, %v4746_v63 }
 0xe4d   :  { %v4748_v20 = vpop.eup %4747 }
 0xe4e   :  { %4753 = vrcp.f32 %v2828_v42  ;;  %v2834_v21 = vadd.f32 1.0, %v4748_v20  ;;  %v4750_v48 = vpop.eup %4749  ;;  %v4499_v20 = vld [vmem:[#allocation13 + $0x30] sm:$0xff]  }
 0xe4f   :  { %v4752_v1 = vpop.eup %4751 }
 0xe50   :  { %4755 = vrcp.f32 %v2834_v21  ;;  %v2841_v11 = vadd.f32 1.0, %v4752_v1  ;;  %v4500_v21 = vld [vmem:[#allocation16 + $0x30] sm:$0xff]   ;;  %v4501_v1 = vld [vmem:[#allocation13 + $0x28] sm:$0xff]  }
 0xe52   :  { %4757 = vrcp.f32 %v2841_v11  ;;  %v4505_v11 = vld [vmem:[#allocation13 + $0x18] sm:$0xff]  }
 0xe5b   :  { %v4754_v8 = vpop.eup %4753 }
 0xe5c   :  { %v2845_v10 = vmul.f32 %v4754_v8, %v4750_v48  ;;  %v3079_v48 = vpack.c.bf16 %v6194_v26, %v6144_v61  ;;  %v4502_v8 = vld [vmem:[#allocation16 + $0x28] sm:$0xff]   ;;  %v4506_v61 = vld [vmem:[#allocation16 + $0x18] sm:$0xff]  }
 0xe5d   :  { %v4756_v46 = vpop.eup %4755  ;;  %v4507_v26 = vld [vmem:[#allocation13 + $0x10] sm:$0xff]  }
 0xe5e   :  { %v2844_v51 = vmul.f32 %v4756_v46, %v6341_v33  ;;  %v4498_v33 = vld [vmem:[#allocation16 + $0x38] sm:$0xff]   ;;  %v4504_v46 = vld [vmem:[#allocation16 + $0x20] sm:$0xff]  }
 0xe5f   :  { %v4758_v44 = vpop.eup %4757 }
 0xe60   :  { %v6449_v47 = vadd.f32 %v2845_v10, %v2844_v51  ;;  %v4503_v10 = vld [vmem:[#allocation13 + $0x20] sm:$0xff]   ;;  %v4508_v51 = vld [vmem:[#allocation16 + $0x10] sm:$0xff]  }
 0xe62   :  { %4759 = vtanh.f32 %v6449_v47 }
 0xe6f   :  { %v4760_v23 = vpop.eup %4759 }
 0xe70   :  { %v6452_v24 = vmul.f32 %v4760_v23, %v4758_v44  ;;  %v4510_v44 = vld [vmem:[#allocation16 + $0x8] sm:$0xff]   ;;  %v4511_v23 = vld [vmem:[#allocation13] sm:$0xff]  }
 0xe72   :  { %v2853_v25 = vpack.c.bf16 %v6452_v24, %v6452_v24 }
 0xe74   :  { %2887 = vmatmul.mubr.bf16.vlgmr.msra.gmra.mxu0 %v2853_v25  ;;  %2928 = vmatmul.mubr.bf16.vlgmr.msra.gmra.mxu1 %v2853_v25  ;;  %v4512_v25 = vld [vmem:[#allocation16] sm:$0xff]  }
 0xe75   :  { %2970 = vmatpush1.bf16.msra.mxu0 %v6348_v17  ;;  %3011 = vmatpush1.bf16.msra.mxu1 %v6351_v34  ;;  %v6747_v17 = vld [vmem:[#allocation40_spill] sm:$0xff] }
 0xe76   :  { %2971 = vmatprep.subr.bf16.mxu0 %v6354_v62  ;;  %3012 = vmatprep.subr.bf16.mxu1 %v6357_v6  ;;  %v1887_v34 = vadd.f32 %v6747_v17, %v6115_v5  ;;  %v4513_v17 = vld [vmem:[#allocation10 + $0x38] sm:$0xff]  }
 0xe77   :  { %3001 = vmatprep.mubr.bf16.mxu0 %v6688_v54  ;;  %3042 = vmatprep.mubr.bf16.mxu1 %v6688_v54  ;;  %v4497_v54 = vld [vmem:[#allocation13 + $0x38] sm:$0xff]  }
 0xe79   :  { %2972 = vmatpush1.bf16.msra.mxu0 %v6362_v49  ;;  %3013 = vmatpush1.bf16.msra.mxu1 %v6365_v12  ;;  %v6748_v49 = vld [vmem:[#allocation43_spill] sm:$0xff] }
 0xe7a   :  { %2973 = vmatprep.subr.bf16.mxu0 %v6368_v32  ;;  %3014 = vmatprep.subr.bf16.mxu1 %v6371_v59  ;;  %v1889_v12 = vadd.f32 %v6748_v49, %v6123_v58  ;;  %v4520_v49 = vld [vmem:[#allocation10] sm:$0xff]  }
 0xe7d   :  { %2974 = vmatpush1.bf16.msra.mxu0 %v6374_v53  ;;  %3015 = vmatpush1.bf16.msra.mxu1 %v6377_v52 }
 0xe7e   :  { %2975 = vmatprep.subr.bf16.mxu0 %v6380_v30  ;;  %3016 = vmatprep.subr.bf16.mxu1 %v6383_v3 }
 0xe81   :  { %2976 = vmatpush1.bf16.msra.mxu0 %v6386_v50  ;;  %3017 = vmatpush1.bf16.msra.mxu1 %v6389_v38 }
 0xe82   :  { %2977 = vmatprep.subr.bf16.mxu0 %v6392_v31  ;;  %3018 = vmatprep.subr.bf16.mxu1 %v6395_v45 }
 0xe85   :  { %2978 = vmatpush1.bf16.msra.mxu0 %v6398_v0  ;;  %3019 = vmatpush1.bf16.msra.mxu1 %v6401_v9  ;;  %v6749_v0 = vld [vmem:[#allocation41_spill] sm:$0xff] }
 0xe86   :  { %2979 = vmatprep.subr.bf16.mxu0 %v6404_v29  ;;  %3020 = vmatprep.subr.bf16.mxu1 %v6407_v16  ;;  %v1962_v9 = vadd.f32 %v6749_v0, %v6133_v57  ;;  %v6750_v16 = vld [vmem:[#allocation42_spill] sm:$0xff] }
 0xe89   :  { %2980 = vmatpush1.bf16.msra.mxu0 %v6410_v13  ;;  %3021 = vmatpush1.bf16.msra.mxu1 %v6413_v14  ;;  %v1960_v13 = vadd.f32 %v6750_v16, %v6138_v43 }
 0xe8a   :  { %2981 = vmatprep.subr.bf16.mxu0 %v6416_v15  ;;  %3022 = vmatprep.subr.bf16.mxu1 %v6419_v18 }
 0xe8d   :  { %2982 = vmatpush1.bf16.msra.mxu0 %v6422_v39  ;;  %3023 = vmatpush1.bf16.msra.mxu1 %v6425_v2 }
 0xe8e   :  { %2983 = vmatprep.subr.bf16.mxu0 %v6428_v35  ;;  %3024 = vmatprep.subr.bf16.mxu1 %v6431_v36 }
 0xe91   :  { %2984 = vmatpush1.bf16.msra.mxu0 %v6434_v37  ;;  %3025 = vmatpush1.bf16.msra.mxu1 %v6437_v40 }
 0xe92   :  { %4177 = vmatprep.subr.bf16.mxu0 %v4497_v54  ;;  %4201 = vmatprep.subr.bf16.mxu1 %v4498_v33 }
 0xf34   :  { %v2888_v62 = vpop.f32.mrf.mxu0  ;;  %v2929_v6 = vpop.f32.mrf.mxu1 }
 0xf35   :  { %v2936_v32 = vadd.f32 %v2888_v62, %v1887_v34  ;;  %v2938_v14 = vadd.f32 %v2929_v6, %v1960_v13  ;;  %v5123_v34 = vmov 0.0   ;;  %v4514_v62 = vld [vmem:[#allocation10 + $0x30] sm:$0xff]   ;;  %v4515_v6 = vld [vmem:[#allocation10 + $0x28] sm:$0xff]  }
 0xf36   :  { %v2890_v59 = vpop.f32.mrf.mxu0  ;;  %v2931_v53 = vpop.f32.mrf.mxu1 }
 0xf37   :  { %v4051_v52 = vmul.f32 -1.442695, %v2936_v32  ;;  %v2937_v30 = vadd.f32 %v2890_v59, %v1889_v12  ;;  %v2939_v29 = vadd.f32 %v2931_v53, %v1962_v9  ;;  %v3490_v12 = vld [vmem:[%s6649_s15 + $0x78] sm:$0xff]  ;;  %v3489_v32 = vld [vmem:[%s6649_s15 + $0x70] sm:$0xff]  ;;  %v3488_v59 = vld [vmem:[%s6649_s15 + $0x68] sm:$0xff] }
 0xf38   :  { %v2892_v3 = vpop.f32.mrf.mxu0  ;;  %v2933_v50 = vpop.f32.mrf.mxu1  ;;  %v3487_v53 = vld [vmem:[%s6649_s15 + $0x60] sm:$0xff] }
 0xf39   :  { %4761 = vpow2.f32 %v4051_v52  ;;  %v4052_v38 = vmul.f32 -1.442695, %v2937_v30  ;;  %v4053_v15 = vmul.f32 -1.442695, %v2939_v29  ;;  %v3486_v52 = vld [vmem:[%s6649_s15 + $0x58] sm:$0xff]  ;;  %v3485_v30 = vld [vmem:[%s6649_s15 + $0x50] sm:$0xff] }
 0xf3a   :  { %v2893_v31 = vpop.f32.mrf.mxu0  ;;  %v2934_v45 = vpop.f32.mrf.mxu1  ;;  %v3484_v3 = vld [vmem:[%s6649_s15 + $0x48] sm:$0xff]  ;;  %v3483_v50 = vld [vmem:[%s6649_s15 + $0x40] sm:$0xff] }
 0xf3b   :  { %4763 = vpow2.f32 %v4052_v38  ;;  %v3482_v38 = vld [vmem:[%s6649_s15 + $0x38] sm:$0xff]  ;;  %v6752_v29 = vld [vmem:[#allocation26_spill] sm:$0xff] }
 0xf3c   :  { %4765 = vtanh.f32 %v2938_v14  ;;  %v6751_v31 = vld [vmem:[#allocation44_spill] sm:$0xff]  ;;  %v1893_v16 = vadd.f32 %v6752_v29, %v6123_v58 }
 0xf3d   :  { %4767 = vpow2.f32 %v4053_v15  ;;  %v1891_v45 = vadd.f32 %v6751_v31, %v6115_v5 }
 0xf46   :  { %v4762_v18 = vpop.eup %4761 }
 0xf47   :  { %v2943_v39 = vadd.f32 1.0, %v4762_v18 }
 0xf48   :  { %v4764_v2 = vpop.eup %4763 }
 0xf49   :  { %4769 = vrcp.f32 %v2943_v39  ;;  %v2949_v35 = vadd.f32 1.0, %v4764_v2  ;;  %v4766_v36 = vpop.eup %4765 }
 0xf4a   :  { %v4768_v37 = vpop.eup %4767 }
 0xf4b   :  { %4771 = vrcp.f32 %v2949_v35  ;;  %v2956_v7 = vadd.f32 1.0, %v4768_v37 }
 0xf4d   :  { %4773 = vrcp.f32 %v2956_v7  ;;  %v6754_v7 = vld [vmem:[#allocation45_spill] sm:$0xff] }
 0xf56   :  { %v4770_v40 = vpop.eup %4769 }
 0xf57   :  { %v2960_v22 = vmul.f32 %v4770_v40, %v4766_v36 }
 0xf58   :  { %v4772_v19 = vpop.eup %4771 }
 0xf59   :  { %v2959_v28 = vmul.f32 %v4772_v19, %v6449_v47  ;;  %v4509_v47 = vld [vmem:[#allocation13 + $0x8] sm:$0xff]  }
 0xf5a   :  { %v4774_v56 = vpop.eup %4773 }
 0xf5b   :  { %v6497_v60 = vadd.f32 %v2960_v22, %v2959_v28  ;;  %v6753_v22 = vld [vmem:[#allocation46_spill] sm:$0xff]  ;;  %v1964_v28 = vadd.f32 %v6754_v7, %v6138_v43  ;;  %v4525_v7 = vld [vmem:[#allocation17 + $0x18] sm:$0xff]  }
 0xf5c   :  { %v1966_v5 = vadd.f32 %v6753_v22, %v6133_v57  ;;  %v4522_v22 = vld [vmem:[#allocation17 + $0x30] sm:$0xff]  }
 0xf5d   :  { %4775 = vtanh.f32 %v6497_v60 }
 0xf6a   :  { %v4776_v41 = vpop.eup %4775 }
 0xf6b   :  { %v6500_v63 = vmul.f32 %v4776_v41, %v4774_v56 }
 0xf6d   :  { %v2968_v42 = vpack.c.bf16 %v6500_v63, %v6500_v63 }
 0xf6f   :  { %3002 = vmatmul.mubr.bf16.vlgmr.msra.gmra.mxu0 %v2968_v42  ;;  %3043 = vmatmul.mubr.bf16.vlgmr.msra.gmra.mxu1 %v2968_v42 }
 0xf70   :  { %4178 = vmatpush3.bf16.msra.mxu0 %v4497_v54  ;;  %4202 = vmatpush3.bf16.msra.mxu1 %v4498_v33  ;;  %v3080_v54 = vpack.c.bf16 %v6294_v27, %v6244_v55  ;;  %v3081_v33 = vpack.c.bf16 %v6452_v24, %v6344_v4  ;;  %v4516_v55 = vld [vmem:[#allocation10 + $0x20] sm:$0xff]   ;;  %v4517_v27 = vld [vmem:[#allocation10 + $0x18] sm:$0xff]   ;;  %v4518_v4 = vld [vmem:[#allocation10 + $0x10] sm:$0xff]  }
 0xf71   :  { %4193 = vmatprep.mubr.bf16.mxu0 %v3079_v48  ;;  %4217 = vmatprep.mubr.bf16.mxu1 %v3079_v48  ;;  %v4519_v24 = vld [vmem:[#allocation10 + $0x8] sm:$0xff]  }
 0xf72   :  { %4179 = vmatprep.subr.bf16.mxu0 %v4499_v20  ;;  %4203 = vmatprep.subr.bf16.mxu1 %v4500_v21 }
 0xf74   :  { %4180 = vmatpush3.bf16.msra.mxu0 %v4499_v20  ;;  %4204 = vmatpush3.bf16.msra.mxu1 %v4500_v21 }
 0xf75   :  { %4181 = vmatprep.subr.bf16.mxu0 %v4501_v1  ;;  %4205 = vmatprep.subr.bf16.mxu1 %v4502_v8 }
 0xf78   :  { %4182 = vmatpush3.bf16.msra.mxu0 %v4501_v1  ;;  %4206 = vmatpush3.bf16.msra.mxu1 %v4502_v8 }
 0xf79   :  { %4183 = vmatprep.subr.bf16.mxu0 %v4503_v10  ;;  %4207 = vmatprep.subr.bf16.mxu1 %v4504_v46 }
 0xf7c   :  { %4184 = vmatpush3.bf16.msra.mxu0 %v4503_v10  ;;  %4208 = vmatpush3.bf16.msra.mxu1 %v4504_v46 }
 0xf7d   :  { %4185 = vmatprep.subr.bf16.mxu0 %v4505_v11  ;;  %4209 = vmatprep.subr.bf16.mxu1 %v4506_v61 }
 0xf80   :  { %4186 = vmatpush3.bf16.msra.mxu0 %v4505_v11  ;;  %4210 = vmatpush3.bf16.msra.mxu1 %v4506_v61 }
 0xf81   :  { %4187 = vmatprep.subr.bf16.mxu0 %v4507_v26  ;;  %4211 = vmatprep.subr.bf16.mxu1 %v4508_v51 }
 0xf84   :  { %4188 = vmatpush3.bf16.msra.mxu0 %v4507_v26  ;;  %4212 = vmatpush3.bf16.msra.mxu1 %v4508_v51 }
 0xf85   :  { %4189 = vmatprep.subr.bf16.mxu0 %v4509_v47  ;;  %4213 = vmatprep.subr.bf16.mxu1 %v4510_v44 }
 0xf88   :  { %4190 = vmatpush3.bf16.msra.mxu0 %v4509_v47  ;;  %4214 = vmatpush3.bf16.msra.mxu1 %v4510_v44 }
 0xf89   :  { %4191 = vmatprep.subr.bf16.mxu0 %v4511_v23  ;;  %4215 = vmatprep.subr.bf16.mxu1 %v4512_v25 }
 0xf8c   :  { %4192 = vmatpush3.bf16.msra.mxu0 %v4511_v23  ;;  %4216 = vmatpush3.bf16.msra.mxu1 %v4512_v25  ;;  %v3479_v23 = vld [vmem:[%s6649_s15 + $0x20] sm:$0xff]  ;;  %v3478_v25 = vld [vmem:[%s6649_s15 + $0x18] sm:$0xff] }
 0xf8d   :  { %4225 = vmatprep.subr.bf16.mxu0 %v5123_v34  ;;  %4245 = vmatprep.subr.mxu1 %v3490_v12 }
 0xf8f   :  { %4194 = vmatmul.mubr.bf16.vlgmr.msra.gmra.mxu0 %v3080_v54  ;;  %4218 = vmatmul.mubr.bf16.vlgmr.msra.gmra.mxu1 %v3080_v54  ;;  %v3477_v54 = vld [vmem:[%s6649_s15 + $0x10] sm:$0xff] }
 0xf90   :  { %4197 = vmatprep.mubr.bf16.mxu0 %v3081_v33  ;;  %4221 = vmatprep.mubr.bf16.mxu1 %v3081_v33  ;;  %v3476_v33 = vld [vmem:[%s6649_s15 + $0x8] sm:$0xff] }
 0xf91   :  { %4226 = vmatpush3.bf16.msra.mxu0 %v4513_v17  ;;  %4246 = vmatpush3.msra.mxu1 %v3490_v12  ;;  %v3475_v17 = vld [vmem:[%s6649_s15] sm:$0xff] }
 0xf92   :  { %4227 = vmatprep.subr.bf16.mxu0 %v5123_v34  ;;  %4247 = vmatprep.subr.mxu1 %v3489_v32 }
 0xf93   :  { %4248 = vmatpush3.msra.mxu1 %v3489_v32  ;;  %v4075_v32 = vld [vmem:[#allocation11] ss:$0 sm:$0xff] }
 0xf94   :  { %4249 = vmatprep.subr.mxu1 %v3488_v59 }
 0xf95   :  { %4228 = vmatpush3.bf16.msra.mxu0 %v4514_v62  ;;  %4250 = vmatpush3.msra.mxu1 %v3488_v59  ;;  %v4057_v59 = vld [vmem:[#allocation14] ss:$0 sm:$0xff] }
 0xf96   :  { %4229 = vmatprep.subr.bf16.mxu0 %v5123_v34  ;;  %4251 = vmatprep.subr.mxu1 %v3487_v53 }
 0xf97   :  { %4252 = vmatpush3.msra.mxu1 %v3487_v53 }
 0xf98   :  { %4253 = vmatprep.subr.mxu1 %v3486_v52 }
 0xf99   :  { %4230 = vmatpush3.bf16.msra.mxu0 %v4515_v6  ;;  %4254 = vmatpush3.msra.mxu1 %v3486_v52 }
 0xf9a   :  { %4231 = vmatprep.subr.bf16.mxu0 %v5123_v34  ;;  %4255 = vmatprep.subr.mxu1 %v3485_v30 }
 0xf9b   :  { %4256 = vmatpush3.msra.mxu1 %v3485_v30 }
 0xf9c   :  { %4257 = vmatprep.subr.mxu1 %v3484_v3 }
 0xf9d   :  { %4232 = vmatpush3.bf16.msra.mxu0 %v4516_v55  ;;  %4258 = vmatpush3.msra.mxu1 %v3484_v3 }
 0xf9e   :  { %4233 = vmatprep.subr.bf16.mxu0 %v5123_v34  ;;  %4259 = vmatprep.subr.mxu1 %v3483_v50 }
 0xf9f   :  { %4260 = vmatpush3.msra.mxu1 %v3483_v50 }
 0xfa0   :  { %4261 = vmatprep.subr.mxu1 %v3482_v38 }
 0xfa1   :  { %4234 = vmatpush3.bf16.msra.mxu0 %v4517_v27  ;;  %4262 = vmatpush3.msra.mxu1 %v3482_v38 }
 0xfa2   :  { %4235 = vmatprep.subr.bf16.mxu0 %v5123_v34 }
 0xfa5   :  { %4236 = vmatpush3.bf16.msra.mxu0 %v4518_v4 }
 0xfa6   :  { %4237 = vmatprep.subr.bf16.mxu0 %v5123_v34 }
 0xfa9   :  { %4238 = vmatpush3.bf16.msra.mxu0 %v4519_v24 }
 0xfaa   :  { %4239 = vmatprep.subr.bf16.mxu0 %v5123_v34 }
 0xfad   :  { %4240 = vmatpush3.bf16.msra.mxu0 %v4520_v49 }
 0xfae   :  { %4289 = vmatprep.subr.bf16.mxu0 %v5123_v34 }
0x102f   :  { %v3003_v0 = vpop.f32.mrf.mxu0  ;;  %v3044_v9 = vpop.f32.mrf.mxu1 }
0x1030   :  { %v3051_v13 = vadd.f32 %v3003_v0, %v1891_v45  ;;  %v3053_v58 = vadd.f32 %v3044_v9, %v1964_v28  ;;  %v4526_v28 = vld [vmem:[#allocation17 + $0x10] sm:$0xff]  }
0x1031   :  { %v3005_v14 = vpop.f32.mrf.mxu0  ;;  %v3046_v15 = vpop.f32.mrf.mxu1 }
0x1032   :  { %v4054_v18 = vmul.f32 -1.442695, %v3051_v13  ;;  %v3052_v39 = vadd.f32 %v3005_v14, %v1893_v16  ;;  %v3054_v19 = vadd.f32 %v3046_v15, %v1966_v5  ;;  %v4523_v5 = vld [vmem:[#allocation17 + $0x28] sm:$0xff]  }
0x1033   :  { %v3007_v2 = vpop.f32.mrf.mxu0  ;;  %v3048_v35 = vpop.f32.mrf.mxu1 }
0x1034   :  { %4777 = vpow2.f32 %v4054_v18  ;;  %v4055_v36 = vmul.f32 -1.442695, %v3052_v39  ;;  %v4056_v56 = vmul.f32 -1.442695, %v3054_v19  ;;  %v4524_v19 = vld [vmem:[#allocation17 + $0x20] sm:$0xff]  }
0x1035   :  { %v3008_v37 = vpop.f32.mrf.mxu0  ;;  %v3049_v40 = vpop.f32.mrf.mxu1 }
0x1036   :  { %4779 = vpow2.f32 %v4055_v36  ;;  %v4521_v40 = vld [vmem:[#allocation17 + $0x38] sm:$0xff]  }
0x1037   :  { %4781 = vtanh.f32 %v3053_v58  ;;  %v4527_v58 = vld [vmem:[#allocation17 + $0x8] sm:$0xff]  }
0x1038   :  { %4783 = vpow2.f32 %v4056_v56  ;;  %v4528_v56 = vld [vmem:[#allocation17] sm:$0xff]  }
0x1041   :  { %v4778_v41 = vpop.eup %4777 }
0x1042   :  { %v3058_v42 = vadd.f32 1.0, %v4778_v41  ;;  %v4529_v41 = vld [vmem:[#allocation19 + $0x38] sm:$0xff]  }
0x1043   :  { %v4780_v20 = vpop.eup %4779 }
0x1044   :  { %4785 = vrcp.f32 %v3058_v42  ;;  %v3064_v21 = vadd.f32 1.0, %v4780_v20  ;;  %v4782_v48 = vpop.eup %4781  ;;  %v4530_v42 = vld [vmem:[#allocation19 + $0x30] sm:$0xff]   ;;  %v4531_v20 = vld [vmem:[#allocation19 + $0x28] sm:$0xff]  }
0x1045   :  { %v4784_v1 = vpop.eup %4783 }
0x1046   :  { %4787 = vrcp.f32 %v3064_v21  ;;  %v3071_v57 = vadd.f32 1.0, %v4784_v1 }
0x1048   :  { %4789 = vrcp.f32 %v3071_v57 }
0x104f   :  { %v4195_v62 = vpop.f32.mrf.mxu0  ;;  %v6593_v21 = vpop.f32.mrf.mxu1 }
0x1050   :  { %v3197_v38 = vadd.f32 %v4195_v62, %v4057_v59 }
0x1051   :  { %v4786_v8 = vpop.eup %4785  ;;  %v3188_v6 = vpop.f32.mrf.mxu0 }
0x1052   :  { %v3075_v10 = vmul.f32 %v4786_v8, %v4782_v48  ;;  %v3189_v52 = vadd.f32 %v4057_v59, %v3188_v6  ;;  %v4532_v48 = vld [vmem:[#allocation19 + $0x20] sm:$0xff]   ;;  %v6596_v1 = vpop.f32.mrf.mxu1  ;;  %v4533_v8 = vld [vmem:[#allocation19 + $0x18] sm:$0xff]  }
0x1053   :  { %v4788_v46 = vpop.eup %4787  ;;  %v4196_v55 = vpop.f32.mrf.mxu0 }
0x1054   :  { %v3074_v11 = vmul.f32 %v4788_v46, %v6497_v60  ;;  %v3481_v60 = vld [vmem:[%s6649_s15 + $0x30] sm:$0xff]  ;;  %v3200_v29 = vadd.f32 %v4196_v55, %v4057_v59 }
0x1055   :  { %v4790_v43 = vpop.eup %4789  ;;  %4263 = vmatprep.subr.mxu1 %v3481_v60  ;;  %v3191_v27 = vpop.f32.mrf.mxu0  ;;  %v4534_v46 = vld [vmem:[#allocation19 + $0x10] sm:$0xff]  }
0x1056   :  { %v3076_v61 = vadd.f32 %v3075_v10, %v3074_v11  ;;  %4264 = vmatpush3.msra.mxu1 %v3481_v60  ;;  %v3192_v30 = vadd.f32 %v4057_v59, %v3191_v27  ;;  %v6599_v10 = vpop.f32.mrf.mxu1  ;;  %v4535_v11 = vld [vmem:[#allocation19 + $0x8] sm:$0xff]  }
0x1058   :  { %4791 = vtanh.f32 %v3076_v61  ;;  %v6602_v57 = vpop.f32.mrf.mxu1 }
0x1065   :  { %v4792_v26 = vpop.eup %4791 }
0x1066   :  { %v3078_v51 = vmul.f32 %v4792_v26, %v4790_v43 }
0x1068   :  { %v3082_v47 = vpack.c.bf16 %v3078_v51, %v6500_v63  ;;  %v3355_v44 = vpack.c.bf16 %v3078_v51, %v3078_v51  ;;  %v3480_v63 = vld [vmem:[%s6649_s15 + $0x28] sm:$0xff] }
0x1069   :  { %4265 = vmatprep.subr.mxu1 %v3480_v63 }
0x106a   :  { %4198 = vmatmul.mubr.bf16.gmra.mxu0 %v3082_v47  ;;  %4222 = vmatmul.mubr.bf16.gmra.mxu1 %v3082_v47 }
0x106b   :  { %4241 = vmatprep.mubr.msk.bf16.mxu0 %vm5124_vm1, %v5123_v34  ;;  %4266 = vmatpush3.msra.mxu1 %v3480_v63 }
0x106c   :  { %4267 = vmatprep.subr.mxu1 %v3479_v23 }
0x106d   :  { %4268 = vmatpush3.msra.mxu1 %v3479_v23 }
0x106e   :  { %4269 = vmatprep.subr.mxu1 %v3478_v25 }
0x106f   :  { %4270 = vmatpush3.msra.mxu1 %v3478_v25 }
0x1070   :  { %4271 = vmatprep.subr.mxu1 %v3477_v54 }
0x1071   :  { %4272 = vmatpush3.msra.mxu1 %v3477_v54 }
0x1072   :  { %4242 = vmatmul.mubr.bf16.vlgmr.msra.gmra.mxu0 %v3355_v44  ;;  %4273 = vmatprep.subr.mxu1 %v3476_v33 }
0x1073   :  { %4305 = vmatprep.mubr.msk.bf16.mxu0 %vm5124_vm1, %v5123_v34  ;;  %4274 = vmatpush3.msra.mxu1 %v3476_v33 }
0x1074   :  { %4275 = vmatprep.subr.mxu1 %v3475_v17  ;;  %4290 = vmatpush3.bf16.msra.mxu0 %v4521_v40 }
0x1075   :  { %4276 = vmatpush3.msra.mxu1 %v3475_v17  ;;  %4291 = vmatprep.subr.bf16.mxu0 %v5123_v34 }
0x1076   :  { %4309 = vmatprep.subr.bf16.mxu1 %v5123_v34 }
0x1078   :  { %4292 = vmatpush3.bf16.msra.mxu0 %v4522_v22 }
0x1079   :  { %4293 = vmatprep.subr.bf16.mxu0 %v5123_v34 }
0x107c   :  { %4294 = vmatpush3.bf16.msra.mxu0 %v4523_v5 }
0x107d   :  { %4295 = vmatprep.subr.bf16.mxu0 %v5123_v34 }
0x1080   :  { %4296 = vmatpush3.bf16.msra.mxu0 %v4524_v19 }
0x1081   :  { %4297 = vmatprep.subr.bf16.mxu0 %v5123_v34 }
0x1084   :  { %4298 = vmatpush3.bf16.msra.mxu0 %v4525_v7 }
0x1085   :  { %4299 = vmatprep.subr.bf16.mxu0 %v5123_v34 }
0x1088   :  { %4300 = vmatpush3.bf16.msra.mxu0 %v4526_v28 }
0x1089   :  { %4301 = vmatprep.subr.bf16.mxu0 %v5123_v34 }
0x108c   :  { %4302 = vmatpush3.bf16.msra.mxu0 %v4527_v58 }
0x108d   :  { %4303 = vmatprep.subr.bf16.mxu0 %v5123_v34 }
0x1090   :  { %4304 = vmatpush3.bf16.msra.mxu0 %v4528_v56 }
0x112a   :  { %v4199_v4 = vpop.f32.mrf.mxu0  ;;  %v6605_v61 = vpop.f32.mrf.mxu1 }
0x112b   :  { %v3213_v39 = vadd.f32 %v4199_v4, %v4057_v59 }
0x112c   :  { %v3204_v24 = vpop.f32.mrf.mxu0  ;;  %v6608_v43 = vpop.f32.mrf.mxu1 }
0x112d   :  { %v3205_v13 = vadd.f32 %v4057_v59, %v3204_v24 }
0x112e   :  { %v4200_v49 = vpop.f32.mrf.mxu0  ;;  %v6610_v26 = vpop.f32.mrf.mxu1 }
0x112f   :  { %v3216_v36 = vadd.f32 %v4200_v49, %v4057_v59 }
0x1130   :  { %v3207_v12 = vpop.f32.mrf.mxu0  ;;  %v6612_v51 = vpop.f32.mrf.mxu1 }
0x1131   :  { %v3208_v18 = vadd.f32 %v4057_v59, %v3207_v12 }
0x1132   :  { %v3461_v53 = vpop.f32.mrf.mxu0 }
0x1133   :  { %v3462_v3 = vadd.f32 %v4075_v32, %v3461_v53 }
0x1134   :  { %v4243_v50 = vpop.f32.mrf.mxu0 }
0x1135   :  { %v3467_v31 = vmul.f32 %v3462_v3, %v3189_v52  ;;  %v3468_v45 = vmul.f32 %v3462_v3, %v3192_v30  ;;  %v3469_v9 = vmul.f32 %v3462_v3, %v3197_v38  ;;  %v3470_v14 = vmul.f32 %v3462_v3, %v3200_v29 }
0x1136   :  { %v3464_v0 = vpop.f32.mrf.mxu0  ;;  %v3471_v15 = vmul.f32 %v3462_v3, %v3205_v13  ;;  %v3472_v2 = vmul.f32 %v3462_v3, %v3208_v18  ;;  %v3473_v35 = vmul.f32 %v3462_v3, %v3213_v39  ;;  %v3474_v37 = vmul.f32 %v3462_v3, %v3216_v36 }
0x1137   :  { %4277 = vmatprep.mubr.f32.mxu1 %v3467_v31 }
0x1138   :  { %v4244_v16 = vpop.f32.mrf.mxu0  ;;  %4278 = vmatmul.mubr.f32.vlgmr.msra.gmra.mxu1 %v3468_v45 }
0x1139   :  { %4280 = vmatprep.mubr.f32.mxu1 %v3469_v9  ;;  %4310 = vmatpush3.bf16.msra.mxu1 %v4529_v41 }
0x113a   :  { %4311 = vmatprep.subr.bf16.mxu1 %v5123_v34 }
0x113c   :  { %4281 = vmatmul.mubr.f32.gmra.mxu1 %v3470_v14 }
0x113d   :  { %4283 = vmatprep.mubr.f32.mxu1 %v3471_v15  ;;  %4312 = vmatpush3.bf16.msra.mxu1 %v4530_v42 }
0x113e   :  { %4313 = vmatprep.subr.bf16.mxu1 %v5123_v34 }
0x1140   :  { %4284 = vmatmul.mubr.f32.gmra.mxu1 %v3472_v2 }
0x1141   :  { %4286 = vmatprep.mubr.f32.mxu1 %v3473_v35  ;;  %4314 = vmatpush3.bf16.msra.mxu1 %v4531_v20 }
0x1142   :  { %4315 = vmatprep.subr.bf16.mxu1 %v5123_v34 }
0x1144   :  { %4287 = vmatmul.mubr.f32.gmra.mxu1 %v3474_v37 }
0x1145   :  { %4325 = vmatprep.mubr.msk.bf16.mxu1 %vm5124_vm1, %v5123_v34  ;;  %4316 = vmatpush3.bf16.msra.mxu1 %v4532_v48 }
0x1146   :  { %4317 = vmatprep.subr.bf16.mxu1 %v5123_v34 }
0x1149   :  { %4318 = vmatpush3.bf16.msra.mxu1 %v4533_v8 }
0x114a   :  { %4319 = vmatprep.subr.bf16.mxu1 %v5123_v34 }
0x114d   :  { %4320 = vmatpush3.bf16.msra.mxu1 %v4534_v46  ;;  %v4066_v46 = vld [vmem:[%s6646_s12] ss:$0 sm:$0xff] }
0x114e   :  { %4321 = vmatprep.subr.bf16.mxu1 %v5123_v34 }
0x1151   :  { %4322 = vmatpush3.bf16.msra.mxu1 %v4535_v11 }
0x1152   :  { %4323 = vmatprep.subr.bf16.mxu1 %v5123_v34 }
0x11f8   :  { %v4279_v47 = vpop.f32.mrf.mxu1 }
0x11f9   :  { %v3597_v55 = vmul.f32 0.35355338, %v4279_v47  ;;  %v3325_v47 = vadd.f32 %v4066_v46, %v6596_v1 }
0x11fa   :  { %v3557_v44 = vpop.f32.mrf.mxu1 }
0x11fb   :  { %v3596_v17 = vmul.f32 0.35355338, %v3557_v44  ;;  %v3328_v44 = vadd.f32 %v4066_v46, %v6602_v57  ;;  %v3344_v57 = vadd.f32 %v4066_v46, %v6612_v51  ;;  %v4084_v51 = vld [vmem:[%s6648_s14] ss:$0 sm:$0xff] }
0x11fc   :  { %v4282_v60 = vpop.f32.mrf.mxu1 }
0x11fd   :  { %v3599_v34 = vmul.f32 0.35355338, %v4282_v60 }
0x11fe   :  { %v3567_v63 = vpop.f32.mrf.mxu1 }
0x11ff   :  { %v3598_v4 = vmul.f32 0.35355338, %v3567_v63 }
0x1200   :  { %v4285_v23 = vpop.f32.mrf.mxu1 }
0x1201   :  { %v3601_v62 = vmul.f32 0.35355338, %v4285_v23 }
0x1202   :  { %v3577_v25 = vpop.f32.mrf.mxu1 }
0x1203   :  { %v3600_v54 = vmul.f32 0.35355338, %v3577_v25  ;;  %v3605_v12 = vmax.f32 %v3597_v55, %v3601_v62  ;;  %v3333_v25 = vadd.f32 %v6593_v21, %v4066_v46  ;;  %v3349_v21 = vadd.f32 %v6605_v61, %v4066_v46 }
0x1204   :  { %v4288_v33 = vpop.f32.mrf.mxu1 }
0x1205   :  { %v3603_v6 = vmul.f32 0.35355338, %v4288_v33  ;;  %v3604_v24 = vmax.f32 %v3596_v17, %v3600_v54 }
0x1206   :  { %v3587_v27 = vpop.f32.mrf.mxu1 }
0x1207   :  { %v3602_v49 = vmul.f32 0.35355338, %v3587_v27  ;;  %v3607_v32 = vmax.f32 %v3599_v34, %v3603_v6  ;;  %v3608_v53 = vmax.f32 %v3604_v24, %v3605_v12 }
0x1209   :  { %v3606_v59 = vmax.f32 %v3598_v4, %v3602_v49 }
0x120b   :  { %v3609_v52 = vmax.f32 %v3606_v59, %v3607_v32 }
0x120d   :  { %v3610_v30 = vmax.f32 %v3608_v53, %v3609_v52 }
0x120f   :  { %v3611_v3 = vsub.f32 %v3596_v17, %v3610_v30  ;;  %v3612_v50 = vsub.f32 %v3597_v55, %v3610_v30  ;;  %v3613_v38 = vsub.f32 %v3598_v4, %v3610_v30  ;;  %v3614_v31 = vsub.f32 %v3599_v34, %v3610_v30 }
0x1210   :  { %v3615_v9 = vsub.f32 %v3600_v54, %v3610_v30  ;;  %v3616_v16 = vsub.f32 %v3601_v62, %v3610_v30  ;;  %v3617_v14 = vsub.f32 %v3602_v49, %v3610_v30  ;;  %v3618_v18 = vsub.f32 %v3603_v6, %v3610_v30 }
0x1211   :  { %v3619_v45 = vmul.f32 1.442695, %v3611_v3  ;;  %v3621_v0 = vmul.f32 1.442695, %v3612_v50  ;;  %v3623_v29 = vmul.f32 1.442695, %v3613_v38  ;;  %v3336_v62 = vadd.f32 %v6599_v10, %v4066_v46 }
0x1212   :  { %v3625_v13 = vmul.f32 1.442695, %v3614_v31  ;;  %v3627_v15 = vmul.f32 1.442695, %v3615_v9  ;;  %v3629_v39 = vmul.f32 1.442695, %v3616_v16  ;;  %v3341_v34 = vadd.f32 %v4066_v46, %v6608_v43 }
0x1213   :  { %4793 = vpow2.f32 %v3619_v45  ;;  %v3631_v2 = vmul.f32 1.442695, %v3617_v14  ;;  %v3633_v35 = vmul.f32 1.442695, %v3618_v18  ;;  %v3352_v10 = vadd.f32 %v6610_v26, %v4066_v46  ;;  %v4536_v45 = vld [vmem:[#allocation19] sm:$0xff]  }
0x1214   :  { %4795 = vpow2.f32 %v3621_v0  ;;  %4324 = vmatpush3.bf16.msra.mxu1 %v4536_v45 }
0x1215   :  { %4797 = vpow2.f32 %v3623_v29 }
0x1216   :  { %4799 = vpow2.f32 %v3625_v13  ;;  %v4093_v13 = vld [vmem:[%s6651_s17] ss:$0 sm:$0xff] }
0x1217   :  { %4801 = vpow2.f32 %v3627_v15 }
0x1218   :  { %4803 = vpow2.f32 %v3629_v39 }
0x1219   :  { %4805 = vpow2.f32 %v3631_v2 }
0x121a   :  { %4807 = vpow2.f32 %v3633_v35 }
0x1220   :  { %v4794_v36 = vpop.eup %4793 }
0x1221   :  { %v4796_v37 = vpop.eup %4795 }
0x1222   :  { %v3635_v40 = vadd.f32 %v4796_v37, %v4794_v36  ;;  %v4798_v22 = vpop.eup %4797 }
0x1223   :  { %v4800_v19 = vpop.eup %4799 }
0x1224   :  { %v3636_v5 = vadd.f32 %v4798_v22, %v3635_v40  ;;  %v4802_v28 = vpop.eup %4801 }
0x1225   :  { %v4804_v56 = vpop.eup %4803 }
0x1226   :  { %v3637_v7 = vadd.f32 %v4800_v19, %v3636_v5  ;;  %v4806_v42 = vpop.eup %4805 }
0x1227   :  { %v4808_v48 = vpop.eup %4807 }
0x1228   :  { %v3638_v58 = vadd.f32 %v4802_v28, %v3637_v7 }
0x122a   :  { %v3639_v41 = vadd.f32 %v4804_v56, %v3638_v58 }
0x122c   :  { %v3640_v20 = vadd.f32 %v4806_v42, %v3639_v41 }
0x122e   :  { %v3641_v8 = vadd.f32 %v4808_v48, %v3640_v20 }
0x1230   :  { %4809 = vrcp.f32 %v3641_v8 }
0x123d   :  { %v4810_v11 = vpop.eup %4809 }
0x123e   :  { %v3643_v60 = vmul.f32 %v4810_v11, %v4794_v36  ;;  %v3644_v63 = vmul.f32 %v4810_v11, %v4796_v37  ;;  %v3645_v23 = vmul.f32 %v4810_v11, %v4798_v22  ;;  %v3646_v54 = vmul.f32 %v4810_v11, %v4800_v19 }
0x123f   :  { %v3647_v6 = vmul.f32 %v4810_v11, %v4802_v28  ;;  %v3648_v4 = vmul.f32 %v4810_v11, %v4804_v56  ;;  %v3649_v49 = vmul.f32 %v4810_v11, %v4806_v42  ;;  %v3650_v59 = vmul.f32 %v4810_v11, %v4808_v48 }
0x1240   :  { %v3651_v33 = vmul.f32 %v3643_v60, %v3325_v47  ;;  %v3652_v17 = vmul.f32 %v3644_v63, %v3328_v44  ;;  %v3653_v55 = vmul.f32 %v3645_v23, %v3333_v25  ;;  %v3654_v24 = vmul.f32 %v3646_v54, %v3336_v62 }
0x1241   :  { %v3655_v12 = vmul.f32 %v3647_v6, %v3341_v34  ;;  %v3656_v53 = vmul.f32 %v3648_v4, %v3344_v57  ;;  %v3657_v30 = vmul.f32 %v3649_v49, %v3349_v21  ;;  %v3658_v50 = vmul.f32 %v3650_v59, %v3352_v10 }
0x1242   :  { %v3659_v27 = vadd.f32 %v3652_v17, %v3651_v33 }
0x1244   :  { %v3660_v1 = vadd.f32 %v3659_v27, %v3653_v55 }
0x1246   :  { %v3661_v32 = vadd.f32 %v3660_v1, %v3654_v24 }
0x1248   :  { %v3662_v52 = vadd.f32 %v3661_v32, %v3655_v12 }
0x124a   :  { %v3663_v3 = vadd.f32 %v3662_v52, %v3656_v53 }
0x124c   :  { %v3664_v38 = vadd.f32 %v3663_v3, %v3657_v30 }
0x124e   :  { %v3665_v43 = vadd.f32 %v3664_v38, %v3658_v50 }
0x1250   :  { %v3666_v31 = vpack.c.bf16 %v3665_v43, %v3665_v43 }
0x1252   :  { %4306 = vmatmul.mubr.bf16.vlgmr.msra.gmra.mxu0 %v3666_v31 }
0x1312   :  { %v3772_v0 = vpop.f32.mrf.mxu0 }
0x1313   :  { %v3773_v61 = vadd.f32 %v4084_v51, %v3772_v0 }
0x1314   :  { %v4307_v9 = vpop.f32.mrf.mxu0 }
0x1315   :  { %v3778_v29 = vpack.c.bf16 %v3773_v61, %v3773_v61 }
0x1316   :  { %v3775_v16 = vpop.f32.mrf.mxu0 }
0x1317   :  { %4326 = vmatmul.mubr.bf16.vlgmr.msra.gmra.mxu1 %v3778_v29 }
0x1318   :  { %v4308_v26 = vpop.f32.mrf.mxu0 }
0x13d7   :  { %v3884_v14 = vpop.f32.mrf.mxu1 }
0x13d8   :  { %v3885_v15 = vadd.f32 %v4093_v13, %v3884_v14 }
0x13d9   :  { %v4327_v18 = vpop.f32.mrf.mxu1 }
0x13da   :  { %3890 = vst [vmem:[%s6652_s18] sm:$0xff] %v3885_v15 }
0x13db   :  { %v3887_v39 = vpop.f32.mrf.mxu1 }
0x13dd   :  { %v4328_v2 = vpop.f32.mrf.mxu1 }
0x13de   :  { %3895 = vsyncpa [#allocation4], 1 }
0x13df   :  { %3896 = vsyncpa [#allocation6], 1 }
0x13e0   :  { %3897 = vsyncpa [#allocation9], 1 }
0x13e1   :  { %3898 = vsyncpa [#allocation12], 1 }
0x13e2   :  { %3899 = vsyncpa [#allocation15], 1 }
0x13e3   :  { %3900 = vsyncpa [#allocation18], 1 }

</bundles_post_ra>
